<compile_context>
chip_gen: v7x
topology: tpu7x:2x2x1
jax: 0.10.0
libtpu: 0.0.40
codegen_flags: <defaults>
</compile_context>

<pallas_src>
import numpy as np
import jax
import jax.numpy as jnp
from jax.experimental import pallas as pl
from jax.experimental.pallas import tpu as pltpu

# ----------------------------- configuration -------------------------------
IN_CHANNELS = 8                       # EEG channels
N_STREAMS = 2                         # audio streams
BATCH = 2
L = 128                               # samples per trial (lane-dense)
CHANNELS = list(range(IN_CHANNELS))

CHNS_1 = [8, 8, 8]                    # EEG inception branch widths
KERNELS_1 = [3, 9, 17]                # EEG inception kernel sizes (odd)
CHNS_1_AUD = [4, 4]                   # audio inception branch widths
KERNELS_1_AUD = [3, 9]                # audio inception kernel sizes (odd)
HIDDEN = 32                           # hidden_size of fc1
DROPOUT = 0.25                        # identity at inference

C_EEG_OUT = sum(CHNS_1)               # 24
C_AUD_OUT = sum(CHNS_1_AUD)           # 8
NENV = N_STREAMS * C_AUD_OUT          # 16 envelope feature rows
C_ALL = C_EEG_OUT + NENV              # 40 combined channels (batchnorm_2)
K1MAX = max(KERNELS_1)                # 17
K2MAX = max(KERNELS_1_AUD)            # 9
PAD = K1MAX // 2                      # 8 : shared time padding
AUD_OFF = (K1MAX - K2MAX) // 2        # 4 : audio tap offset into the padded axis
LP = L + 2 * PAD                      # 144 padded time axis
CT = IN_CHANNELS + N_STREAMS          # 10 raw input rows per sample
BN_EPS = 1e-5
EPS = 1e-8                            # Pearson-normalisation epsilon

# packed-constant column layout (one constant array instead of many tiny ones)
COL_A2 = L                            # BN2 scale
COL_C2 = L + 1                        # BN2 shift
COL_B1 = L + 2                        # fc1 bias
COL_W2 = L + 3                        # fc2 weight (rows 0..H-1) / bias (row H)
NCOLS = L + 3 + N_STREAMS


def _elu(x):
    # ELU with alpha=1.0 (torch default); clamp exp arg to avoid inf.
    return jnp.where(x > 0, x, jnp.exp(jnp.minimum(x, 0.0)) - 1.0)


def _pearson_norm(z):
    """Center over time (lanes) and scale rows to unit L2 norm (+eps)."""
    zc = z - jnp.mean(z, axis=-1, keepdims=True)
    ss = jnp.sum(zc * zc, axis=-1, keepdims=True)
    return zc * jax.lax.rsqrt(ss + EPS)


# ------------------------------ Pallas kernel -------------------------------
def _aadnet_kernel(x_ref, we_ref, wa_ref, cpk_ref, w1g_ref, out_ref):
    # Unpack the packed constants (all static, tile-aligned slices).
    bias_map = cpk_ref[:, 0:L]                                     # (40, L)
    a2 = cpk_ref[:, COL_A2:COL_A2 + 1]                             # (40, 1)
    c2 = cpk_ref[:, COL_C2:COL_C2 + 1]                             # (40, 1)
    b1 = cpk_ref[0:HIDDEN, COL_B1:COL_B1 + 1]                      # (H, 1)
    w2t = cpk_ref[0:HIDDEN, COL_W2:COL_W2 + N_STREAMS]             # (H, S)
    b2 = cpk_ref[HIDDEN:HIDDEN + 1, COL_W2:COL_W2 + N_STREAMS]     # (1, S)

    rows = []
    # Whole batch in one grid step (B == 2): static loop, tiny live ranges.
    for b in range(BATCH):
        # --- Inception1d(EEG): build the im2col slab in VMEM (8-row-aligned
        #     tap blocks from lane-shifted slices) and run ONE MXU matmul.
        slab = jnp.concatenate(
            [x_ref[b, 0:IN_CHANNELS, d:d + L] for d in range(K1MAX)],
            axis=0)                                                # (136, L)
        ye = jnp.dot(we_ref[...], slab,
                     preferred_element_type=jnp.float32)           # (24, L)

        # --- Inception1d(audio): 1 input channel per stream -> VPU FMAs
        #     (overlaps with the MXU matmul above; no extra MXU push/drain).
        accs = [jnp.zeros((C_AUD_OUT, L), jnp.float32)
                for _ in range(N_STREAMS)]
        for d in range(K2MAX):
            xs = x_ref[b, IN_CHANNELS:CT,
                       d + AUD_OFF:d + AUD_OFF + L]                 # (S, L)
            for s in range(N_STREAMS):
                accs[s] = accs[s] + (
                    wa_ref[s * C_AUD_OUT:(s + 1) * C_AUD_OUT, d:d + 1]
                    * xs[s:s + 1, :])

        # Constant map carries conv bias + BN1 shift (incl. padding boundary).
        pre = jnp.concatenate([ye] + accs, axis=0) + bias_map       # (40, L)
        feat = a2 * _elu(pre) + c2                                  # batchnorm_2

        gh = _pearson_norm(feat[0:C_EEG_OUT, :])                    # (24, L) eeg
        eh = _pearson_norm(feat[C_EEG_OUT:C_ALL, :])                # (16, L) env

        # fc1 applied to the flattened correlation matrix WITHOUT materialising
        # it and WITHOUT selector matmuls:
        #   h1[h] = sum_t sum_i eh[i,t] * (sum_j W1[h, i*24+j] * gh[j,t]) + b1
        v2 = jnp.dot(w1g_ref[...], gh,
                     preferred_element_type=jnp.float32)            # (H*16, L)
        v3 = v2.reshape(HIDDEN, NENV, L) * eh[None, :, :]            # (H,16,L)
        h1 = jnp.sum(jnp.sum(v3, axis=2), axis=1, keepdims=True) + b1  # (H, 1)
        h1 = _elu(h1)                                               # dropout==id

        rows.append(jnp.sum(w2t * h1, axis=0, keepdims=True) + b2)  # (1, S)

    out_ref[...] = jnp.concatenate(rows, axis=0)                    # (B, S)


# ------------------------------ wrapper / fold -------------------------------
def _bn_affine(bnp):
    g, be, mu, var = bnp
    a = g / jnp.sqrt(var + BN_EPS)
    return a, be - mu * a


def _shift_map(Ws, bs, c1_vec):
    """'same' conv of the constant BN1-shift signal (per-channel c1_vec),
    plus the conv bias.  Captures the zero-padding boundary effects exactly."""
    cin = c1_vec.shape[0]
    z = jnp.broadcast_to(c1_vec[None, :, None], (1, cin, L))
    outs = []
    for W, b in zip(Ws, bs):
        k = W.shape[2]
        pad = k // 2
        zp = jnp.pad(z, ((0, 0), (0, 0), (pad, pad)))
        y = sum(jnp.einsum('bct,mc->bmt', zp[:, :, u:u + L], W[:, :, u])
                for u in range(k))
        outs.append(y[0] + b[:, None])
    return jnp.concatenate(outs, axis=0)


def fold_params(p):
    a1, c1 = _bn_affine(p['bn1'])
    a2, c2 = _bn_affine(p['bn2'])

    # EEG conv weights with BN1 scale folded in; column layout matches the
    # in-kernel slab: tap-major blocks of IN_CHANNELS rows, tap d = u + off.
    we_f = jnp.zeros((C_EEG_OUT, IN_CHANNELS * K1MAX), jnp.float32)
    row = 0
    for W, _b in zip(p['we_br'], p['be_br']):
        m, _, k = W.shape
        off = (K1MAX - k) // 2
        for u in range(k):
            d = u + off
            we_f = we_f.at[row:row + m,
                           d * IN_CHANNELS:(d + 1) * IN_CHANNELS].set(
                W[:, :, u] * a1[None, :IN_CHANNELS])
        row += m

    # Audio conv weights (1 input channel) per stream, BN1 scale folded in.
    wa_f = jnp.zeros((N_STREAMS * C_AUD_OUT, K2MAX), jnp.float32)
    for s in range(N_STREAMS):
        row = s * C_AUD_OUT
        for W, _b in zip(p['wa_br'], p['ba_br']):
            m, _, k = W.shape
            off = (K2MAX - k) // 2
            for u in range(k):
                wa_f = wa_f.at[row:row + m, u + off].set(
                    W[:, 0, u] * a1[IN_CHANNELS + s])
            row += m

    # Constant pre-activation map: conv bias + BN1 shift through the conv.
    bias_map = jnp.concatenate(
        [_shift_map(p['we_br'], p['be_br'], c1[:IN_CHANNELS])]
        + [_shift_map(p['wa_br'], p['ba_br'],
                      c1[IN_CHANNELS + s:IN_CHANNELS + s + 1])
           for s in range(N_STREAMS)], axis=0)                       # (40, L)

    # Pack all the small per-channel constants + fc tail into ONE array.
    cpk = jnp.zeros((C_ALL, NCOLS), jnp.float32)
    cpk = cpk.at[:, 0:L].set(bias_map)
    cpk = cpk.at[:, COL_A2].set(a2)
    cpk = cpk.at[:, COL_C2].set(c2)
    cpk = cpk.at[0:HIDDEN, COL_B1].set(p['b_fc1'])
    cpk = cpk.at[0:HIDDEN, COL_W2:COL_W2 + N_STREAMS].set(p['w_fc2'].T)
    cpk = cpk.at[HIDDEN, COL_W2:COL_W2 + N_STREAMS].set(p['b_fc2'])

    # fc1 weight reorganised h-major over env features: row h*NENV+i, col j.
    w1g = p['w_fc1'].reshape(HIDDEN * NENV, C_EEG_OUT)               # (512, 24)

    return (we_f, wa_f, cpk, w1g)


def aadnet_pallas(eeg, env, folded):
    """eeg: (B, C, >=L), env: (B, S, L) -> (B, S) logits."""
    we_f, wa_f, cpk, w1g = folded
    B, _, _ = eeg.shape
    _, S, Lx = env.shape

    # Layout-only prep (tiny): concat channels + zero-pad the time axis by
    # K1MAX//2 on each side.  All tap construction happens inside the kernel.
    x = jnp.concatenate([eeg[:, :, :Lx], env], axis=1)               # (B, 10, L)
    x_pad = jnp.pad(x, ((0, 0), (0, 0), (PAD, PAD)))                 # (B, 10, 144)

    return pl.pallas_call(
        _aadnet_kernel,
        out_shape=jax.ShapeDtypeStruct((B, S), jnp.float32),
        grid=(1,),                      # single step: whole batch per call
        in_specs=[
            pl.BlockSpec((B, CT, LP), lambda i: (0, 0, 0)),
            pl.BlockSpec(we_f.shape, lambda i: (0, 0)),
            pl.BlockSpec(wa_f.shape, lambda i: (0, 0)),
            pl.BlockSpec(cpk.shape, lambda i: (0, 0)),
            pl.BlockSpec(w1g.shape, lambda i: (0, 0)),
        ],
        out_specs=pl.BlockSpec((B, S), lambda i: (0, 0)),
        compiler_params=pltpu.CompilerParams(
            dimension_semantics=("arbitrary",)),
    )(x_pad, we_f, wa_f, cpk, w1g)


# ------------------------ parameters (deterministic) -------------------------
def make_params(key):
    ks = iter(jax.random.split(key, 32))
    p = {}
    p['we_br'] = [0.2 * jax.random.normal(next(ks), (m, IN_CHANNELS, k), jnp.float32)
                  for m, k in zip(CHNS_1, KERNELS_1)]
    p['be_br'] = [0.1 * jax.random.normal(next(ks), (m,), jnp.float32) for m in CHNS_1]
    p['wa_br'] = [0.2 * jax.random.normal(next(ks), (m, 1, k), jnp.float32)
                  for m, k in zip(CHNS_1_AUD, KERNELS_1_AUD)]
    p['ba_br'] = [0.1 * jax.random.normal(next(ks), (m,), jnp.float32) for m in CHNS_1_AUD]

    def bn(n):
        g = 1.0 + 0.1 * jax.random.normal(next(ks), (n,), jnp.float32)
        be = 0.1 * jax.random.normal(next(ks), (n,), jnp.float32)
        mu = 0.1 * jax.random.normal(next(ks), (n,), jnp.float32)
        var = 0.5 + 0.5 * jax.random.uniform(next(ks), (n,), jnp.float32)
        return (g, be, mu, var)

    p['bn1'] = bn(IN_CHANNELS + N_STREAMS)
    p['bn2'] = bn(C_ALL)
    p['w_fc1'] = 0.1 * jax.random.normal(
        next(ks), (HIDDEN, NENV * C_EEG_OUT), jnp.float32)
    p['b_fc1'] = 0.1 * jax.random.normal(next(ks), (HIDDEN,), jnp.float32)
    p['w_fc2'] = 0.2 * jax.random.normal(next(ks), (N_STREAMS, HIDDEN), jnp.float32)
    p['b_fc2'] = 0.1 * jax.random.normal(next(ks), (N_STREAMS,), jnp.float32)
    return p


# --------------------------- pure-JAX reference ------------------------------
def aadnet_reference(eeg, env, p):
    B, C, _ = eeg.shape
    _, S, Lx = env.shape
    a1, c1 = _bn_affine(p['bn1'])
    a2, c2 = _bn_affine(p['bn2'])

    x = jnp.concatenate([eeg[:, :, :Lx], env], axis=1)
    x = a1[None, :, None] * x + c1[None, :, None]              # batchnorm_1 (eval)
    xe = x[:, :C, :]
    xa = x[:, C:, :]

    def conv1d_same(z, W, bias):
        k = W.shape[2]
        pad = k // 2
        zp = jnp.pad(z, ((0, 0), (0, 0), (pad, pad)))
        y = sum(jnp.einsum('bct,mc->bmt', zp[:, :, u:u + Lx], W[:, :, u])
                for u in range(k))
        return y + bias[None, :, None]

    feats = [jnp.concatenate(
        [_elu(conv1d_same(xe, W, b)) for W, b in zip(p['we_br'], p['be_br'])], axis=1)]
    for i in range(S):
        zi = xa[:, i:i + 1, :]
        feats.append(jnp.concatenate(
            [_elu(conv1d_same(zi, W, b)) for W, b in zip(p['wa_br'], p['ba_br'])], axis=1))
    comb = jnp.concatenate(feats, axis=1)
    comb = a2[None, :, None] * comb + c2[None, :, None]         # batchnorm_2 (eval)

    eegf = comb[:, :C_EEG_OUT, :]
    envf = comb[:, C_EEG_OUT:, :]
    corr = jnp.einsum('bit,bjt->bij', _pearson_norm(envf), _pearson_norm(eegf))
    flat = corr.reshape(B, -1)                                  # dropout_1 == identity
    h1 = _elu(flat @ p['w_fc1'].T + p['b_fc1'][None, :])
    return h1 @ p['w_fc2'].T + p['b_fc2'][None, :]              # (B, S)


# ----------------------------------- main ------------------------------------
if __name__ == "__main__":
    key = jax.random.PRNGKey(0)
    k_eeg, k_env, k_par = jax.random.split(key, 3)

    assert IN_CHANNELS == len(CHANNELS), 'Number of input channels is mismatched.'
    eeg = jax.random.normal(k_eeg, (BATCH, IN_CHANNELS, L), jnp.float32)
    env = jax.random.normal(k_env, (BATCH, N_STREAMS, L), jnp.float32)
    assert env.shape[1] == N_STREAMS, \
        'Number of streams of the input data is mismatched.'

    params = make_params(k_par)
    folded = fold_params(params)

    fwd = jax.jit(aadnet_pallas)                  # single launch: prep + kernel
    out = jax.block_until_ready(fwd(eeg, env, folded))
    ref = jax.block_until_ready(aadnet_reference(eeg, env, params))

    diff = np.max(np.abs(np.asarray(out) - np.asarray(ref)))
    if not np.allclose(np.asarray(out), np.asarray(ref), rtol=1e-3, atol=1e-3):
        raise AssertionError(f"Pallas kernel mismatch vs reference, max|diff|={diff}")

    print("KERNEL_OK")
</pallas_src>

<mosaic_0001>
module attributes {stable_mosaic.version = 11 : i64} {
  func.func @_aadnet_kernel(%arg0: i32, %arg1: memref<2x10x144xf32, #tpu.memory_space<vmem>>, %arg2: memref<24x136xf32, #tpu.memory_space<vmem>>, %arg3: memref<16x9xf32, #tpu.memory_space<vmem>>, %arg4: memref<40x133xf32, #tpu.memory_space<vmem>>, %arg5: memref<512x24xf32, #tpu.memory_space<vmem>>, %arg6: memref<2x2xf32, #tpu.memory_space<vmem>>) attributes {dimension_semantics = [#tpu.dimension_semantics<arbitrary>], iteration_bounds = array<i64: 1>, scalar_prefetch = 0 : i64, scratch_operands = 0 : i64, tpu.core_type = #tpu.core_type<tc>, window_params = [{pipeline_mode = #tpu.pipeline_mode<synchronous>, transform_indices = @transform_0, window_bounds = array<i64: 2, 10, 144>}, {pipeline_mode = #tpu.pipeline_mode<synchronous>, transform_indices = @transform_1, window_bounds = array<i64: 24, 136>}, {pipeline_mode = #tpu.pipeline_mode<synchronous>, transform_indices = @transform_2, window_bounds = array<i64: 16, 9>}, {pipeline_mode = #tpu.pipeline_mode<synchronous>, transform_indices = @transform_3, window_bounds = array<i64: 40, 133>}, {pipeline_mode = #tpu.pipeline_mode<synchronous>, transform_indices = @transform_4, window_bounds = array<i64: 512, 24>}, {pipeline_mode = #tpu.pipeline_mode<synchronous>, transform_indices = @transform_5, window_bounds = array<i64: 2, 2>}]} {
    %c0 = arith.constant 0 : index
    %c0_0 = arith.constant 0 : index
    %0 = vector.load %arg4[%c0, %c0_0] : memref<40x133xf32, #tpu.memory_space<vmem>>, vector<40x128xf32>
    %c0_1 = arith.constant 0 : index
    %c128 = arith.constant 128 : index
    %1 = vector.load %arg4[%c0_1, %c128] : memref<40x133xf32, #tpu.memory_space<vmem>>, vector<40x1xf32>
    %c0_2 = arith.constant 0 : index
    %c129 = arith.constant 129 : index
    %2 = vector.load %arg4[%c0_2, %c129] : memref<40x133xf32, #tpu.memory_space<vmem>>, vector<40x1xf32>
    %c0_3 = arith.constant 0 : index
    %c130 = arith.constant 130 : index
    %3 = vector.load %arg4[%c0_3, %c130] : memref<40x133xf32, #tpu.memory_space<vmem>>, vector<32x1xf32>
    %c0_4 = arith.constant 0 : index
    %c131 = arith.constant 131 : index
    %4 = vector.load %arg4[%c0_4, %c131] : memref<40x133xf32, #tpu.memory_space<vmem>>, vector<32x2xf32>
    %c32 = arith.constant 32 : index
    %c131_5 = arith.constant 131 : index
    %5 = vector.load %arg4[%c32, %c131_5] : memref<40x133xf32, #tpu.memory_space<vmem>>, vector<1x2xf32>
    %c0_6 = arith.constant 0 : index
    %c0_7 = arith.constant 0 : index
    %c0_8 = arith.constant 0 : index
    %6 = vector.load %arg1[%c0_6, %c0_7, %c0_8] : memref<2x10x144xf32, #tpu.memory_space<vmem>>, vector<1x8x128xf32>
    %7 = vector.shape_cast %6 : vector<1x8x128xf32> to vector<8x128xf32>
    %c0_9 = arith.constant 0 : index
    %c0_10 = arith.constant 0 : index
    %c1 = arith.constant 1 : index
    %8 = vector.load %arg1[%c0_9, %c0_10, %c1] : memref<2x10x144xf32, #tpu.memory_space<vmem>>, vector<1x8x128xf32>
    %9 = vector.shape_cast %8 : vector<1x8x128xf32> to vector<8x128xf32>
    %c0_11 = arith.constant 0 : index
    %c0_12 = arith.constant 0 : index
    %c2 = arith.constant 2 : index
    %10 = vector.load %arg1[%c0_11, %c0_12, %c2] : memref<2x10x144xf32, #tpu.memory_space<vmem>>, vector<1x8x128xf32>
    %11 = vector.shape_cast %10 : vector<1x8x128xf32> to vector<8x128xf32>
    %c0_13 = arith.constant 0 : index
    %c0_14 = arith.constant 0 : index
    %c3 = arith.constant 3 : index
    %12 = vector.load %arg1[%c0_13, %c0_14, %c3] : memref<2x10x144xf32, #tpu.memory_space<vmem>>, vector<1x8x128xf32>
    %13 = vector.shape_cast %12 : vector<1x8x128xf32> to vector<8x128xf32>
    %c0_15 = arith.constant 0 : index
    %c0_16 = arith.constant 0 : index
    %c4 = arith.constant 4 : index
    %14 = vector.load %arg1[%c0_15, %c0_16, %c4] : memref<2x10x144xf32, #tpu.memory_space<vmem>>, vector<1x8x128xf32>
    %15 = vector.shape_cast %14 : vector<1x8x128xf32> to vector<8x128xf32>
    %c0_17 = arith.constant 0 : index
    %c0_18 = arith.constant 0 : index
    %c5 = arith.constant 5 : index
    %16 = vector.load %arg1[%c0_17, %c0_18, %c5] : memref<2x10x144xf32, #tpu.memory_space<vmem>>, vector<1x8x128xf32>
    %17 = vector.shape_cast %16 : vector<1x8x128xf32> to vector<8x128xf32>
    %c0_19 = arith.constant 0 : index
    %c0_20 = arith.constant 0 : index
    %c6 = arith.constant 6 : index
    %18 = vector.load %arg1[%c0_19, %c0_20, %c6] : memref<2x10x144xf32, #tpu.memory_space<vmem>>, vector<1x8x128xf32>
    %19 = vector.shape_cast %18 : vector<1x8x128xf32> to vector<8x128xf32>
    %c0_21 = arith.constant 0 : index
    %c0_22 = arith.constant 0 : index
    %c7 = arith.constant 7 : index
    %20 = vector.load %arg1[%c0_21, %c0_22, %c7] : memref<2x10x144xf32, #tpu.memory_space<vmem>>, vector<1x8x128xf32>
    %21 = vector.shape_cast %20 : vector<1x8x128xf32> to vector<8x128xf32>
    %c0_23 = arith.constant 0 : index
    %c0_24 = arith.constant 0 : index
    %c8 = arith.constant 8 : index
    %22 = vector.load %arg1[%c0_23, %c0_24, %c8] : memref<2x10x144xf32, #tpu.memory_space<vmem>>, vector<1x8x128xf32>
    %23 = vector.shape_cast %22 : vector<1x8x128xf32> to vector<8x128xf32>
    %c0_25 = arith.constant 0 : index
    %c0_26 = arith.constant 0 : index
    %c9 = arith.constant 9 : index
    %24 = vector.load %arg1[%c0_25, %c0_26, %c9] : memref<2x10x144xf32, #tpu.memory_space<vmem>>, vector<1x8x128xf32>
    %25 = vector.shape_cast %24 : vector<1x8x128xf32> to vector<8x128xf32>
    %c0_27 = arith.constant 0 : index
    %c0_28 = arith.constant 0 : index
    %c10 = arith.constant 10 : index
    %26 = vector.load %arg1[%c0_27, %c0_28, %c10] : memref<2x10x144xf32, #tpu.memory_space<vmem>>, vector<1x8x128xf32>
    %27 = vector.shape_cast %26 : vector<1x8x128xf32> to vector<8x128xf32>
    %c0_29 = arith.constant 0 : index
    %c0_30 = arith.constant 0 : index
    %c11 = arith.constant 11 : index
    %28 = vector.load %arg1[%c0_29, %c0_30, %c11] : memref<2x10x144xf32, #tpu.memory_space<vmem>>, vector<1x8x128xf32>
    %29 = vector.shape_cast %28 : vector<1x8x128xf32> to vector<8x128xf32>
    %c0_31 = arith.constant 0 : index
    %c0_32 = arith.constant 0 : index
    %c12 = arith.constant 12 : index
    %30 = vector.load %arg1[%c0_31, %c0_32, %c12] : memref<2x10x144xf32, #tpu.memory_space<vmem>>, vector<1x8x128xf32>
    %31 = vector.shape_cast %30 : vector<1x8x128xf32> to vector<8x128xf32>
    %c0_33 = arith.constant 0 : index
    %c0_34 = arith.constant 0 : index
    %c13 = arith.constant 13 : index
    %32 = vector.load %arg1[%c0_33, %c0_34, %c13] : memref<2x10x144xf32, #tpu.memory_space<vmem>>, vector<1x8x128xf32>
    %33 = vector.shape_cast %32 : vector<1x8x128xf32> to vector<8x128xf32>
    %c0_35 = arith.constant 0 : index
    %c0_36 = arith.constant 0 : index
    %c14 = arith.constant 14 : index
    %34 = vector.load %arg1[%c0_35, %c0_36, %c14] : memref<2x10x144xf32, #tpu.memory_space<vmem>>, vector<1x8x128xf32>
    %35 = vector.shape_cast %34 : vector<1x8x128xf32> to vector<8x128xf32>
    %c0_37 = arith.constant 0 : index
    %c0_38 = arith.constant 0 : index
    %c15 = arith.constant 15 : index
    %36 = vector.load %arg1[%c0_37, %c0_38, %c15] : memref<2x10x144xf32, #tpu.memory_space<vmem>>, vector<1x8x128xf32>
    %37 = vector.shape_cast %36 : vector<1x8x128xf32> to vector<8x128xf32>
    %c0_39 = arith.constant 0 : index
    %c0_40 = arith.constant 0 : index
    %c16 = arith.constant 16 : index
    %38 = vector.load %arg1[%c0_39, %c0_40, %c16] : memref<2x10x144xf32, #tpu.memory_space<vmem>>, vector<1x8x128xf32>
    %39 = vector.shape_cast %38 : vector<1x8x128xf32> to vector<8x128xf32>
    %40 = tpu.concatenate %7, %9, %11, %13, %15, %17, %19, %21, %23, %25, %27, %29, %31, %33, %35, %37 in 0 : vector<8x128xf32>, vector<8x128xf32>, vector<8x128xf32>, vector<8x128xf32>, vector<8x128xf32>, vector<8x128xf32>, vector<8x128xf32>, vector<8x128xf32>, vector<8x128xf32>, vector<8x128xf32>, vector<8x128xf32>, vector<8x128xf32>, vector<8x128xf32>, vector<8x128xf32>, vector<8x128xf32>, vector<8x128xf32> -> vector<128x128xf32>
    %41 = tpu.concatenate %40, %39 in 0 : vector<128x128xf32>, vector<8x128xf32> -> vector<136x128xf32>
    %c0_41 = arith.constant 0 : index
    %c0_42 = arith.constant 0 : index
    %42 = vector.load %arg2[%c0_41, %c0_42] : memref<24x136xf32, #tpu.memory_space<vmem>>, vector<24x136xf32>
    %cst = arith.constant dense<0.000000e+00> : vector<24x128xf32>
    %43 = tpu.matmul %42, %41, %cst {dimension_numbers = #tpu.dot_dimension_numbers<[1], [0], [0], [1], [0, 0, 1, 1], [], []>} : vector<24x136xf32>, vector<136x128xf32>, vector<24x128xf32> -> vector<24x128xf32>
    %cst_43 = arith.constant 0.000000e+00 : f32
    %44 = vector.broadcast %cst_43 : f32 to vector<8x128xf32>
    %cst_44 = arith.constant 0.000000e+00 : f32
    %45 = vector.broadcast %cst_44 : f32 to vector<8x128xf32>
    %c0_45 = arith.constant 0 : index
    %c8_46 = arith.constant 8 : index
    %c4_47 = arith.constant 4 : index
    %46 = vector.load %arg1[%c0_45, %c8_46, %c4_47] : memref<2x10x144xf32, #tpu.memory_space<vmem>>, vector<1x2x128xf32>
    %47 = vector.shape_cast %46 : vector<1x2x128xf32> to vector<2x128xf32>
    %c0_48 = arith.constant 0 : index
    %c0_49 = arith.constant 0 : index
    %48 = vector.load %arg3[%c0_48, %c0_49] : memref<16x9xf32, #tpu.memory_space<vmem>>, vector<8x1xf32>
    %49 = vector.extract_strided_slice %47 {offsets = [0, 0], sizes = [1, 128], strides = [1, 1]} : vector<2x128xf32> to vector<1x128xf32>
    %50 = vector.broadcast %48 : vector<8x1xf32> to vector<8x128xf32>
    %51 = vector.broadcast %49 : vector<1x128xf32> to vector<8x128xf32>
    %52 = arith.mulf %50, %51 : vector<8x128xf32>
    %53 = arith.addf %44, %52 : vector<8x128xf32>
    %c8_50 = arith.constant 8 : index
    %c0_51 = arith.constant 0 : index
    %54 = vector.load %arg3[%c8_50, %c0_51] : memref<16x9xf32, #tpu.memory_space<vmem>>, vector<8x1xf32>
    %55 = vector.extract_strided_slice %47 {offsets = [1, 0], sizes = [1, 128], strides = [1, 1]} : vector<2x128xf32> to vector<1x128xf32>
    %56 = vector.broadcast %54 : vector<8x1xf32> to vector<8x128xf32>
    %57 = vector.broadcast %55 : vector<1x128xf32> to vector<8x128xf32>
    %58 = arith.mulf %56, %57 : vector<8x128xf32>
    %59 = arith.addf %45, %58 : vector<8x128xf32>
    %c0_52 = arith.constant 0 : index
    %c8_53 = arith.constant 8 : index
    %c5_54 = arith.constant 5 : index
    %60 = vector.load %arg1[%c0_52, %c8_53, %c5_54] : memref<2x10x144xf32, #tpu.memory_space<vmem>>, vector<1x2x128xf32>
    %61 = vector.shape_cast %60 : vector<1x2x128xf32> to vector<2x128xf32>
    %c0_55 = arith.constant 0 : index
    %c1_56 = arith.constant 1 : index
    %62 = vector.load %arg3[%c0_55, %c1_56] : memref<16x9xf32, #tpu.memory_space<vmem>>, vector<8x1xf32>
    %63 = vector.extract_strided_slice %61 {offsets = [0, 0], sizes = [1, 128], strides = [1, 1]} : vector<2x128xf32> to vector<1x128xf32>
    %64 = vector.broadcast %62 : vector<8x1xf32> to vector<8x128xf32>
    %65 = vector.broadcast %63 : vector<1x128xf32> to vector<8x128xf32>
    %66 = arith.mulf %64, %65 : vector<8x128xf32>
    %67 = arith.addf %53, %66 : vector<8x128xf32>
    %c8_57 = arith.constant 8 : index
    %c1_58 = arith.constant 1 : index
    %68 = vector.load %arg3[%c8_57, %c1_58] : memref<16x9xf32, #tpu.memory_space<vmem>>, vector<8x1xf32>
    %69 = vector.extract_strided_slice %61 {offsets = [1, 0], sizes = [1, 128], strides = [1, 1]} : vector<2x128xf32> to vector<1x128xf32>
    %70 = vector.broadcast %68 : vector<8x1xf32> to vector<8x128xf32>
    %71 = vector.broadcast %69 : vector<1x128xf32> to vector<8x128xf32>
    %72 = arith.mulf %70, %71 : vector<8x128xf32>
    %73 = arith.addf %59, %72 : vector<8x128xf32>
    %c0_59 = arith.constant 0 : index
    %c8_60 = arith.constant 8 : index
    %c6_61 = arith.constant 6 : index
    %74 = vector.load %arg1[%c0_59, %c8_60, %c6_61] : memref<2x10x144xf32, #tpu.memory_space<vmem>>, vector<1x2x128xf32>
    %75 = vector.shape_cast %74 : vector<1x2x128xf32> to vector<2x128xf32>
    %c0_62 = arith.constant 0 : index
    %c2_63 = arith.constant 2 : index
    %76 = vector.load %arg3[%c0_62, %c2_63] : memref<16x9xf32, #tpu.memory_space<vmem>>, vector<8x1xf32>
    %77 = vector.extract_strided_slice %75 {offsets = [0, 0], sizes = [1, 128], strides = [1, 1]} : vector<2x128xf32> to vector<1x128xf32>
    %78 = vector.broadcast %76 : vector<8x1xf32> to vector<8x128xf32>
    %79 = vector.broadcast %77 : vector<1x128xf32> to vector<8x128xf32>
    %80 = arith.mulf %78, %79 : vector<8x128xf32>
    %81 = arith.addf %67, %80 : vector<8x128xf32>
    %c8_64 = arith.constant 8 : index
    %c2_65 = arith.constant 2 : index
    %82 = vector.load %arg3[%c8_64, %c2_65] : memref<16x9xf32, #tpu.memory_space<vmem>>, vector<8x1xf32>
    %83 = vector.extract_strided_slice %75 {offsets = [1, 0], sizes = [1, 128], strides = [1, 1]} : vector<2x128xf32> to vector<1x128xf32>
    %84 = vector.broadcast %82 : vector<8x1xf32> to vector<8x128xf32>
    %85 = vector.broadcast %83 : vector<1x128xf32> to vector<8x128xf32>
    %86 = arith.mulf %84, %85 : vector<8x128xf32>
    %87 = arith.addf %73, %86 : vector<8x128xf32>
    %c0_66 = arith.constant 0 : index
    %c8_67 = arith.constant 8 : index
    %c7_68 = arith.constant 7 : index
    %88 = vector.load %arg1[%c0_66, %c8_67, %c7_68] : memref<2x10x144xf32, #tpu.memory_space<vmem>>, vector<1x2x128xf32>
    %89 = vector.shape_cast %88 : vector<1x2x128xf32> to vector<2x128xf32>
    %c0_69 = arith.constant 0 : index
    %c3_70 = arith.constant 3 : index
    %90 = vector.load %arg3[%c0_69, %c3_70] : memref<16x9xf32, #tpu.memory_space<vmem>>, vector<8x1xf32>
    %91 = vector.extract_strided_slice %89 {offsets = [0, 0], sizes = [1, 128], strides = [1, 1]} : vector<2x128xf32> to vector<1x128xf32>
    %92 = vector.broadcast %90 : vector<8x1xf32> to vector<8x128xf32>
    %93 = vector.broadcast %91 : vector<1x128xf32> to vector<8x128xf32>
    %94 = arith.mulf %92, %93 : vector<8x128xf32>
    %95 = arith.addf %81, %94 : vector<8x128xf32>
    %c8_71 = arith.constant 8 : index
    %c3_72 = arith.constant 3 : index
    %96 = vector.load %arg3[%c8_71, %c3_72] : memref<16x9xf32, #tpu.memory_space<vmem>>, vector<8x1xf32>
    %97 = vector.extract_strided_slice %89 {offsets = [1, 0], sizes = [1, 128], strides = [1, 1]} : vector<2x128xf32> to vector<1x128xf32>
    %98 = vector.broadcast %96 : vector<8x1xf32> to vector<8x128xf32>
    %99 = vector.broadcast %97 : vector<1x128xf32> to vector<8x128xf32>
    %100 = arith.mulf %98, %99 : vector<8x128xf32>
    %101 = arith.addf %87, %100 : vector<8x128xf32>
    %c0_73 = arith.constant 0 : index
    %c8_74 = arith.constant 8 : index
    %c8_75 = arith.constant 8 : index
    %102 = vector.load %arg1[%c0_73, %c8_74, %c8_75] : memref<2x10x144xf32, #tpu.memory_space<vmem>>, vector<1x2x128xf32>
    %103 = vector.shape_cast %102 : vector<1x2x128xf32> to vector<2x128xf32>
    %c0_76 = arith.constant 0 : index
    %c4_77 = arith.constant 4 : index
    %104 = vector.load %arg3[%c0_76, %c4_77] : memref<16x9xf32, #tpu.memory_space<vmem>>, vector<8x1xf32>
    %105 = vector.extract_strided_slice %103 {offsets = [0, 0], sizes = [1, 128], strides = [1, 1]} : vector<2x128xf32> to vector<1x128xf32>
    %106 = vector.broadcast %104 : vector<8x1xf32> to vector<8x128xf32>
    %107 = vector.broadcast %105 : vector<1x128xf32> to vector<8x128xf32>
    %108 = arith.mulf %106, %107 : vector<8x128xf32>
    %109 = arith.addf %95, %108 : vector<8x128xf32>
    %c8_78 = arith.constant 8 : index
    %c4_79 = arith.constant 4 : index
    %110 = vector.load %arg3[%c8_78, %c4_79] : memref<16x9xf32, #tpu.memory_space<vmem>>, vector<8x1xf32>
    %111 = vector.extract_strided_slice %103 {offsets = [1, 0], sizes = [1, 128], strides = [1, 1]} : vector<2x128xf32> to vector<1x128xf32>
    %112 = vector.broadcast %110 : vector<8x1xf32> to vector<8x128xf32>
    %113 = vector.broadcast %111 : vector<1x128xf32> to vector<8x128xf32>
    %114 = arith.mulf %112, %113 : vector<8x128xf32>
    %115 = arith.addf %101, %114 : vector<8x128xf32>
    %c0_80 = arith.constant 0 : index
    %c8_81 = arith.constant 8 : index
    %c9_82 = arith.constant 9 : index
    %116 = vector.load %arg1[%c0_80, %c8_81, %c9_82] : memref<2x10x144xf32, #tpu.memory_space<vmem>>, vector<1x2x128xf32>
    %117 = vector.shape_cast %116 : vector<1x2x128xf32> to vector<2x128xf32>
    %c0_83 = arith.constant 0 : index
    %c5_84 = arith.constant 5 : index
    %118 = vector.load %arg3[%c0_83, %c5_84] : memref<16x9xf32, #tpu.memory_space<vmem>>, vector<8x1xf32>
    %119 = vector.extract_strided_slice %117 {offsets = [0, 0], sizes = [1, 128], strides = [1, 1]} : vector<2x128xf32> to vector<1x128xf32>
    %120 = vector.broadcast %118 : vector<8x1xf32> to vector<8x128xf32>
    %121 = vector.broadcast %119 : vector<1x128xf32> to vector<8x128xf32>
    %122 = arith.mulf %120, %121 : vector<8x128xf32>
    %123 = arith.addf %109, %122 : vector<8x128xf32>
    %c8_85 = arith.constant 8 : index
    %c5_86 = arith.constant 5 : index
    %124 = vector.load %arg3[%c8_85, %c5_86] : memref<16x9xf32, #tpu.memory_space<vmem>>, vector<8x1xf32>
    %125 = vector.extract_strided_slice %117 {offsets = [1, 0], sizes = [1, 128], strides = [1, 1]} : vector<2x128xf32> to vector<1x128xf32>
    %126 = vector.broadcast %124 : vector<8x1xf32> to vector<8x128xf32>
    %127 = vector.broadcast %125 : vector<1x128xf32> to vector<8x128xf32>
    %128 = arith.mulf %126, %127 : vector<8x128xf32>
    %129 = arith.addf %115, %128 : vector<8x128xf32>
    %c0_87 = arith.constant 0 : index
    %c8_88 = arith.constant 8 : index
    %c10_89 = arith.constant 10 : index
    %130 = vector.load %arg1[%c0_87, %c8_88, %c10_89] : memref<2x10x144xf32, #tpu.memory_space<vmem>>, vector<1x2x128xf32>
    %131 = vector.shape_cast %130 : vector<1x2x128xf32> to vector<2x128xf32>
    %c0_90 = arith.constant 0 : index
    %c6_91 = arith.constant 6 : index
    %132 = vector.load %arg3[%c0_90, %c6_91] : memref<16x9xf32, #tpu.memory_space<vmem>>, vector<8x1xf32>
    %133 = vector.extract_strided_slice %131 {offsets = [0, 0], sizes = [1, 128], strides = [1, 1]} : vector<2x128xf32> to vector<1x128xf32>
    %134 = vector.broadcast %132 : vector<8x1xf32> to vector<8x128xf32>
    %135 = vector.broadcast %133 : vector<1x128xf32> to vector<8x128xf32>
    %136 = arith.mulf %134, %135 : vector<8x128xf32>
    %137 = arith.addf %123, %136 : vector<8x128xf32>
    %c8_92 = arith.constant 8 : index
    %c6_93 = arith.constant 6 : index
    %138 = vector.load %arg3[%c8_92, %c6_93] : memref<16x9xf32, #tpu.memory_space<vmem>>, vector<8x1xf32>
    %139 = vector.extract_strided_slice %131 {offsets = [1, 0], sizes = [1, 128], strides = [1, 1]} : vector<2x128xf32> to vector<1x128xf32>
    %140 = vector.broadcast %138 : vector<8x1xf32> to vector<8x128xf32>
    %141 = vector.broadcast %139 : vector<1x128xf32> to vector<8x128xf32>
    %142 = arith.mulf %140, %141 : vector<8x128xf32>
    %143 = arith.addf %129, %142 : vector<8x128xf32>
    %c0_94 = arith.constant 0 : index
    %c8_95 = arith.constant 8 : index
    %c11_96 = arith.constant 11 : index
    %144 = vector.load %arg1[%c0_94, %c8_95, %c11_96] : memref<2x10x144xf32, #tpu.memory_space<vmem>>, vector<1x2x128xf32>
    %145 = vector.shape_cast %144 : vector<1x2x128xf32> to vector<2x128xf32>
    %c0_97 = arith.constant 0 : index
    %c7_98 = arith.constant 7 : index
    %146 = vector.load %arg3[%c0_97, %c7_98] : memref<16x9xf32, #tpu.memory_space<vmem>>, vector<8x1xf32>
    %147 = vector.extract_strided_slice %145 {offsets = [0, 0], sizes = [1, 128], strides = [1, 1]} : vector<2x128xf32> to vector<1x128xf32>
    %148 = vector.broadcast %146 : vector<8x1xf32> to vector<8x128xf32>
    %149 = vector.broadcast %147 : vector<1x128xf32> to vector<8x128xf32>
    %150 = arith.mulf %148, %149 : vector<8x128xf32>
    %151 = arith.addf %137, %150 : vector<8x128xf32>
    %c8_99 = arith.constant 8 : index
    %c7_100 = arith.constant 7 : index
    %152 = vector.load %arg3[%c8_99, %c7_100] : memref<16x9xf32, #tpu.memory_space<vmem>>, vector<8x1xf32>
    %153 = vector.extract_strided_slice %145 {offsets = [1, 0], sizes = [1, 128], strides = [1, 1]} : vector<2x128xf32> to vector<1x128xf32>
    %154 = vector.broadcast %152 : vector<8x1xf32> to vector<8x128xf32>
    %155 = vector.broadcast %153 : vector<1x128xf32> to vector<8x128xf32>
    %156 = arith.mulf %154, %155 : vector<8x128xf32>
    %157 = arith.addf %143, %156 : vector<8x128xf32>
    %c0_101 = arith.constant 0 : index
    %c8_102 = arith.constant 8 : index
    %c12_103 = arith.constant 12 : index
    %158 = vector.load %arg1[%c0_101, %c8_102, %c12_103] : memref<2x10x144xf32, #tpu.memory_space<vmem>>, vector<1x2x128xf32>
    %159 = vector.shape_cast %158 : vector<1x2x128xf32> to vector<2x128xf32>
    %c0_104 = arith.constant 0 : index
    %c8_105 = arith.constant 8 : index
    %160 = vector.load %arg3[%c0_104, %c8_105] : memref<16x9xf32, #tpu.memory_space<vmem>>, vector<8x1xf32>
    %161 = vector.extract_strided_slice %159 {offsets = [0, 0], sizes = [1, 128], strides = [1, 1]} : vector<2x128xf32> to vector<1x128xf32>
    %162 = vector.broadcast %160 : vector<8x1xf32> to vector<8x128xf32>
    %163 = vector.broadcast %161 : vector<1x128xf32> to vector<8x128xf32>
    %164 = arith.mulf %162, %163 : vector<8x128xf32>
    %165 = arith.addf %151, %164 : vector<8x128xf32>
    %c8_106 = arith.constant 8 : index
    %c8_107 = arith.constant 8 : index
    %166 = vector.load %arg3[%c8_106, %c8_107] : memref<16x9xf32, #tpu.memory_space<vmem>>, vector<8x1xf32>
    %167 = vector.extract_strided_slice %159 {offsets = [1, 0], sizes = [1, 128], strides = [1, 1]} : vector<2x128xf32> to vector<1x128xf32>
    %168 = vector.broadcast %166 : vector<8x1xf32> to vector<8x128xf32>
    %169 = vector.broadcast %167 : vector<1x128xf32> to vector<8x128xf32>
    %170 = arith.mulf %168, %169 : vector<8x128xf32>
    %171 = arith.addf %157, %170 : vector<8x128xf32>
    %172 = tpu.concatenate %43, %165, %171 in 0 : vector<24x128xf32>, vector<8x128xf32>, vector<8x128xf32> -> vector<40x128xf32>
    %173 = arith.addf %172, %0 : vector<40x128xf32>
    %cst_108 = arith.constant 0.000000e+00 : f32
    %174 = vector.broadcast %cst_108 : f32 to vector<40x128xf32>
    %175 = arith.cmpf ogt, %173, %174 : vector<40x128xf32>
    %cst_109 = arith.constant 0.000000e+00 : f32
    %176 = vector.broadcast %cst_109 : f32 to vector<40x128xf32>
    %177 = arith.minimumf %173, %176 : vector<40x128xf32>
    %178 = math.exp %177 : vector<40x128xf32>
    %cst_110 = arith.constant 1.000000e+00 : f32
    %179 = vector.broadcast %cst_110 : f32 to vector<40x128xf32>
    %180 = arith.subf %178, %179 : vector<40x128xf32>
    %181 = arith.select %175, %173, %180 : vector<40x128xi1>, vector<40x128xf32>
    %182 = vector.broadcast %1 : vector<40x1xf32> to vector<40x128xf32>
    %183 = arith.mulf %182, %181 : vector<40x128xf32>
    %184 = vector.broadcast %2 : vector<40x1xf32> to vector<40x128xf32>
    %185 = arith.addf %183, %184 : vector<40x128xf32>
    %186 = vector.extract_strided_slice %185 {offsets = [0, 0], sizes = [24, 128], strides = [1, 1]} : vector<40x128xf32> to vector<24x128xf32>
    %cst_111 = arith.constant dense<0.000000e+00> : vector<24xf32>
    %187 = vector.multi_reduction <add>, %186, %cst_111 [1] : vector<24x128xf32> to vector<24xf32>
    %188 = vector.shape_cast %187 : vector<24xf32> to vector<24x1xf32>
    %cst_112 = arith.constant 1.280000e+02 : f32
    %189 = vector.broadcast %cst_112 : f32 to vector<24x1xf32>
    %190 = arith.divf %188, %189 : vector<24x1xf32>
    %191 = vector.broadcast %190 : vector<24x1xf32> to vector<24x128xf32>
    %192 = arith.subf %186, %191 : vector<24x128xf32>
    %193 = arith.mulf %192, %192 : vector<24x128xf32>
    %cst_113 = arith.constant dense<0.000000e+00> : vector<24xf32>
    %194 = vector.multi_reduction <add>, %193, %cst_113 [1] : vector<24x128xf32> to vector<24xf32>
    %195 = vector.shape_cast %194 : vector<24xf32> to vector<24x1xf32>
    %cst_114 = arith.constant 9.99999993E-9 : f32
    %196 = vector.broadcast %cst_114 : f32 to vector<24x1xf32>
    %197 = arith.addf %195, %196 : vector<24x1xf32>
    %198 = math.rsqrt %197 : vector<24x1xf32>
    %199 = vector.broadcast %198 : vector<24x1xf32> to vector<24x128xf32>
    %200 = arith.mulf %192, %199 : vector<24x128xf32>
    %201 = vector.extract_strided_slice %185 {offsets = [24, 0], sizes = [16, 128], strides = [1, 1]} : vector<40x128xf32> to vector<16x128xf32>
    %cst_115 = arith.constant dense<0.000000e+00> : vector<16xf32>
    %202 = vector.multi_reduction <add>, %201, %cst_115 [1] : vector<16x128xf32> to vector<16xf32>
    %203 = vector.shape_cast %202 : vector<16xf32> to vector<16x1xf32>
    %cst_116 = arith.constant 1.280000e+02 : f32
    %204 = vector.broadcast %cst_116 : f32 to vector<16x1xf32>
    %205 = arith.divf %203, %204 : vector<16x1xf32>
    %206 = vector.broadcast %205 : vector<16x1xf32> to vector<16x128xf32>
    %207 = arith.subf %201, %206 : vector<16x128xf32>
    %208 = arith.mulf %207, %207 : vector<16x128xf32>
    %cst_117 = arith.constant dense<0.000000e+00> : vector<16xf32>
    %209 = vector.multi_reduction <add>, %208, %cst_117 [1] : vector<16x128xf32> to vector<16xf32>
    %210 = vector.shape_cast %209 : vector<16xf32> to vector<16x1xf32>
    %cst_118 = arith.constant 9.99999993E-9 : f32
    %211 = vector.broadcast %cst_118 : f32 to vector<16x1xf32>
    %212 = arith.addf %210, %211 : vector<16x1xf32>
    %213 = math.rsqrt %212 : vector<16x1xf32>
    %214 = vector.broadcast %213 : vector<16x1xf32> to vector<16x128xf32>
    %215 = arith.mulf %207, %214 : vector<16x128xf32>
    %c0_119 = arith.constant 0 : index
    %c0_120 = arith.constant 0 : index
    %216 = vector.load %arg5[%c0_119, %c0_120] : memref<512x24xf32, #tpu.memory_space<vmem>>, vector<512x24xf32>
    %cst_121 = arith.constant dense<0.000000e+00> : vector<512x128xf32>
    %217 = tpu.matmul %216, %200, %cst_121 {dimension_numbers = #tpu.dot_dimension_numbers<[1], [0], [0], [1], [0, 0, 1, 1], [], []>} : vector<512x24xf32>, vector<24x128xf32>, vector<512x128xf32> -> vector<512x128xf32>
    %218 = vector.shape_cast %217 : vector<512x128xf32> to vector<32x16x128xf32>
    %219 = vector.shape_cast %215 : vector<16x128xf32> to vector<1x16x128xf32>
    %220 = vector.broadcast %219 : vector<1x16x128xf32> to vector<32x16x128xf32>
    %221 = arith.mulf %218, %220 : vector<32x16x128xf32>
    %cst_122 = arith.constant dense<0.000000e+00> : vector<32x16xf32>
    %222 = vector.multi_reduction <add>, %221, %cst_122 [2] : vector<32x16x128xf32> to vector<32x16xf32>
    %cst_123 = arith.constant dense<0.000000e+00> : vector<32xf32>
    %223 = vector.multi_reduction <add>, %222, %cst_123 [1] : vector<32x16xf32> to vector<32xf32>
    %224 = vector.shape_cast %223 : vector<32xf32> to vector<32x1xf32>
    %225 = arith.addf %224, %3 : vector<32x1xf32>
    %cst_124 = arith.constant 0.000000e+00 : f32
    %226 = vector.broadcast %cst_124 : f32 to vector<32x1xf32>
    %227 = arith.cmpf ogt, %225, %226 : vector<32x1xf32>
    %cst_125 = arith.constant 0.000000e+00 : f32
    %228 = vector.broadcast %cst_125 : f32 to vector<32x1xf32>
    %229 = arith.minimumf %225, %228 : vector<32x1xf32>
    %230 = math.exp %229 : vector<32x1xf32>
    %cst_126 = arith.constant 1.000000e+00 : f32
    %231 = vector.broadcast %cst_126 : f32 to vector<32x1xf32>
    %232 = arith.subf %230, %231 : vector<32x1xf32>
    %233 = arith.select %227, %225, %232 : vector<32x1xi1>, vector<32x1xf32>
    %234 = vector.broadcast %233 : vector<32x1xf32> to vector<32x2xf32>
    %235 = arith.mulf %4, %234 : vector<32x2xf32>
    %cst_127 = arith.constant dense<0.000000e+00> : vector<2xf32>
    %236 = vector.multi_reduction <add>, %235, %cst_127 [0] : vector<32x2xf32> to vector<2xf32>
    %237 = vector.shape_cast %236 : vector<2xf32> to vector<1x2xf32>
    %238 = arith.addf %237, %5 : vector<1x2xf32>
    %c1_128 = arith.constant 1 : index
    %c0_129 = arith.constant 0 : index
    %c0_130 = arith.constant 0 : index
    %239 = vector.load %arg1[%c1_128, %c0_129, %c0_130] : memref<2x10x144xf32, #tpu.memory_space<vmem>>, vector<1x8x128xf32>
    %240 = vector.shape_cast %239 : vector<1x8x128xf32> to vector<8x128xf32>
    %c1_131 = arith.constant 1 : index
    %c0_132 = arith.constant 0 : index
    %c1_133 = arith.constant 1 : index
    %241 = vector.load %arg1[%c1_131, %c0_132, %c1_133] : memref<2x10x144xf32, #tpu.memory_space<vmem>>, vector<1x8x128xf32>
    %242 = vector.shape_cast %241 : vector<1x8x128xf32> to vector<8x128xf32>
    %c1_134 = arith.constant 1 : index
    %c0_135 = arith.constant 0 : index
    %c2_136 = arith.constant 2 : index
    %243 = vector.load %arg1[%c1_134, %c0_135, %c2_136] : memref<2x10x144xf32, #tpu.memory_space<vmem>>, vector<1x8x128xf32>
    %244 = vector.shape_cast %243 : vector<1x8x128xf32> to vector<8x128xf32>
    %c1_137 = arith.constant 1 : index
    %c0_138 = arith.constant 0 : index
    %c3_139 = arith.constant 3 : index
    %245 = vector.load %arg1[%c1_137, %c0_138, %c3_139] : memref<2x10x144xf32, #tpu.memory_space<vmem>>, vector<1x8x128xf32>
    %246 = vector.shape_cast %245 : vector<1x8x128xf32> to vector<8x128xf32>
    %c1_140 = arith.constant 1 : index
    %c0_141 = arith.constant 0 : index
    %c4_142 = arith.constant 4 : index
    %247 = vector.load %arg1[%c1_140, %c0_141, %c4_142] : memref<2x10x144xf32, #tpu.memory_space<vmem>>, vector<1x8x128xf32>
    %248 = vector.shape_cast %247 : vector<1x8x128xf32> to vector<8x128xf32>
    %c1_143 = arith.constant 1 : index
    %c0_144 = arith.constant 0 : index
    %c5_145 = arith.constant 5 : index
    %249 = vector.load %arg1[%c1_143, %c0_144, %c5_145] : memref<2x10x144xf32, #tpu.memory_space<vmem>>, vector<1x8x128xf32>
    %250 = vector.shape_cast %249 : vector<1x8x128xf32> to vector<8x128xf32>
    %c1_146 = arith.constant 1 : index
    %c0_147 = arith.constant 0 : index
    %c6_148 = arith.constant 6 : index
    %251 = vector.load %arg1[%c1_146, %c0_147, %c6_148] : memref<2x10x144xf32, #tpu.memory_space<vmem>>, vector<1x8x128xf32>
    %252 = vector.shape_cast %251 : vector<1x8x128xf32> to vector<8x128xf32>
    %c1_149 = arith.constant 1 : index
    %c0_150 = arith.constant 0 : index
    %c7_151 = arith.constant 7 : index
    %253 = vector.load %arg1[%c1_149, %c0_150, %c7_151] : memref<2x10x144xf32, #tpu.memory_space<vmem>>, vector<1x8x128xf32>
    %254 = vector.shape_cast %253 : vector<1x8x128xf32> to vector<8x128xf32>
    %c1_152 = arith.constant 1 : index
    %c0_153 = arith.constant 0 : index
    %c8_154 = arith.constant 8 : index
    %255 = vector.load %arg1[%c1_152, %c0_153, %c8_154] : memref<2x10x144xf32, #tpu.memory_space<vmem>>, vector<1x8x128xf32>
    %256 = vector.shape_cast %255 : vector<1x8x128xf32> to vector<8x128xf32>
    %c1_155 = arith.constant 1 : index
    %c0_156 = arith.constant 0 : index
    %c9_157 = arith.constant 9 : index
    %257 = vector.load %arg1[%c1_155, %c0_156, %c9_157] : memref<2x10x144xf32, #tpu.memory_space<vmem>>, vector<1x8x128xf32>
    %258 = vector.shape_cast %257 : vector<1x8x128xf32> to vector<8x128xf32>
    %c1_158 = arith.constant 1 : index
    %c0_159 = arith.constant 0 : index
    %c10_160 = arith.constant 10 : index
    %259 = vector.load %arg1[%c1_158, %c0_159, %c10_160] : memref<2x10x144xf32, #tpu.memory_space<vmem>>, vector<1x8x128xf32>
    %260 = vector.shape_cast %259 : vector<1x8x128xf32> to vector<8x128xf32>
    %c1_161 = arith.constant 1 : index
    %c0_162 = arith.constant 0 : index
    %c11_163 = arith.constant 11 : index
    %261 = vector.load %arg1[%c1_161, %c0_162, %c11_163] : memref<2x10x144xf32, #tpu.memory_space<vmem>>, vector<1x8x128xf32>
    %262 = vector.shape_cast %261 : vector<1x8x128xf32> to vector<8x128xf32>
    %c1_164 = arith.constant 1 : index
    %c0_165 = arith.constant 0 : index
    %c12_166 = arith.constant 12 : index
    %263 = vector.load %arg1[%c1_164, %c0_165, %c12_166] : memref<2x10x144xf32, #tpu.memory_space<vmem>>, vector<1x8x128xf32>
    %264 = vector.shape_cast %263 : vector<1x8x128xf32> to vector<8x128xf32>
    %c1_167 = arith.constant 1 : index
    %c0_168 = arith.constant 0 : index
    %c13_169 = arith.constant 13 : index
    %265 = vector.load %arg1[%c1_167, %c0_168, %c13_169] : memref<2x10x144xf32, #tpu.memory_space<vmem>>, vector<1x8x128xf32>
    %266 = vector.shape_cast %265 : vector<1x8x128xf32> to vector<8x128xf32>
    %c1_170 = arith.constant 1 : index
    %c0_171 = arith.constant 0 : index
    %c14_172 = arith.constant 14 : index
    %267 = vector.load %arg1[%c1_170, %c0_171, %c14_172] : memref<2x10x144xf32, #tpu.memory_space<vmem>>, vector<1x8x128xf32>
    %268 = vector.shape_cast %267 : vector<1x8x128xf32> to vector<8x128xf32>
    %c1_173 = arith.constant 1 : index
    %c0_174 = arith.constant 0 : index
    %c15_175 = arith.constant 15 : index
    %269 = vector.load %arg1[%c1_173, %c0_174, %c15_175] : memref<2x10x144xf32, #tpu.memory_space<vmem>>, vector<1x8x128xf32>
    %270 = vector.shape_cast %269 : vector<1x8x128xf32> to vector<8x128xf32>
    %c1_176 = arith.constant 1 : index
    %c0_177 = arith.constant 0 : index
    %c16_178 = arith.constant 16 : index
    %271 = vector.load %arg1[%c1_176, %c0_177, %c16_178] : memref<2x10x144xf32, #tpu.memory_space<vmem>>, vector<1x8x128xf32>
    %272 = vector.shape_cast %271 : vector<1x8x128xf32> to vector<8x128xf32>
    %273 = tpu.concatenate %240, %242, %244, %246, %248, %250, %252, %254, %256, %258, %260, %262, %264, %266, %268, %270 in 0 : vector<8x128xf32>, vector<8x128xf32>, vector<8x128xf32>, vector<8x128xf32>, vector<8x128xf32>, vector<8x128xf32>, vector<8x128xf32>, vector<8x128xf32>, vector<8x128xf32>, vector<8x128xf32>, vector<8x128xf32>, vector<8x128xf32>, vector<8x128xf32>, vector<8x128xf32>, vector<8x128xf32>, vector<8x128xf32> -> vector<128x128xf32>
    %274 = tpu.concatenate %273, %272 in 0 : vector<128x128xf32>, vector<8x128xf32> -> vector<136x128xf32>
    %c0_179 = arith.constant 0 : index
    %c0_180 = arith.constant 0 : index
    %275 = vector.load %arg2[%c0_179, %c0_180] : memref<24x136xf32, #tpu.memory_space<vmem>>, vector<24x136xf32>
    %cst_181 = arith.constant dense<0.000000e+00> : vector<24x128xf32>
    %276 = tpu.matmul %275, %274, %cst_181 {dimension_numbers = #tpu.dot_dimension_numbers<[1], [0], [0], [1], [0, 0, 1, 1], [], []>} : vector<24x136xf32>, vector<136x128xf32>, vector<24x128xf32> -> vector<24x128xf32>
    %cst_182 = arith.constant 0.000000e+00 : f32
    %277 = vector.broadcast %cst_182 : f32 to vector<8x128xf32>
    %cst_183 = arith.constant 0.000000e+00 : f32
    %278 = vector.broadcast %cst_183 : f32 to vector<8x128xf32>
    %c1_184 = arith.constant 1 : index
    %c8_185 = arith.constant 8 : index
    %c4_186 = arith.constant 4 : index
    %279 = vector.load %arg1[%c1_184, %c8_185, %c4_186] : memref<2x10x144xf32, #tpu.memory_space<vmem>>, vector<1x2x128xf32>
    %280 = vector.shape_cast %279 : vector<1x2x128xf32> to vector<2x128xf32>
    %c0_187 = arith.constant 0 : index
    %c0_188 = arith.constant 0 : index
    %281 = vector.load %arg3[%c0_187, %c0_188] : memref<16x9xf32, #tpu.memory_space<vmem>>, vector<8x1xf32>
    %282 = vector.extract_strided_slice %280 {offsets = [0, 0], sizes = [1, 128], strides = [1, 1]} : vector<2x128xf32> to vector<1x128xf32>
    %283 = vector.broadcast %281 : vector<8x1xf32> to vector<8x128xf32>
    %284 = vector.broadcast %282 : vector<1x128xf32> to vector<8x128xf32>
    %285 = arith.mulf %283, %284 : vector<8x128xf32>
    %286 = arith.addf %277, %285 : vector<8x128xf32>
    %c8_189 = arith.constant 8 : index
    %c0_190 = arith.constant 0 : index
    %287 = vector.load %arg3[%c8_189, %c0_190] : memref<16x9xf32, #tpu.memory_space<vmem>>, vector<8x1xf32>
    %288 = vector.extract_strided_slice %280 {offsets = [1, 0], sizes = [1, 128], strides = [1, 1]} : vector<2x128xf32> to vector<1x128xf32>
    %289 = vector.broadcast %287 : vector<8x1xf32> to vector<8x128xf32>
    %290 = vector.broadcast %288 : vector<1x128xf32> to vector<8x128xf32>
    %291 = arith.mulf %289, %290 : vector<8x128xf32>
    %292 = arith.addf %278, %291 : vector<8x128xf32>
    %c1_191 = arith.constant 1 : index
    %c8_192 = arith.constant 8 : index
    %c5_193 = arith.constant 5 : index
    %293 = vector.load %arg1[%c1_191, %c8_192, %c5_193] : memref<2x10x144xf32, #tpu.memory_space<vmem>>, vector<1x2x128xf32>
    %294 = vector.shape_cast %293 : vector<1x2x128xf32> to vector<2x128xf32>
    %c0_194 = arith.constant 0 : index
    %c1_195 = arith.constant 1 : index
    %295 = vector.load %arg3[%c0_194, %c1_195] : memref<16x9xf32, #tpu.memory_space<vmem>>, vector<8x1xf32>
    %296 = vector.extract_strided_slice %294 {offsets = [0, 0], sizes = [1, 128], strides = [1, 1]} : vector<2x128xf32> to vector<1x128xf32>
    %297 = vector.broadcast %295 : vector<8x1xf32> to vector<8x128xf32>
    %298 = vector.broadcast %296 : vector<1x128xf32> to vector<8x128xf32>
    %299 = arith.mulf %297, %298 : vector<8x128xf32>
    %300 = arith.addf %286, %299 : vector<8x128xf32>
    %c8_196 = arith.constant 8 : index
    %c1_197 = arith.constant 1 : index
    %301 = vector.load %arg3[%c8_196, %c1_197] : memref<16x9xf32, #tpu.memory_space<vmem>>, vector<8x1xf32>
    %302 = vector.extract_strided_slice %294 {offsets = [1, 0], sizes = [1, 128], strides = [1, 1]} : vector<2x128xf32> to vector<1x128xf32>
    %303 = vector.broadcast %301 : vector<8x1xf32> to vector<8x128xf32>
    %304 = vector.broadcast %302 : vector<1x128xf32> to vector<8x128xf32>
    %305 = arith.mulf %303, %304 : vector<8x128xf32>
    %306 = arith.addf %292, %305 : vector<8x128xf32>
    %c1_198 = arith.constant 1 : index
    %c8_199 = arith.constant 8 : index
    %c6_200 = arith.constant 6 : index
    %307 = vector.load %arg1[%c1_198, %c8_199, %c6_200] : memref<2x10x144xf32, #tpu.memory_space<vmem>>, vector<1x2x128xf32>
    %308 = vector.shape_cast %307 : vector<1x2x128xf32> to vector<2x128xf32>
    %c0_201 = arith.constant 0 : index
    %c2_202 = arith.constant 2 : index
    %309 = vector.load %arg3[%c0_201, %c2_202] : memref<16x9xf32, #tpu.memory_space<vmem>>, vector<8x1xf32>
    %310 = vector.extract_strided_slice %308 {offsets = [0, 0], sizes = [1, 128], strides = [1, 1]} : vector<2x128xf32> to vector<1x128xf32>
    %311 = vector.broadcast %309 : vector<8x1xf32> to vector<8x128xf32>
    %312 = vector.broadcast %310 : vector<1x128xf32> to vector<8x128xf32>
    %313 = arith.mulf %311, %312 : vector<8x128xf32>
    %314 = arith.addf %300, %313 : vector<8x128xf32>
    %c8_203 = arith.constant 8 : index
    %c2_204 = arith.constant 2 : index
    %315 = vector.load %arg3[%c8_203, %c2_204] : memref<16x9xf32, #tpu.memory_space<vmem>>, vector<8x1xf32>
    %316 = vector.extract_strided_slice %308 {offsets = [1, 0], sizes = [1, 128], strides = [1, 1]} : vector<2x128xf32> to vector<1x128xf32>
    %317 = vector.broadcast %315 : vector<8x1xf32> to vector<8x128xf32>
    %318 = vector.broadcast %316 : vector<1x128xf32> to vector<8x128xf32>
    %319 = arith.mulf %317, %318 : vector<8x128xf32>
    %320 = arith.addf %306, %319 : vector<8x128xf32>
    %c1_205 = arith.constant 1 : index
    %c8_206 = arith.constant 8 : index
    %c7_207 = arith.constant 7 : index
    %321 = vector.load %arg1[%c1_205, %c8_206, %c7_207] : memref<2x10x144xf32, #tpu.memory_space<vmem>>, vector<1x2x128xf32>
    %322 = vector.shape_cast %321 : vector<1x2x128xf32> to vector<2x128xf32>
    %c0_208 = arith.constant 0 : index
    %c3_209 = arith.constant 3 : index
    %323 = vector.load %arg3[%c0_208, %c3_209] : memref<16x9xf32, #tpu.memory_space<vmem>>, vector<8x1xf32>
    %324 = vector.extract_strided_slice %322 {offsets = [0, 0], sizes = [1, 128], strides = [1, 1]} : vector<2x128xf32> to vector<1x128xf32>
    %325 = vector.broadcast %323 : vector<8x1xf32> to vector<8x128xf32>
    %326 = vector.broadcast %324 : vector<1x128xf32> to vector<8x128xf32>
    %327 = arith.mulf %325, %326 : vector<8x128xf32>
    %328 = arith.addf %314, %327 : vector<8x128xf32>
    %c8_210 = arith.constant 8 : index
    %c3_211 = arith.constant 3 : index
    %329 = vector.load %arg3[%c8_210, %c3_211] : memref<16x9xf32, #tpu.memory_space<vmem>>, vector<8x1xf32>
    %330 = vector.extract_strided_slice %322 {offsets = [1, 0], sizes = [1, 128], strides = [1, 1]} : vector<2x128xf32> to vector<1x128xf32>
    %331 = vector.broadcast %329 : vector<8x1xf32> to vector<8x128xf32>
    %332 = vector.broadcast %330 : vector<1x128xf32> to vector<8x128xf32>
    %333 = arith.mulf %331, %332 : vector<8x128xf32>
    %334 = arith.addf %320, %333 : vector<8x128xf32>
    %c1_212 = arith.constant 1 : index
    %c8_213 = arith.constant 8 : index
    %c8_214 = arith.constant 8 : index
    %335 = vector.load %arg1[%c1_212, %c8_213, %c8_214] : memref<2x10x144xf32, #tpu.memory_space<vmem>>, vector<1x2x128xf32>
    %336 = vector.shape_cast %335 : vector<1x2x128xf32> to vector<2x128xf32>
    %c0_215 = arith.constant 0 : index
    %c4_216 = arith.constant 4 : index
    %337 = vector.load %arg3[%c0_215, %c4_216] : memref<16x9xf32, #tpu.memory_space<vmem>>, vector<8x1xf32>
    %338 = vector.extract_strided_slice %336 {offsets = [0, 0], sizes = [1, 128], strides = [1, 1]} : vector<2x128xf32> to vector<1x128xf32>
    %339 = vector.broadcast %337 : vector<8x1xf32> to vector<8x128xf32>
    %340 = vector.broadcast %338 : vector<1x128xf32> to vector<8x128xf32>
    %341 = arith.mulf %339, %340 : vector<8x128xf32>
    %342 = arith.addf %328, %341 : vector<8x128xf32>
    %c8_217 = arith.constant 8 : index
    %c4_218 = arith.constant 4 : index
    %343 = vector.load %arg3[%c8_217, %c4_218] : memref<16x9xf32, #tpu.memory_space<vmem>>, vector<8x1xf32>
    %344 = vector.extract_strided_slice %336 {offsets = [1, 0], sizes = [1, 128], strides = [1, 1]} : vector<2x128xf32> to vector<1x128xf32>
    %345 = vector.broadcast %343 : vector<8x1xf32> to vector<8x128xf32>
    %346 = vector.broadcast %344 : vector<1x128xf32> to vector<8x128xf32>
    %347 = arith.mulf %345, %346 : vector<8x128xf32>
    %348 = arith.addf %334, %347 : vector<8x128xf32>
    %c1_219 = arith.constant 1 : index
    %c8_220 = arith.constant 8 : index
    %c9_221 = arith.constant 9 : index
    %349 = vector.load %arg1[%c1_219, %c8_220, %c9_221] : memref<2x10x144xf32, #tpu.memory_space<vmem>>, vector<1x2x128xf32>
    %350 = vector.shape_cast %349 : vector<1x2x128xf32> to vector<2x128xf32>
    %c0_222 = arith.constant 0 : index
    %c5_223 = arith.constant 5 : index
    %351 = vector.load %arg3[%c0_222, %c5_223] : memref<16x9xf32, #tpu.memory_space<vmem>>, vector<8x1xf32>
    %352 = vector.extract_strided_slice %350 {offsets = [0, 0], sizes = [1, 128], strides = [1, 1]} : vector<2x128xf32> to vector<1x128xf32>
    %353 = vector.broadcast %351 : vector<8x1xf32> to vector<8x128xf32>
    %354 = vector.broadcast %352 : vector<1x128xf32> to vector<8x128xf32>
    %355 = arith.mulf %353, %354 : vector<8x128xf32>
    %356 = arith.addf %342, %355 : vector<8x128xf32>
    %c8_224 = arith.constant 8 : index
    %c5_225 = arith.constant 5 : index
    %357 = vector.load %arg3[%c8_224, %c5_225] : memref<16x9xf32, #tpu.memory_space<vmem>>, vector<8x1xf32>
    %358 = vector.extract_strided_slice %350 {offsets = [1, 0], sizes = [1, 128], strides = [1, 1]} : vector<2x128xf32> to vector<1x128xf32>
    %359 = vector.broadcast %357 : vector<8x1xf32> to vector<8x128xf32>
    %360 = vector.broadcast %358 : vector<1x128xf32> to vector<8x128xf32>
    %361 = arith.mulf %359, %360 : vector<8x128xf32>
    %362 = arith.addf %348, %361 : vector<8x128xf32>
    %c1_226 = arith.constant 1 : index
    %c8_227 = arith.constant 8 : index
    %c10_228 = arith.constant 10 : index
    %363 = vector.load %arg1[%c1_226, %c8_227, %c10_228] : memref<2x10x144xf32, #tpu.memory_space<vmem>>, vector<1x2x128xf32>
    %364 = vector.shape_cast %363 : vector<1x2x128xf32> to vector<2x128xf32>
    %c0_229 = arith.constant 0 : index
    %c6_230 = arith.constant 6 : index
    %365 = vector.load %arg3[%c0_229, %c6_230] : memref<16x9xf32, #tpu.memory_space<vmem>>, vector<8x1xf32>
    %366 = vector.extract_strided_slice %364 {offsets = [0, 0], sizes = [1, 128], strides = [1, 1]} : vector<2x128xf32> to vector<1x128xf32>
    %367 = vector.broadcast %365 : vector<8x1xf32> to vector<8x128xf32>
    %368 = vector.broadcast %366 : vector<1x128xf32> to vector<8x128xf32>
    %369 = arith.mulf %367, %368 : vector<8x128xf32>
    %370 = arith.addf %356, %369 : vector<8x128xf32>
    %c8_231 = arith.constant 8 : index
    %c6_232 = arith.constant 6 : index
    %371 = vector.load %arg3[%c8_231, %c6_232] : memref<16x9xf32, #tpu.memory_space<vmem>>, vector<8x1xf32>
    %372 = vector.extract_strided_slice %364 {offsets = [1, 0], sizes = [1, 128], strides = [1, 1]} : vector<2x128xf32> to vector<1x128xf32>
    %373 = vector.broadcast %371 : vector<8x1xf32> to vector<8x128xf32>
    %374 = vector.broadcast %372 : vector<1x128xf32> to vector<8x128xf32>
    %375 = arith.mulf %373, %374 : vector<8x128xf32>
    %376 = arith.addf %362, %375 : vector<8x128xf32>
    %c1_233 = arith.constant 1 : index
    %c8_234 = arith.constant 8 : index
    %c11_235 = arith.constant 11 : index
    %377 = vector.load %arg1[%c1_233, %c8_234, %c11_235] : memref<2x10x144xf32, #tpu.memory_space<vmem>>, vector<1x2x128xf32>
    %378 = vector.shape_cast %377 : vector<1x2x128xf32> to vector<2x128xf32>
    %c0_236 = arith.constant 0 : index
    %c7_237 = arith.constant 7 : index
    %379 = vector.load %arg3[%c0_236, %c7_237] : memref<16x9xf32, #tpu.memory_space<vmem>>, vector<8x1xf32>
    %380 = vector.extract_strided_slice %378 {offsets = [0, 0], sizes = [1, 128], strides = [1, 1]} : vector<2x128xf32> to vector<1x128xf32>
    %381 = vector.broadcast %379 : vector<8x1xf32> to vector<8x128xf32>
    %382 = vector.broadcast %380 : vector<1x128xf32> to vector<8x128xf32>
    %383 = arith.mulf %381, %382 : vector<8x128xf32>
    %384 = arith.addf %370, %383 : vector<8x128xf32>
    %c8_238 = arith.constant 8 : index
    %c7_239 = arith.constant 7 : index
    %385 = vector.load %arg3[%c8_238, %c7_239] : memref<16x9xf32, #tpu.memory_space<vmem>>, vector<8x1xf32>
    %386 = vector.extract_strided_slice %378 {offsets = [1, 0], sizes = [1, 128], strides = [1, 1]} : vector<2x128xf32> to vector<1x128xf32>
    %387 = vector.broadcast %385 : vector<8x1xf32> to vector<8x128xf32>
    %388 = vector.broadcast %386 : vector<1x128xf32> to vector<8x128xf32>
    %389 = arith.mulf %387, %388 : vector<8x128xf32>
    %390 = arith.addf %376, %389 : vector<8x128xf32>
    %c1_240 = arith.constant 1 : index
    %c8_241 = arith.constant 8 : index
    %c12_242 = arith.constant 12 : index
    %391 = vector.load %arg1[%c1_240, %c8_241, %c12_242] : memref<2x10x144xf32, #tpu.memory_space<vmem>>, vector<1x2x128xf32>
    %392 = vector.shape_cast %391 : vector<1x2x128xf32> to vector<2x128xf32>
    %c0_243 = arith.constant 0 : index
    %c8_244 = arith.constant 8 : index
    %393 = vector.load %arg3[%c0_243, %c8_244] : memref<16x9xf32, #tpu.memory_space<vmem>>, vector<8x1xf32>
    %394 = vector.extract_strided_slice %392 {offsets = [0, 0], sizes = [1, 128], strides = [1, 1]} : vector<2x128xf32> to vector<1x128xf32>
    %395 = vector.broadcast %393 : vector<8x1xf32> to vector<8x128xf32>
    %396 = vector.broadcast %394 : vector<1x128xf32> to vector<8x128xf32>
    %397 = arith.mulf %395, %396 : vector<8x128xf32>
    %398 = arith.addf %384, %397 : vector<8x128xf32>
    %c8_245 = arith.constant 8 : index
    %c8_246 = arith.constant 8 : index
    %399 = vector.load %arg3[%c8_245, %c8_246] : memref<16x9xf32, #tpu.memory_space<vmem>>, vector<8x1xf32>
    %400 = vector.extract_strided_slice %392 {offsets = [1, 0], sizes = [1, 128], strides = [1, 1]} : vector<2x128xf32> to vector<1x128xf32>
    %401 = vector.broadcast %399 : vector<8x1xf32> to vector<8x128xf32>
    %402 = vector.broadcast %400 : vector<1x128xf32> to vector<8x128xf32>
    %403 = arith.mulf %401, %402 : vector<8x128xf32>
    %404 = arith.addf %390, %403 : vector<8x128xf32>
    %405 = tpu.concatenate %276, %398, %404 in 0 : vector<24x128xf32>, vector<8x128xf32>, vector<8x128xf32> -> vector<40x128xf32>
    %406 = arith.addf %405, %0 : vector<40x128xf32>
    %cst_247 = arith.constant 0.000000e+00 : f32
    %407 = vector.broadcast %cst_247 : f32 to vector<40x128xf32>
    %408 = arith.cmpf ogt, %406, %407 : vector<40x128xf32>
    %cst_248 = arith.constant 0.000000e+00 : f32
    %409 = vector.broadcast %cst_248 : f32 to vector<40x128xf32>
    %410 = arith.minimumf %406, %409 : vector<40x128xf32>
    %411 = math.exp %410 : vector<40x128xf32>
    %cst_249 = arith.constant 1.000000e+00 : f32
    %412 = vector.broadcast %cst_249 : f32 to vector<40x128xf32>
    %413 = arith.subf %411, %412 : vector<40x128xf32>
    %414 = arith.select %408, %406, %413 : vector<40x128xi1>, vector<40x128xf32>
    %415 = vector.broadcast %1 : vector<40x1xf32> to vector<40x128xf32>
    %416 = arith.mulf %415, %414 : vector<40x128xf32>
    %417 = vector.broadcast %2 : vector<40x1xf32> to vector<40x128xf32>
    %418 = arith.addf %416, %417 : vector<40x128xf32>
    %419 = vector.extract_strided_slice %418 {offsets = [0, 0], sizes = [24, 128], strides = [1, 1]} : vector<40x128xf32> to vector<24x128xf32>
    %cst_250 = arith.constant dense<0.000000e+00> : vector<24xf32>
    %420 = vector.multi_reduction <add>, %419, %cst_250 [1] : vector<24x128xf32> to vector<24xf32>
    %421 = vector.shape_cast %420 : vector<24xf32> to vector<24x1xf32>
    %cst_251 = arith.constant 1.280000e+02 : f32
    %422 = vector.broadcast %cst_251 : f32 to vector<24x1xf32>
    %423 = arith.divf %421, %422 : vector<24x1xf32>
    %424 = vector.broadcast %423 : vector<24x1xf32> to vector<24x128xf32>
    %425 = arith.subf %419, %424 : vector<24x128xf32>
    %426 = arith.mulf %425, %425 : vector<24x128xf32>
    %cst_252 = arith.constant dense<0.000000e+00> : vector<24xf32>
    %427 = vector.multi_reduction <add>, %426, %cst_252 [1] : vector<24x128xf32> to vector<24xf32>
    %428 = vector.shape_cast %427 : vector<24xf32> to vector<24x1xf32>
    %cst_253 = arith.constant 9.99999993E-9 : f32
    %429 = vector.broadcast %cst_253 : f32 to vector<24x1xf32>
    %430 = arith.addf %428, %429 : vector<24x1xf32>
    %431 = math.rsqrt %430 : vector<24x1xf32>
    %432 = vector.broadcast %431 : vector<24x1xf32> to vector<24x128xf32>
    %433 = arith.mulf %425, %432 : vector<24x128xf32>
    %434 = vector.extract_strided_slice %418 {offsets = [24, 0], sizes = [16, 128], strides = [1, 1]} : vector<40x128xf32> to vector<16x128xf32>
    %cst_254 = arith.constant dense<0.000000e+00> : vector<16xf32>
    %435 = vector.multi_reduction <add>, %434, %cst_254 [1] : vector<16x128xf32> to vector<16xf32>
    %436 = vector.shape_cast %435 : vector<16xf32> to vector<16x1xf32>
    %cst_255 = arith.constant 1.280000e+02 : f32
    %437 = vector.broadcast %cst_255 : f32 to vector<16x1xf32>
    %438 = arith.divf %436, %437 : vector<16x1xf32>
    %439 = vector.broadcast %438 : vector<16x1xf32> to vector<16x128xf32>
    %440 = arith.subf %434, %439 : vector<16x128xf32>
    %441 = arith.mulf %440, %440 : vector<16x128xf32>
    %cst_256 = arith.constant dense<0.000000e+00> : vector<16xf32>
    %442 = vector.multi_reduction <add>, %441, %cst_256 [1] : vector<16x128xf32> to vector<16xf32>
    %443 = vector.shape_cast %442 : vector<16xf32> to vector<16x1xf32>
    %cst_257 = arith.constant 9.99999993E-9 : f32
    %444 = vector.broadcast %cst_257 : f32 to vector<16x1xf32>
    %445 = arith.addf %443, %444 : vector<16x1xf32>
    %446 = math.rsqrt %445 : vector<16x1xf32>
    %447 = vector.broadcast %446 : vector<16x1xf32> to vector<16x128xf32>
    %448 = arith.mulf %440, %447 : vector<16x128xf32>
    %c0_258 = arith.constant 0 : index
    %c0_259 = arith.constant 0 : index
    %449 = vector.load %arg5[%c0_258, %c0_259] : memref<512x24xf32, #tpu.memory_space<vmem>>, vector<512x24xf32>
    %cst_260 = arith.constant dense<0.000000e+00> : vector<512x128xf32>
    %450 = tpu.matmul %449, %433, %cst_260 {dimension_numbers = #tpu.dot_dimension_numbers<[1], [0], [0], [1], [0, 0, 1, 1], [], []>} : vector<512x24xf32>, vector<24x128xf32>, vector<512x128xf32> -> vector<512x128xf32>
    %451 = vector.shape_cast %450 : vector<512x128xf32> to vector<32x16x128xf32>
    %452 = vector.shape_cast %448 : vector<16x128xf32> to vector<1x16x128xf32>
    %453 = vector.broadcast %452 : vector<1x16x128xf32> to vector<32x16x128xf32>
    %454 = arith.mulf %451, %453 : vector<32x16x128xf32>
    %cst_261 = arith.constant dense<0.000000e+00> : vector<32x16xf32>
    %455 = vector.multi_reduction <add>, %454, %cst_261 [2] : vector<32x16x128xf32> to vector<32x16xf32>
    %cst_262 = arith.constant dense<0.000000e+00> : vector<32xf32>
    %456 = vector.multi_reduction <add>, %455, %cst_262 [1] : vector<32x16xf32> to vector<32xf32>
    %457 = vector.shape_cast %456 : vector<32xf32> to vector<32x1xf32>
    %458 = arith.addf %457, %3 : vector<32x1xf32>
    %cst_263 = arith.constant 0.000000e+00 : f32
    %459 = vector.broadcast %cst_263 : f32 to vector<32x1xf32>
    %460 = arith.cmpf ogt, %458, %459 : vector<32x1xf32>
    %cst_264 = arith.constant 0.000000e+00 : f32
    %461 = vector.broadcast %cst_264 : f32 to vector<32x1xf32>
    %462 = arith.minimumf %458, %461 : vector<32x1xf32>
    %463 = math.exp %462 : vector<32x1xf32>
    %cst_265 = arith.constant 1.000000e+00 : f32
    %464 = vector.broadcast %cst_265 : f32 to vector<32x1xf32>
    %465 = arith.subf %463, %464 : vector<32x1xf32>
    %466 = arith.select %460, %458, %465 : vector<32x1xi1>, vector<32x1xf32>
    %467 = vector.broadcast %466 : vector<32x1xf32> to vector<32x2xf32>
    %468 = arith.mulf %4, %467 : vector<32x2xf32>
    %cst_266 = arith.constant dense<0.000000e+00> : vector<2xf32>
    %469 = vector.multi_reduction <add>, %468, %cst_266 [0] : vector<32x2xf32> to vector<2xf32>
    %470 = vector.shape_cast %469 : vector<2xf32> to vector<1x2xf32>
    %471 = arith.addf %470, %5 : vector<1x2xf32>
    %472 = tpu.concatenate %238, %471 in 0 : vector<1x2xf32>, vector<1x2xf32> -> vector<2x2xf32>
    %c0_267 = arith.constant 0 : index
    %c0_268 = arith.constant 0 : index
    %473 = vector.load %arg6[%c0_267, %c0_268] : memref<2x2xf32, #tpu.memory_space<vmem>>, vector<2x2xf32>
    tpu.vector_store %arg6[%c0_267, %c0_268], %472 {strides = array<i32>} : memref<2x2xf32, #tpu.memory_space<vmem>>, vector<2x2xf32>,
    return
  }
  func.func @transform_0(%arg0: i32) -> (i32, i32, i32) {
    %c0_i32 = arith.constant 0 : i32
    %c0_i32_0 = arith.constant 0 : i32
    %c0_i32_1 = arith.constant 0 : i32
    %c0_i32_2 = arith.constant 0 : i32
    return %c0_i32, %c0_i32_0, %c0_i32_1 : i32, i32, i32
  }
  func.func @transform_1(%arg0: i32) -> (i32, i32) {
    %c0_i32 = arith.constant 0 : i32
    %c0_i32_0 = arith.constant 0 : i32
    %c0_i32_1 = arith.constant 0 : i32
    return %c0_i32, %c0_i32_0 : i32, i32
  }
  func.func @transform_2(%arg0: i32) -> (i32, i32) {
    %c0_i32 = arith.constant 0 : i32
    %c0_i32_0 = arith.constant 0 : i32
    %c0_i32_1 = arith.constant 0 : i32
    return %c0_i32, %c0_i32_0 : i32, i32
  }
  func.func @transform_3(%arg0: i32) -> (i32, i32) {
    %c0_i32 = arith.constant 0 : i32
    %c0_i32_0 = arith.constant 0 : i32
    %c0_i32_1 = arith.constant 0 : i32
    return %c0_i32, %c0_i32_0 : i32, i32
  }
  func.func @transform_4(%arg0: i32) -> (i32, i32) {
    %c0_i32 = arith.constant 0 : i32
    %c0_i32_0 = arith.constant 0 : i32
    %c0_i32_1 = arith.constant 0 : i32
    return %c0_i32, %c0_i32_0 : i32, i32
  }
  func.func @transform_5(%arg0: i32) -> (i32, i32) {
    %c0_i32 = arith.constant 0 : i32
    %c0_i32_0 = arith.constant 0 : i32
    %c0_i32_1 = arith.constant 0 : i32
    return %c0_i32, %c0_i32_0 : i32, i32
  }
}

</mosaic_0001>

<bundles_post_ra>
// kernel: aadnet_pallas.1
= control target key start
LH: loop header
LB: loop body
LE: loop exit
PB: predicated region body
PF: predicated region fallthrough
CT: control target
= control target key end

     0   :  { %v4443_v3 = vmov 0   ;;  %s4444_s22 = smov 127   ;;  %s4445_s23 = smov 125   ;;  %s6902_s0 = inlined_call_operand.vmem [shape: f32[2,10,144], index: 0, kind: input, shape index: {}]   ;;  %s6903_s1 = inlined_call_operand.vmem [shape: f32[24,136], index: 1, kind: input, shape index: {}]   ;;  %s6904_s2 = inlined_call_operand.vmem [shape: f32[16,9], index: 2, kind: input, shape index: {}]   ;;  %s6905_s3 = inlined_call_operand.vmem [shape: f32[40,133], index: 3, kind: input, shape index: {}]   ;;  %s6906_s4 = inlined_call_operand.vmem [shape: f32[512,24], index: 4, kind: input, shape index: {}]   ;;  %s6907_s5 = inlined_call_operand.hbm [shape: f32[2,2], index: 5, kind: output, shape index: {}]  }
   0x1   :  { %v4504_v0 = vld [vmem:[%s6902_s0] sm:$0xff]  ;;  %v33_v1 = vld [vmem:[%s6902_s0 + $0x8] sm:$0xff]  ;;  %4339 = vset.pattern.permute.xlu1 %v4443_v3 }
   0x2   :  { %v4189_v2 = vpack.i.bf16 %v33_v1, %v4504_v0 }
   0x4   :  { %4190 = vrot.lane.b32.xlu0 %v4189_v2, %s4444_s22  ;;  %4200 = vrot.lane.b32.xlu1 %v4189_v2, %s4445_s23 }
   0x5   :  { %10 = vsyncpa [#allocation3], 0  ;;  %v6911_v4 = vmov 1   ;;  %s4447_s24 = smov 126   ;;  %s4448_s25 = smov 124   ;;  %v4449_v5 = vmov 0.0|0.0   ;;  %v252_v15 = vlaneseq }
   0x6   :  { %4341 = vset.pattern.permute.xlu0 %v6911_v4  ;;  %4101 = vmatprep.subr.bf16.mxu0 %v4449_v5  ;;  %s4450_s26 = smov 123   ;;  %s4451_s27 = smov 122   ;;  %v4526_v6 = vld [vmem:[%s6903_s1 + $0x8] sm:$0xff]  ;;  %vm154_vm0 = vcmask 64512   ;;  %v4533_v7 = vld [vmem:[%s6902_s0 + $0x20] sm:$0xff]  ;;  %v27_v10 = vld [vmem:[%s6905_s3 + $0x18] sm:$0xff] }
   0x7   :  { %s4452_s28 = smov 121   ;;  %s4453_s29 = smov 120   ;;  %3607 = vmatprep.mubr.msk.f32.mxu0 %vm154_vm0, %v4526_v6  ;;  %v3684_v8 = vld [vmem:[%s6902_s0 + $0x28] sm:$0xff]  ;;  %v4557_v11 = vld [vmem:[%s6904_s2] sm:$0xff]  ;;  %v6909_v14 = vmov 2   ;;  %v4570_v16 = vshrl.u32 %v252_v15, 7 }
   0x8   :  { %4195 = vrot.lane.b32.xlu0 %v4189_v2, %s4447_s24  ;;  %4205 = vrot.lane.b32.xlu1 %v4189_v2, %s4448_s25  ;;  %s4454_s30 = smov 119   ;;  %s4455_s6 = smov 118   ;;  %v4264_v9 = vpack.i.bf16 %v3684_v8, %v4533_v7  ;;  %v26_v12 = vld [vmem:[%s6905_s3 + $0x8] sm:$0xff]  ;;  %v1610_v17 = vand.u32 127, %v252_v15  ;;  %v4463_v18 = vmov 5   ;;  %v4464_v23 = vmov 6  }
   0x9   :  { %s4456_s7 = smov 117   ;;  %s4457_s8 = smov 116   ;;  %v28_v13 = vld [vmem:[%s6905_s3 + $0x28] sm:$0xff]  ;;  %v4465_v24 = vmov 3   ;;  %v4466_v25 = vmov 7   ;;  %v4467_v26 = vmov 8  }
   0xa   :  { %s4458_s11 = smov 115   ;;  %s4459_s12 = smov 114   ;;  %v4573_v19 = vsub.s32 %v1610_v17, %v4570_v16  ;;  %v1615_v20 = vadd.s32 4294967288, %v1610_v17  ;;  %v264_v22 = vld [vmem:[%s6904_s2 + $0x8] sm:$0xff]  ;;  %v4468_v27 = vmov 4   ;;  %vm40_vm1 = vcmask 1039360  }
   0xb   :  { %s4460_s17 = smov 113   ;;  %s4461_s18 = smov 112   ;;  %vm54_vm2 = vcmask 1022976   ;;  %vm47_vm3 = vcmask 1031168   ;;  %vm61_vm4 = vcmask 1014784   ;;  %vm68_vm5 = vcmask 1006592  }
   0xc   :  { %4210 = vrot.lane.b32.xlu0 %v4189_v2, %s4450_s26  ;;  %4215 = vrot.lane.b32.xlu1 %v4189_v2, %s4451_s27  ;;  %6928 = vst [vmem:[#allocation5_spill] sm:$0xff] %v4573_v19  ;;  %v4578_v21 = vsub.s32 %v1615_v20, %v4570_v16  ;;  %vm75_vm6 = vcmask 998400   ;;  %vm82_vm7 = vcmask 990208   ;;  %vm89_vm8 = vcmask 982016  }
   0xd   :  { %vm96_vm9 = vcmask 973824   ;;  %vm103_vm10 = vcmask 965632   ;;  %vm110_vm11 = vcmask 957440   ;;  %vm6908_vm12 = vcmask 949248  }
   0xe   :  { %6929 = vst [vmem:[#allocation6_spill] sm:$0xff] %v4578_v21  ;;  %vm124_vm13 = vcmask 941056   ;;  %vm131_vm14 = vcmask 932864   ;;  %vm138_vm15 = vcmask 924672  }
  0x10   :  { %4220 = vrot.lane.b32.xlu0 %v4189_v2, %s4452_s28  ;;  %4225 = vrot.lane.b32.xlu1 %v4189_v2, %s4453_s29 }
  0x14   :  { %4230 = vrot.lane.b32.xlu0 %v4189_v2, %s4454_s30  ;;  %4235 = vrot.lane.b32.xlu1 %v4189_v2, %s4455_s6 }
  0x18   :  { %4240 = vrot.lane.b32.xlu0 %v4189_v2, %s4456_s7  ;;  %4245 = vrot.lane.b32.xlu1 %v4189_v2, %s4457_s8 }
  0x1c   :  { %4250 = vrot.lane.b32.xlu0 %v4189_v2, %s4458_s11  ;;  %4255 = vrot.lane.b32.xlu1 %v4189_v2, %s4459_s12 }
  0x20   :  { %4260 = vrot.lane.b32.xlu0 %v4189_v2, %s4460_s17  ;;  %141 = vrot.lane.b32.xlu1 %v4504_v0, %s4461_s18 }
  0x24   :  { %4265 = vrot.lane.b32.xlu1 %v4264_v9, %s4444_s22  ;;  %143 = vrot.lane.b32.xlu0 %v33_v1, %s4461_s18 }
  0x28   :  { %4275 = vrot.lane.b32.xlu1 %v4264_v9, %s4445_s23  ;;  %4270 = vrot.lane.b32.xlu0 %v4264_v9, %s4447_s24 }
  0x2c   :  { %4285 = vrot.lane.b32.xlu1 %v4264_v9, %s4450_s26  ;;  %4280 = vrot.lane.b32.xlu0 %v4264_v9, %s4448_s25 }
  0x30   :  { %4295 = vrot.lane.b32.xlu1 %v4264_v9, %s4452_s28  ;;  %4290 = vrot.lane.b32.xlu0 %v4264_v9, %s4451_s27 }
  0x34   :  { %4305 = vrot.lane.b32.xlu1 %v4264_v9, %s4454_s30  ;;  %4300 = vrot.lane.b32.xlu0 %v4264_v9, %s4453_s29 }
  0x38   :  { %4315 = vrot.lane.b32.xlu1 %v4264_v9, %s4456_s7  ;;  %4310 = vrot.lane.b32.xlu0 %v4264_v9, %s4455_s6 }
  0x3c   :  { %4325 = vrot.lane.b32.xlu1 %v4264_v9, %s4458_s11  ;;  %4320 = vrot.lane.b32.xlu0 %v4264_v9, %s4457_s8 }
  0x40   :  { %4335 = vrot.lane.b32.xlu1 %v4264_v9, %s4460_s17  ;;  %4330 = vrot.lane.b32.xlu0 %v4264_v9, %s4459_s12 }
  0x44   :  { %2117 = vrot.lane.b32.xlu1 %v3684_v8, %s4461_s18  ;;  %2115 = vrot.lane.b32.xlu0 %v4533_v7, %s4461_s18 }
  0x48   :  { %612 = vperm.xlu1 %4339, %v27_v10   ;;  %640 = vperm.xlu0 %4341, %v27_v10  }
  0x4c   :  { %4340 = vset.pattern.permute.xlu1 %v6911_v4  ;;  %283 = vperm.xlu0 %4341, %v4557_v11  }
  0x4d   :  { %636 = vperm.xlu1 %4340, %v26_v12  }
  0x50   :  { %4344 = vset.pattern.permute.xlu0 %v6909_v14 }
  0x51   :  { %4342 = vset.pattern.permute.xlu1 %v4443_v3  ;;  %317 = vperm.xlu0 %4344, %v4557_v11  }
  0x52   :  { %617 = vperm.xlu1 %4342, %v28_v13  }
  0x55   :  { %4348 = vset.pattern.permute.xlu0 %v4463_v18 }
  0x56   :  { %4343 = vset.pattern.permute.xlu1 %v6911_v4  ;;  %419 = vperm.xlu0 %4348, %v4557_v11  }
  0x57   :  { %644 = vperm.xlu1 %4343, %v28_v13  }
  0x5a   :  { %436 = vperm.xlu0 %4348, %v264_v22  }
  0x5b   :  { %300 = vperm.xlu1 %4343, %v264_v22  }
  0x5e   :  { %4349 = vset.pattern.permute.xlu0 %v4464_v23 }
  0x5f   :  { %4345 = vset.pattern.permute.xlu1 %v6909_v14  ;;  %453 = vperm.xlu0 %4349, %v4557_v11  }
  0x60   :  { %334 = vperm.xlu1 %4345, %v264_v22  }
  0x63   :  { %470 = vperm.xlu0 %4349, %v264_v22  }
  0x64   :  { %4346 = vset.pattern.permute.xlu1 %v4465_v24 }
  0x65   :  { %351 = vperm.xlu1 %4346, %v4557_v11  }
  0x67   :  { %4350 = vset.pattern.permute.xlu0 %v4466_v25 }
  0x68   :  { %487 = vperm.xlu0 %4350, %v4557_v11  }
  0x69   :  { %368 = vperm.xlu1 %4346, %v264_v22  }
  0x6c   :  { %4352 = vset.pattern.permute.xlu0 %v4467_v26 }
  0x6d   :  { %4347 = vset.pattern.permute.xlu1 %v4468_v27  ;;  %521 = vperm.xlu0 %4352, %v4557_v11  }
  0x6e   :  { %385 = vperm.xlu1 %4347, %v4557_v11  }
  0x71   :  { %538 = vperm.xlu0 %4352, %v264_v22  }
  0x72   :  { %402 = vperm.xlu1 %4347, %v264_v22  }
  0x75   :  { %4353 = vset.pattern.permute.xlu0 %v4443_v3 }
  0x76   :  { %v4191_v28 = vpop.permute.xlu0 %4190  ;;  %v4201_v29 = vpop.permute.xlu1 %4200  ;;  %4351 = vset.pattern.permute.xlu1 %v4466_v25  ;;  %607 = vperm.xlu0 %4353, %v26_v12  }
  0x77   :  { %v4193_v30 = vunpack.i.h.bf16 %v4191_v28  ;;  %v4192_v31 = vunpack.i.l.bf16 %v4191_v28  ;;  %v4203_v32 = vunpack.i.h.bf16 %v4201_v29  ;;  %v4202_v33 = vunpack.i.l.bf16 %v4201_v29  ;;  %504 = vperm.xlu1 %4351, %v264_v22  }
  0x79   :  { %v41_v34 = vsel %vm40_vm1, %v4192_v31, %v4193_v30  ;;  %v55_v38 = vsel %vm54_vm2, %v4202_v33, %v4203_v32 }
  0x7a   :  { %v4196_v35 = vpop.permute.xlu0 %4195  ;;  %v4206_v36 = vpop.permute.xlu1 %4205  ;;  %v4102_v37 = vpack.c.bf16 %v41_v34, %v4504_v0  ;;  %267 = vperm.xlu0 %4353, %v264_v22  }
  0x7b   :  { %v4198_v39 = vunpack.i.h.bf16 %v4196_v35  ;;  %v4197_v40 = vunpack.i.l.bf16 %v4196_v35  ;;  %v4208_v41 = vunpack.i.h.bf16 %v4206_v36  ;;  %v4207_v42 = vunpack.i.l.bf16 %v4206_v36  ;;  %4354 = vset.pattern.permute.xlu1 %v4443_v3 }
  0x7c   :  { %4103 = vmatpush1.bf16.msra.mxu0 %v4102_v37  ;;  %249 = vperm.xlu1 %4354, %v4557_v11  }
  0x7d   :  { %4104 = vmatprep.subr.bf16.mxu0 %v4449_v5  ;;  %v48_v43 = vsel %vm47_vm3, %v4197_v40, %v4198_v39  ;;  %v62_v47 = vsel %vm61_vm4, %v4207_v42, %v4208_v41 }
  0x7e   :  { %v4211_v44 = vpop.permute.xlu0 %4210  ;;  %v4216_v45 = vpop.permute.xlu1 %4215  ;;  %v4105_v46 = vpack.c.bf16 %v55_v38, %v48_v43 }
  0x7f   :  { %v4213_v48 = vunpack.i.h.bf16 %v4211_v44  ;;  %v4212_v49 = vunpack.i.l.bf16 %v4211_v44  ;;  %v4218_v50 = vunpack.i.h.bf16 %v4216_v45  ;;  %v4217_v51 = vunpack.i.l.bf16 %v4216_v45 }
  0x80   :  { %4106 = vmatpush1.bf16.msra.mxu0 %v4105_v46  ;;  %v4469_v46 = vmov 0.0  }
  0x81   :  { %4107 = vmatprep.subr.bf16.mxu0 %v4449_v5  ;;  %v69_v52 = vsel %vm68_vm5, %v4212_v49, %v4213_v48  ;;  %v76_v56 = vsel %vm75_vm6, %v4217_v51, %v4218_v50  ;;  %v4621_v50 = vld [vmem:[%s6903_s1] sm:$0xff] }
  0x82   :  { %v4221_v53 = vpop.permute.xlu0 %4220  ;;  %v4226_v54 = vpop.permute.xlu1 %4225  ;;  %v4108_v55 = vpack.c.bf16 %v69_v52, %v62_v47 }
  0x83   :  { %v4223_v57 = vunpack.i.h.bf16 %v4221_v53  ;;  %v4222_v58 = vunpack.i.l.bf16 %v4221_v53  ;;  %v4228_v59 = vunpack.i.h.bf16 %v4226_v54  ;;  %v4227_v60 = vunpack.i.l.bf16 %v4226_v54 }
  0x84   :  { %4109 = vmatpush1.bf16.msra.mxu0 %v4108_v55 }
  0x85   :  { %4110 = vmatprep.subr.bf16.mxu0 %v4449_v5  ;;  %v83_v61 = vsel %vm82_vm7, %v4222_v58, %v4223_v57  ;;  %v90_v1 = vsel %vm89_vm8, %v4227_v60, %v4228_v59  ;;  %v4638_v60 = vld [vmem:[%s6903_s1 + $0x10] sm:$0xff] }
  0x86   :  { %v4231_v62 = vpop.permute.xlu0 %4230  ;;  %v4236_v63 = vpop.permute.xlu1 %4235  ;;  %v4111_v0 = vpack.c.bf16 %v83_v61, %v76_v56  ;;  %v4627_v56 = vld [vmem:[%s6903_s1 + $0x18] sm:$0xff] }
  0x87   :  { %v4233_v2 = vunpack.i.h.bf16 %v4231_v62  ;;  %v4232_v3 = vunpack.i.l.bf16 %v4231_v62  ;;  %v4238_v8 = vunpack.i.h.bf16 %v4236_v63  ;;  %v4237_v9 = vunpack.i.l.bf16 %v4236_v63 }
  0x88   :  { %4112 = vmatpush1.bf16.msra.mxu0 %v4111_v0 }
  0x89   :  { %4113 = vmatprep.subr.bf16.mxu0 %v4449_v5  ;;  %v97_v10 = vsel %vm96_vm9, %v4232_v3, %v4233_v2  ;;  %v104_v15 = vsel %vm103_vm10, %v4237_v9, %v4238_v8  ;;  %v4644_v2 = vld [vmem:[%s6903_s1 + $0x28] sm:$0xff] }
  0x8a   :  { %v4241_v11 = vpop.permute.xlu0 %4240  ;;  %v4246_v12 = vpop.permute.xlu1 %4245  ;;  %v4114_v13 = vpack.c.bf16 %v97_v10, %v90_v1 }
  0x8b   :  { %v4243_v17 = vunpack.i.h.bf16 %v4241_v11  ;;  %v4242_v18 = vunpack.i.l.bf16 %v4241_v11  ;;  %v4248_v20 = vunpack.i.h.bf16 %v4246_v12  ;;  %v4247_v22 = vunpack.i.l.bf16 %v4246_v12  ;;  %v4654_v11 = vld [vmem:[%s6903_s1 + $0x20] sm:$0xff] }
  0x8c   :  { %4115 = vmatpush1.bf16.msra.mxu0 %v4114_v13 }
  0x8d   :  { %4116 = vmatprep.subr.bf16.mxu0 %v4449_v5  ;;  %v111_v23 = vsel %vm110_vm11, %v4242_v18, %v4243_v17  ;;  %v118_v27 = vsel %vm6908_vm12, %v4247_v22, %v4248_v20  ;;  %vm145_vm12 = vcmask 916480  }
  0x8e   :  { %v4251_v24 = vpop.permute.xlu0 %4250  ;;  %v4256_v25 = vpop.permute.xlu1 %4255  ;;  %v4117_v26 = vpack.c.bf16 %v111_v23, %v104_v15 }
  0x8f   :  { %v4253_v28 = vunpack.i.h.bf16 %v4251_v24  ;;  %v4252_v29 = vunpack.i.l.bf16 %v4251_v24  ;;  %v4258_v30 = vunpack.i.h.bf16 %v4256_v25  ;;  %v4257_v31 = vunpack.i.l.bf16 %v4256_v25 }
  0x90   :  { %4118 = vmatpush1.bf16.msra.mxu0 %v4117_v26 }
  0x91   :  { %4119 = vmatprep.subr.bf16.mxu0 %v4449_v5  ;;  %v125_v32 = vsel %vm124_vm13, %v4252_v29, %v4253_v28  ;;  %v132_v38 = vsel %vm131_vm14, %v4257_v31, %v4258_v30 }
  0x92   :  { %v4261_v33 = vpop.permute.xlu0 %4260  ;;  %v142_v34 = vpop.permute.xlu1 %141  ;;  %v4120_v35 = vpack.c.bf16 %v125_v32, %v118_v27 }
  0x93   :  { %v4263_v36 = vunpack.i.h.bf16 %v4261_v33  ;;  %v4262_v37 = vunpack.i.l.bf16 %v4261_v33 }
  0x94   :  { %4121 = vmatpush1.bf16.msra.mxu0 %v4120_v35 }
  0x95   :  { %4122 = vmatprep.subr.bf16.mxu0 %v4449_v5  ;;  %v139_v39 = vsel %vm138_vm15, %v4262_v37, %v4263_v36 }
  0x96   :  { %v4266_v40 = vpop.permute.xlu1 %4265  ;;  %v144_v41 = vpop.permute.xlu0 %143  ;;  %v4123_v42 = vpack.c.bf16 %v139_v39, %v132_v38 }
  0x97   :  { %v4268_v43 = vunpack.i.h.bf16 %v4266_v40  ;;  %v4267_v44 = vunpack.i.l.bf16 %v4266_v40  ;;  %v146_v47 = vsel %vm145_vm12, %v142_v34, %v144_v41 }
  0x98   :  { %4124 = vmatpush1.bf16.msra.mxu0 %v4123_v42 }
  0x99   :  { %v2029_v45 = vsel %vm40_vm1, %v4267_v44, %v4268_v43  ;;  %196 = vmatprep.subr.mxu0 %v4469_v46 }
  0x9a   :  { %v4276_v48 = vpop.permute.xlu1 %4275  ;;  %v4271_v49 = vpop.permute.xlu0 %4270  ;;  %v4130_v51 = vpack.c.bf16 %v2029_v45, %v4533_v7 }
  0x9b   :  { %v4278_v52 = vunpack.i.h.bf16 %v4276_v48  ;;  %v4277_v53 = vunpack.i.l.bf16 %v4276_v48  ;;  %v4273_v54 = vunpack.i.h.bf16 %v4271_v49  ;;  %v4272_v55 = vunpack.i.l.bf16 %v4271_v49 }
  0x9c   :  { %197 = vmatpush1.msra.mxu0 %v146_v47 }
  0x9d   :  { %v2041_v57 = vsel %vm54_vm2, %v4277_v53, %v4278_v52  ;;  %v2035_v58 = vsel %vm47_vm3, %v4272_v55, %v4273_v54  ;;  %229 = vmatmul.mubr.f32.vlgmr.msra.gmra.mrb[0].mxu0 %v4621_v50  ;;  %4129 = vmatprep.subr.bf16.mxu0 %v4449_v5 }
  0x9e   :  { %4131 = vmatpush1.bf16.msra.mxu0 %v4130_v51  ;;  %v4286_v7 = vpop.permute.xlu1 %4285  ;;  %v4281_v59 = vpop.permute.xlu0 %4280  ;;  %3608 = vmatprep.mubr.msk.f32.mxu0 %vm154_vm0, %v4627_v56  ;;  %v4133_v61 = vpack.c.bf16 %v2041_v57, %v2035_v58 }
  0x9f   :  { %v4288_v62 = vunpack.i.h.bf16 %v4286_v7  ;;  %v4287_v63 = vunpack.i.l.bf16 %v4286_v7  ;;  %v4283_v0 = vunpack.i.h.bf16 %v4281_v59  ;;  %v4282_v1 = vunpack.i.l.bf16 %v4281_v59  ;;  %4132 = vmatprep.subr.bf16.mxu0 %v4449_v5 }
  0xa1   :  { %v2053_v3 = vsel %vm68_vm5, %v4287_v63, %v4288_v62  ;;  %v2047_v8 = vsel %vm61_vm4, %v4282_v1, %v4283_v0  ;;  %234 = vmatmul.mubr.f32.gmra.mrb[2].mxu0 %v4638_v60  ;;  %v244_v1 = vld [vmem:[%s6902_s0 + $0x10] sm:$0x3] }
  0xa2   :  { %4134 = vmatpush1.bf16.msra.mxu0 %v4133_v61  ;;  %v4296_v9 = vpop.permute.xlu1 %4295  ;;  %v4291_v10 = vpop.permute.xlu0 %4290  ;;  %3609 = vmatprep.mubr.msk.f32.mxu0 %vm154_vm0, %v4644_v2  ;;  %v4136_v12 = vpack.c.bf16 %v2053_v3, %v2047_v8 }
  0xa3   :  { %v4298_v13 = vunpack.i.h.bf16 %v4296_v9  ;;  %v4297_v15 = vunpack.i.l.bf16 %v4296_v9  ;;  %v4293_v17 = vunpack.i.h.bf16 %v4291_v10  ;;  %v4292_v18 = vunpack.i.l.bf16 %v4291_v10  ;;  %4135 = vmatprep.subr.bf16.mxu0 %v4449_v5 }
  0xa5   :  { %v2065_v20 = vsel %vm82_vm7, %v4297_v15, %v4298_v13  ;;  %v2059_v22 = vsel %vm75_vm6, %v4292_v18, %v4293_v17  ;;  %239 = vmatmul.mubr.f32.gmra.mrb[4].mxu0 %v4654_v11  ;;  %v3689_v15 = vld [vmem:[%s6902_s0 + $0x38] sm:$0x3]  ;;  %v3688_v17 = vld [vmem:[%s6902_s0 + $0x30] sm:$0x3] }
  0xa6   :  { %4137 = vmatpush1.bf16.msra.mxu0 %v4136_v12  ;;  %v4306_v23 = vpop.permute.xlu1 %4305  ;;  %v4301_v24 = vpop.permute.xlu0 %4300  ;;  %v4139_v25 = vpack.c.bf16 %v2065_v20, %v2059_v22  ;;  %3685 = vmatprep.mubr.msk.f32.mxu0 %vm154_vm0, %v4526_v6  ;;  %v272_v12 = vsub.s32 1, %v4570_v16 }
  0xa7   :  { %v4308_v26 = vunpack.i.h.bf16 %v4306_v23  ;;  %v4307_v27 = vunpack.i.l.bf16 %v4306_v23  ;;  %v4303_v28 = vunpack.i.h.bf16 %v4301_v24  ;;  %v4302_v29 = vunpack.i.l.bf16 %v4301_v24  ;;  %4138 = vmatprep.subr.bf16.mxu0 %v4449_v5 }
  0xa8   :  { %v4718_v20 = vrot.slane %v244_v1, %v272_v12 }
  0xa9   :  { %v2077_v30 = vsel %vm96_vm9, %v4307_v27, %v4308_v26  ;;  %v2071_v31 = vsel %vm89_vm8, %v4302_v29, %v4303_v28  ;;  %vm6930_vm9 = vcmask 949248   ;;  %v4726_v26 = vrot.slane %v3689_v15, %v272_v12 }
  0xaa   :  { %4140 = vmatpush1.bf16.msra.mxu0 %v4139_v25  ;;  %v4316_v32 = vpop.permute.xlu1 %4315  ;;  %v4311_v33 = vpop.permute.xlu0 %4310  ;;  %v4142_v34 = vpack.c.bf16 %v2077_v30, %v2071_v31  ;;  %v4732_v29 = vrot.slane %v3688_v17, %v272_v12 }
  0xab   :  { %v4318_v35 = vunpack.i.h.bf16 %v4316_v32  ;;  %v4317_v36 = vunpack.i.l.bf16 %v4316_v32  ;;  %v4313_v37 = vunpack.i.h.bf16 %v4311_v33  ;;  %v4312_v38 = vunpack.i.l.bf16 %v4311_v33  ;;  %4141 = vmatprep.subr.bf16.mxu0 %v4449_v5 }
  0xad   :  { %v2089_v6 = vsel %vm110_vm11, %v4317_v36, %v4318_v35  ;;  %v2083_v39 = vsel %vm103_vm10, %v4312_v38, %v4313_v37 }
  0xae   :  { %4143 = vmatpush1.bf16.msra.mxu0 %v4142_v34  ;;  %v4326_v40 = vpop.permute.xlu1 %4325  ;;  %v4321_v41 = vpop.permute.xlu0 %4320  ;;  %v4145_v42 = vpack.c.bf16 %v2089_v6, %v2083_v39 }
  0xaf   :  { %v4328_v43 = vunpack.i.h.bf16 %v4326_v40  ;;  %v4327_v44 = vunpack.i.l.bf16 %v4326_v40  ;;  %v4323_v45 = vunpack.i.h.bf16 %v4321_v41  ;;  %v4322_v47 = vunpack.i.l.bf16 %v4321_v41  ;;  %4144 = vmatprep.subr.bf16.mxu0 %v4449_v5 }
  0xb1   :  { %v2101_v48 = vsel %vm124_vm13, %v4327_v44, %v4328_v43  ;;  %v2095_v49 = vsel %vm6930_vm9, %v4322_v47, %v4323_v45  ;;  %vm1907_vm9 = vcmask 1044484  }
  0xb2   :  { %4146 = vmatpush1.bf16.msra.mxu0 %v4145_v42  ;;  %v4336_v51 = vpop.permute.xlu1 %4335  ;;  %v4331_v52 = vpop.permute.xlu0 %4330  ;;  %v4148_v53 = vpack.c.bf16 %v2101_v48, %v2095_v49 }
  0xb3   :  { %v4338_v54 = vunpack.i.h.bf16 %v4336_v51  ;;  %v4337_v55 = vunpack.i.l.bf16 %v4336_v51  ;;  %v4333_v57 = vunpack.i.h.bf16 %v4331_v52  ;;  %v4332_v58 = vunpack.i.l.bf16 %v4331_v52  ;;  %4147 = vmatprep.subr.bf16.mxu0 %v4449_v5 }
  0xb5   :  { %v2113_v7 = vsel %vm138_vm15, %v4337_v55, %v4338_v54  ;;  %v2107_v59 = vsel %vm131_vm14, %v4332_v58, %v4333_v57  ;;  %vm775_vm15 = vcmask 195584  }
  0xb6   :  { %4149 = vmatpush1.bf16.msra.mxu0 %v4148_v53  ;;  %v4151_v61 = vpack.c.bf16 %v2113_v7, %v2107_v59  ;;  %v2118_v62 = vpop.permute.xlu1 %2117  ;;  %v2116_v63 = vpop.permute.xlu0 %2115 }
  0xb7   :  { %4150 = vmatprep.subr.bf16.mxu0 %v4449_v5  ;;  %v2119_v0 = vsel %vm145_vm12, %v2116_v63, %v2118_v62  ;;  %v254_v5 = vsub.s32 0, %v4570_v16 }
  0xb9   :  { %v4720_v22 = vrot.slane %v3689_v15, %v254_v5  ;;  %v4722_v23 = vrot.slane %v3688_v17, %v254_v5  ;;  %v22_v15 = vld [vmem:[%s6905_s3 + $0x10] sm:$0xff] }
  0xba   :  { %4152 = vmatpush1.bf16.msra.mxu0 %v4151_v61 }
  0xbb   :  { %2153 = vmatprep.subr.mxu0 %v4469_v46 }
  0xbe   :  { %2154 = vmatpush1.msra.mxu0 %v2119_v0 }
  0xbf   :  { %2186 = vmatmul.mubr.f32.vlgmr.msra.gmra.mrb[6].mxu0 %v4621_v50  ;;  %v245_v50 = vld [vmem:[%s6902_s0 + $0x18] sm:$0x3] }
  0xc0   :  { %3686 = vmatprep.mubr.msk.f32.mxu0 %vm154_vm0, %v4627_v56  ;;  %v4695_v56 = vrot.slane %v244_v1, %v254_v5  ;;  %v4716_v18 = vrot.slane %v245_v50, %v272_v12 }
  0xc3   :  { %2191 = vmatmul.mubr.f32.gmra.mrb[8].mxu0 %v4638_v60  ;;  %v4697_v60 = vrot.slane %v245_v50, %v254_v5  ;;  %v21_v50 = vld [vmem:[%s6905_s3] sm:$0xff] }
  0xc4   :  { %3687 = vmatprep.mubr.msk.f32.mxu0 %vm154_vm0, %v4644_v2 }
  0xc7   :  { %2196 = vmatmul.mubr.f32.gmra.mrb[10].mxu0 %v4654_v11  ;;  %v4688_v46 = vpop.permute.xlu1 %612  ;;  %v4690_v3 = vpop.permute.xlu0 %640 }
  0xcb   :  { %v284_v2 = vpop.permute.xlu0 %283 }
  0xcc   :  { %v4699_v8 = vpop.permute.xlu1 %636  ;;  %v286_v9 = vmul.f32 %v284_v2, %v4695_v56  ;;  %v287_v10 = vmul.f32 %v284_v2, %v4697_v60  ;;  %v2228_v27 = vmul.f32 %v4720_v22, %v284_v2  ;;  %v2227_v28 = vmul.f32 %v4722_v23, %v284_v2 }
  0xce   :  { %290 = vrot.lane.b32.xlu1 %v286_v9, %s4444_s22 }
  0xd0   :  { %v318_v32 = vpop.permute.xlu0 %317 }
  0xd1   :  { %v4704_v11 = vpop.permute.xlu1 %617  ;;  %v321_v33 = vmul.f32 %v318_v32, %v4697_v60  ;;  %v320_v34 = vmul.f32 %v318_v32, %v4695_v56  ;;  %v2254_v38 = vmul.f32 %v4720_v22, %v318_v32  ;;  %v2253_v6 = vmul.f32 %v4722_v23, %v318_v32 }
  0xd2   :  { %292 = vrot.lane.b32.xlu1 %v287_v10, %s4444_s22 }
  0xd5   :  { %v4791_v63 = vpop.permute.xlu0 %419 }
  0xd6   :  { %v4708_v13 = vpop.permute.xlu1 %644 }
  0xd9   :  { %v4793_v0 = vpop.permute.xlu0 %436 }
  0xda   :  { %v301_v24 = vpop.permute.xlu1 %300 }
  0xdb   :  { %v304_v16 = vmul.f32 %v301_v24, %v4716_v18  ;;  %v303_v25 = vmul.f32 %v301_v24, %v4718_v20  ;;  %v2241_v30 = vmul.f32 %v4726_v26, %v301_v24  ;;  %v2240_v31 = vmul.f32 %v4732_v29, %v301_v24 }
  0xdd   :  { %309 = vrot.lane.b32.xlu1 %v304_v16, %s4444_s22  ;;  %307 = vrot.lane.b32.xlu0 %v303_v25, %s4444_s22 }
  0xde   :  { %v4795_v5 = vpop.permute.xlu0 %453 }
  0xdf   :  { %v335_v35 = vpop.permute.xlu1 %334 }
  0xe0   :  { %v338_v36 = vmul.f32 %v335_v35, %v4716_v18  ;;  %v337_v37 = vmul.f32 %v335_v35, %v4718_v20  ;;  %v2267_v40 = vmul.f32 %v4726_v26, %v335_v35  ;;  %v2266_v41 = vmul.f32 %v4732_v29, %v335_v35 }
  0xe1   :  { %2233 = vrot.lane.b32.xlu1 %v2228_v27, %s4444_s22  ;;  %2231 = vrot.lane.b32.xlu0 %v2227_v28, %s4444_s22  ;;  %v23_v28 = vld [vmem:[%s6905_s3 + $0x20] sm:$0xff] }
  0xe2   :  { %v4797_v1 = vpop.permute.xlu0 %470 }
  0xe4   :  { %v352_v39 = vpop.permute.xlu1 %351 }
  0xe5   :  { %2246 = vrot.lane.b32.xlu1 %v2241_v30, %s4444_s22  ;;  %2244 = vrot.lane.b32.xlu0 %v2240_v31, %s4444_s22  ;;  %v355_v42 = vmul.f32 %v352_v39, %v4697_v60  ;;  %v354_v43 = vmul.f32 %v352_v39, %v4695_v56  ;;  %v2280_v48 = vmul.f32 %v4720_v22, %v352_v39 }
  0xe6   :  { %v2279_v49 = vmul.f32 %v4722_v23, %v352_v39 }
  0xe7   :  { %v4802_v12 = vpop.permute.xlu0 %487 }
  0xe8   :  { %v369_v44 = vpop.permute.xlu1 %368 }
  0xe9   :  { %326 = vrot.lane.b32.xlu1 %v321_v33, %s4447_s24  ;;  %324 = vrot.lane.b32.xlu0 %v320_v34, %s4447_s24  ;;  %v372_v45 = vmul.f32 %v369_v44, %v4716_v18  ;;  %v371_v47 = vmul.f32 %v369_v44, %v4718_v20  ;;  %v2293_v52 = vmul.f32 %v4726_v26, %v369_v44 }
  0xea   :  { %v2292_v53 = vmul.f32 %v4732_v29, %v369_v44 }
  0xec   :  { %v4810_v31 = vpop.permute.xlu0 %521 }
  0xed   :  { %343 = vrot.lane.b32.xlu1 %v338_v36, %s4447_s24  ;;  %341 = vrot.lane.b32.xlu0 %v337_v37, %s4447_s24  ;;  %v386_v51 = vpop.permute.xlu1 %385 }
  0xee   :  { %v389_v54 = vmul.f32 %v386_v51, %v4697_v60  ;;  %v388_v55 = vmul.f32 %v386_v51, %v4695_v56  ;;  %v2306_v59 = vmul.f32 %v4720_v22, %v386_v51  ;;  %v2305_v61 = vmul.f32 %v4722_v23, %v386_v51 }
  0xf1   :  { %2259 = vrot.lane.b32.xlu1 %v2254_v38, %s4447_s24  ;;  %2257 = vrot.lane.b32.xlu0 %v2253_v6, %s4447_s24  ;;  %v4774_v57 = vpop.permute.xlu1 %402  ;;  %v4812_v38 = vpop.permute.xlu0 %538 }
  0xf2   :  { %v406_v58 = vmul.f32 %v4774_v57, %v4716_v18  ;;  %v405_v7 = vmul.f32 %v4774_v57, %v4718_v20  ;;  %v2318_v62 = vmul.f32 %v4732_v29, %v4774_v57 }
  0xf5   :  { %2272 = vrot.lane.b32.xlu1 %v2267_v40, %s4447_s24  ;;  %2270 = vrot.lane.b32.xlu0 %v2266_v41, %s4447_s24  ;;  %v608_v40 = vpop.permute.xlu0 %607 }
  0xf9   :  { %360 = vrot.lane.b32.xlu1 %v355_v42, %s4445_s23  ;;  %358 = vrot.lane.b32.xlu0 %v354_v43, %s4445_s23 }
  0xfd   :  { %377 = vrot.lane.b32.xlu1 %v372_v45, %s4445_s23  ;;  %375 = vrot.lane.b32.xlu0 %v371_v47, %s4445_s23 }
 0x101   :  { %2285 = vrot.lane.b32.xlu1 %v2280_v48, %s4445_s23  ;;  %2283 = vrot.lane.b32.xlu0 %v2279_v49, %s4445_s23 }
 0x105   :  { %2298 = vrot.lane.b32.xlu1 %v2293_v52, %s4445_s23  ;;  %2296 = vrot.lane.b32.xlu0 %v2292_v53, %s4445_s23 }
 0x109   :  { %394 = vrot.lane.b32.xlu1 %v389_v54, %s4448_s25  ;;  %392 = vrot.lane.b32.xlu0 %v388_v55, %s4448_s25 }
 0x10d   :  { %411 = vrot.lane.b32.xlu1 %v406_v58, %s4448_s25  ;;  %409 = vrot.lane.b32.xlu0 %v405_v7, %s4448_s25 }
 0x111   :  { %2311 = vrot.lane.b32.xlu1 %v2306_v59, %s4448_s25  ;;  %2309 = vrot.lane.b32.xlu0 %v2305_v61, %s4448_s25 }
 0x115   :  { %2322 = vrot.lane.b32.xlu0 %v2318_v62, %s4448_s25 }
 0x170   :  { %v230_v2 = vpop.f32.mrb[0].mxu0 }
 0x171   :  { %v570_v9 = vadd.f32 %v230_v2, %v21_v50  ;;  %v232_v10 = vpop.f32.mrb[1].mxu0 }
 0x173   :  { %v580_v17 = vmin.f32 %v570_v9, 0.0  ;;  %vm575_vm0 = vcmp.gt.f32.partialorder %v570_v9, 0.0 }
 0x174   :  { %v235_v24 = vpop.f32.mrb[2].mxu0 }
 0x175   :  { %v585_v16 = vmul.f32 1.442695, %v580_v17  ;;  %v571_v25 = vadd.f32 %v235_v24, %v22_v15  ;;  %v237_v27 = vpop.f32.mrb[3].mxu0  ;;  %v2319_v17 = vmul.f32 %v4726_v26, %v4774_v57 }
 0x177   :  { %4359 = vpow2.f32 %v585_v16  ;;  %v581_v30 = vmin.f32 %v571_v25, 0.0  ;;  %vm576_vm10 = vcmp.gt.f32.partialorder %v571_v25, 0.0 }
 0x178   :  { %v240_v32 = vpop.f32.mrb[4].mxu0 }
 0x179   :  { %v587_v33 = vmul.f32 1.442695, %v581_v30  ;;  %v572_v34 = vadd.f32 %v240_v32, %v23_v28  ;;  %v242_v35 = vpop.f32.mrb[5].mxu0  ;;  %v422_v30 = vmul.f32 %v4791_v63, %v4695_v56 }
 0x17b   :  { %4361 = vpow2.f32 %v587_v33  ;;  %v582_v36 = vmin.f32 %v572_v34, 0.0  ;;  %vm577_vm11 = vcmp.gt.f32.partialorder %v572_v34, 0.0  ;;  %v4834_v33 = vpop.permute.xlu1 %504 }
 0x17d   :  { %v589_v37 = vmul.f32 1.442695, %v582_v36  ;;  %v4838_v36 = vpop.permute.xlu0 %267 }
 0x17f   :  { %4363 = vpow2.f32 %v589_v37  ;;  %v4836_v57 = vpop.permute.xlu1 %249 }
 0x181   :  { %v4360_v6 = vpop.eup %4359 }
 0x182   :  { %v3610_v39 = vadd.f32 -1.0, %v4360_v6 }
 0x184   :  { %v600_v41 = vsel %vm575_vm0, %v570_v9, %v3610_v39  ;;  %v4841_v39 = vpop.permute.xlu1 %290  ;;  %vm1909_vm0 = vcmask 1045509  }
 0x185   :  { %v4362_v42 = vpop.eup %4361  ;;  %v630_v43 = vmul.f32 %v608_v40, %v600_v41 }
 0x186   :  { %v3611_v44 = vadd.f32 -1.0, %v4362_v42 }
 0x187   :  { %v4815_v45 = vadd.f32 %v4699_v8, %v630_v43  ;;  %v4846_v43 = vpop.permute.xlu0 %307 }
 0x188   :  { %v601_v47 = vsel %vm576_vm10, %v571_v25, %v3611_v44  ;;  %v4849_v44 = vpop.permute.xlu1 %292  ;;  %vm1911_vm10 = vcmask 1046534  }
 0x189   :  { %v4364_v48 = vpop.eup %4363  ;;  %660 = vadd.xlane.f32.xlu0 %v4815_v45  ;;  %v631_v49 = vmul.f32 %v4688_v46, %v601_v47 }
 0x18a   :  { %v3612_v51 = vadd.f32 -1.0, %v4364_v48 }
 0x18b   :  { %v4820_v52 = vadd.f32 %v4690_v3, %v631_v49  ;;  %v4855_v48 = vpop.permute.xlu0 %2231 }
 0x18c   :  { %v602_v53 = vsel %vm577_vm11, %v572_v34, %v3612_v51  ;;  %vm1913_vm11 = vcmask 1047559  }
 0x18d   :  { %662 = vadd.xlane.f32.xlu1 %v4820_v52  ;;  %v632_v54 = vmul.f32 %v4704_v11, %v602_v53 }
 0x18f   :  { %v4825_v55 = vadd.f32 %v4708_v13, %v632_v54  ;;  %v4859_v49 = vpop.permute.xlu0 %2244 }
 0x191   :  { %664 = vadd.xlane.f32.xlu0 %v4825_v55 }
 0x192   :  { %v2187_v58 = vpop.f32.mrb[6].mxu0 }
 0x193   :  { %v2189_v7 = vpop.f32.mrb[7].mxu0  ;;  %v2451_v24 = vadd.f32 %v2187_v58, %v21_v50  ;;  %v4866_v51 = vpop.permute.xlu0 %324  ;;  %v439_v58 = vmul.f32 %v4793_v0, %v4718_v20 }
 0x195   :  { %v2461_v25 = vmin.f32 %v2451_v24, 0.0  ;;  %vm2456_vm13 = vcmp.gt.f32.partialorder %v2451_v24, 0.0 }
 0x196   :  { %v2192_v59 = vpop.f32.mrb[8].mxu0 }
 0x197   :  { %v2194_v61 = vpop.f32.mrb[9].mxu0  ;;  %v2452_v10 = vadd.f32 %v2192_v59, %v22_v15  ;;  %v2466_v32 = vmul.f32 1.442695, %v2461_v25  ;;  %v4870_v54 = vpop.permute.xlu0 %341 }
 0x199   :  { %v2462_v16 = vmin.f32 %v2452_v10, 0.0  ;;  %vm2457_vm12 = vcmp.gt.f32.partialorder %v2452_v10, 0.0 }
 0x19a   :  { %v2197_v62 = vpop.f32.mrb[10].mxu0 }
 0x19b   :  { %v2453_v2 = vadd.f32 %v2197_v62, %v23_v28  ;;  %v2199_v9 = vpop.f32.mrb[11].mxu0  ;;  %v2468_v27 = vmul.f32 1.442695, %v2462_v16  ;;  %v4877_v61 = vpop.permute.xlu0 %2257 }
 0x19d   :  { %4365 = vpow2.f32 %v2468_v27  ;;  %vm2458_vm14 = vcmp.gt.f32.partialorder %v2453_v2, 0.0 }
 0x19e   :  { %2324 = vrot.lane.b32.xlu1 %v2319_v17, %s4448_s25  ;;  %4367 = vpow2.f32 %v2466_v32 }
 0x19f   :  { %v4881_v9 = vpop.permute.xlu0 %2270 }
 0x1a7   :  { %426 = vrot.lane.b32.xlu0 %v422_v30, %s4450_s26  ;;  %v4366_v28 = vpop.eup %4365 }
 0x1a8   :  { %v3691_v15 = vadd.f32 -1.0, %v4366_v28  ;;  %v4368_v34 = vpop.eup %4367 }
 0x1a9   :  { %v3690_v50 = vadd.f32 -1.0, %v4368_v34 }
 0x1aa   :  { %v2482_v35 = vsel %vm2457_vm12, %v2452_v10, %v3691_v15  ;;  %vm1940_vm12 = vcmask 130048  }
 0x1ab   :  { %v2487_v37 = vmul.f32 %v2482_v35, %v4688_v46  ;;  %v2481_v6 = vsel %vm2456_vm13, %v2451_v24, %v3690_v50  ;;  %v4857_v46 = vpop.permute.xlu1 %309  ;;  %v4885_v24 = vpop.permute.xlu0 %358 }
 0x1ac   :  { %v2486_v42 = vmul.f32 %v2481_v6, %v608_v40  ;;  %v423_v40 = vmul.f32 %v4791_v63, %v4697_v60 }
 0x1ad   :  { %v4844_v41 = vadd.f32 %v2487_v37, %v4690_v3 }
 0x1ae   :  { %v4852_v47 = vadd.f32 %v2486_v42, %v4699_v8  ;;  %v2463_v8 = vmin.f32 %v2453_v2, 0.0 }
 0x1af   :  { %v4861_v3 = vpop.permute.xlu1 %2233  ;;  %v4889_v27 = vpop.permute.xlu0 %375 }
 0x1b0   :  { %v2470_v59 = vmul.f32 1.442695, %v2463_v8 }
 0x1b2   :  { %4369 = vpow2.f32 %v2470_v59 }
 0x1b3   :  { %v4868_v53 = vpop.permute.xlu1 %2246  ;;  %v4894_v15 = vpop.permute.xlu0 %2283 }
 0x1b7   :  { %v4874_v7 = vpop.permute.xlu1 %326  ;;  %v4902_v35 = vpop.permute.xlu0 %2296 }
 0x1bb   :  { %v4879_v62 = vpop.permute.xlu1 %343  ;;  %v4906_v6 = vpop.permute.xlu0 %392 }
 0x1bc   :  { %v4370_v17 = vpop.eup %4369 }
 0x1bd   :  { %v3692_v25 = vadd.f32 -1.0, %v4370_v17 }
 0x1bf   :  { %v4883_v10 = vpop.permute.xlu1 %2259  ;;  %v2483_v30 = vsel %vm2458_vm14, %v2453_v2, %v3692_v25  ;;  %v4910_v42 = vpop.permute.xlu0 %409 }
 0x1c0   :  { %v2488_v28 = vmul.f32 %v2483_v30, %v4704_v11 }
 0x1c2   :  { %2498 = vadd.xlane.f32.xlu1 %v4844_v41  ;;  %v4897_v34 = vadd.f32 %v2488_v28, %v4708_v13 }
 0x1c3   :  { %v4887_v16 = vpop.permute.xlu1 %2272 }
 0x1c6   :  { %2496 = vadd.xlane.f32.xlu0 %v4852_v47 }
 0x1c7   :  { %v4891_v32 = vpop.permute.xlu1 %360 }
 0x1cb   :  { %v4899_v50 = vpop.permute.xlu1 %377 }
 0x1cf   :  { %v4904_v37 = vpop.permute.xlu1 %2285 }
 0x1d3   :  { %428 = vrot.lane.b32.xlu1 %v423_v40, %s4450_s26  ;;  %v4908_v2 = vpop.permute.xlu1 %2298  ;;  %v4914_v40 = vpop.permute.xlu0 %2309 }
 0x1d4   :  { %6931 = vst [vmem:[#allocation7_spill] sm:$0xff] %v4914_v40 }
 0x1d7   :  { %v4912_v11 = vpop.permute.xlu1 %394  ;;  %v4918_v8 = vpop.permute.xlu0 %2322 }
 0x1d8   :  { %6932 = vst [vmem:[#allocation8_spill] sm:$0xff] %v4918_v8 }
 0x1db   :  { %v4916_v13 = vpop.permute.xlu1 %411 }
 0x1dc   :  { %443 = vrot.lane.b32.xlu0 %v439_v58, %s4450_s26 }
 0x1df   :  { %v4920_v58 = vpop.permute.xlu1 %2311 }
 0x1fb   :  { %2500 = vadd.xlane.f32.xlu0 %v4897_v34 }
 0x216   :  { %v661_v59 = vpop.xlane.xlu0 %660 }
 0x217   :  { %v667_v17 = vmul.f32 0.0078125, %v661_v59  ;;  %v440_v59 = vmul.f32 %v4793_v0, %v4716_v18 }
 0x219   :  { %v4923_v25 = vsub.f32 %v4815_v45, %v667_v17 }
 0x21a   :  { %v663_v30 = vpop.xlane.xlu1 %662 }
 0x21b   :  { %v668_v28 = vmul.f32 0.0078125, %v663_v30  ;;  %v673_v14 = vmul.f32 %v4923_v25, %v4923_v25 }
 0x21d   :  { %v4928_v4 = vsub.f32 %v4820_v52, %v668_v28  ;;  %676 = vadd.xlane.f32.xlu1 %v673_v14  ;;  %v2331_v52 = vmul.f32 %v4722_v23, %v4791_v63  ;;  %v2332_v14 = vmul.f32 %v4720_v22, %v4791_v63  ;;  %v457_v63 = vmul.f32 %v4795_v5, %v4697_v60 }
 0x21e   :  { %v665_v19 = vpop.xlane.xlu0 %664  ;;  %v4961_v17 = vpop.permute.xlu1 %2324 }
 0x21f   :  { %v669_v21 = vmul.f32 0.0078125, %v665_v19  ;;  %v674_v8 = vmul.f32 %v4928_v4, %v4928_v4  ;;  %v2344_v19 = vmul.f32 %v4732_v29, %v4793_v0  ;;  %6933 = vst [vmem:[#allocation9_spill] sm:$0xff] %v4961_v17 }
 0x221   :  { %v4933_v40 = vsub.f32 %v4825_v55, %v669_v21  ;;  %678 = vadd.xlane.f32.xlu0 %v674_v8  ;;  %v2345_v21 = vmul.f32 %v4726_v26, %v4793_v0  ;;  %v456_v55 = vmul.f32 %v4795_v5, %v4695_v56  ;;  %v473_v8 = vmul.f32 %v4797_v1, %v4718_v20 }
 0x222   :  { %v4963_v0 = vpop.permute.xlu0 %426 }
 0x223   :  { %v675_v45 = vmul.f32 %v4933_v40, %v4933_v40 }
 0x225   :  { %680 = vadd.xlane.f32.xlu1 %v675_v45 }
 0x236   :  { %445 = vrot.lane.b32.xlu1 %v440_v59, %s4450_s26 }
 0x237   :  { %2335 = vrot.lane.b32.xlu0 %v2331_v52, %s4450_s26 }
 0x23a   :  { %2337 = vrot.lane.b32.xlu1 %v2332_v14, %s4450_s26 }
 0x23b   :  { %2348 = vrot.lane.b32.xlu0 %v2344_v19, %s4450_s26 }
 0x23e   :  { %2350 = vrot.lane.b32.xlu1 %v2345_v21, %s4450_s26 }
 0x23f   :  { %460 = vrot.lane.b32.xlu0 %v456_v55, %s4451_s27  ;;  %v2357_v55 = vmul.f32 %v4722_v23, %v4795_v5 }
 0x242   :  { %462 = vrot.lane.b32.xlu1 %v457_v63, %s4451_s27  ;;  %v507_v63 = vmul.f32 %v4834_v33, %v4718_v20 }
 0x243   :  { %477 = vrot.lane.b32.xlu0 %v473_v8, %s4451_s27  ;;  %v711_v8 = vld [vmem:[%s6906_s4] sm:$0xff] }
 0x244   :  { %3903 = vmatprep.mubr.msk.f32.mxu1 %vm775_vm15, %v711_v8  ;;  %4005 = vmatprep.mubr.msk.f32.mxu0 %vm775_vm15, %v711_v8  ;;  %v474_v8 = vmul.f32 %v4797_v1, %v4716_v18 }
 0x24f   :  { %v2499_v30 = vpop.xlane.xlu1 %2498 }
 0x250   :  { %v2503_v28 = vmul.f32 0.0078125, %v2499_v30 }
 0x252   :  { %v4966_v59 = vsub.f32 %v4844_v41, %v2503_v28  ;;  %v2370_v41 = vmul.f32 %v4732_v29, %v4797_v1  ;;  %v2383_v28 = vmul.f32 %v4722_v23, %v4802_v12 }
 0x253   :  { %v2497_v45 = vpop.xlane.xlu0 %2496 }
 0x254   :  { %v2502_v52 = vmul.f32 0.0078125, %v2497_v45  ;;  %v2509_v19 = vmul.f32 %v4966_v59, %v4966_v59 }
 0x256   :  { %v4969_v14 = vsub.f32 %v4852_v47, %v2502_v52  ;;  %v490_v47 = vmul.f32 %v4802_v12, %v4695_v56 }
 0x257   :  { %v4989_v30 = vpop.permute.xlu0 %443 }
 0x258   :  { %v2508_v21 = vmul.f32 %v4969_v14, %v4969_v14  ;;  %6934 = vst [vmem:[#allocation10_spill] sm:$0xff] %v4989_v30 }
 0x262   :  { %2513 = vadd.xlane.f32.xlu0 %v2509_v19  ;;  %v2396_v19 = vmul.f32 %v4732_v29, %v4834_v33 }
 0x266   :  { %2511 = vadd.xlane.f32.xlu1 %v2508_v21 }
 0x278   :  { %2361 = vrot.lane.b32.xlu0 %v2357_v55, %s4451_s27 }
 0x27c   :  { %2374 = vrot.lane.b32.xlu0 %v2370_v41, %s4451_s27  ;;  %v524_v41 = vmul.f32 %v4810_v31, %v4695_v56 }
 0x280   :  { %494 = vrot.lane.b32.xlu0 %v490_v47, %s4452_s28  ;;  %v541_v47 = vmul.f32 %v4812_v38, %v4718_v20 }
 0x284   :  { %511 = vrot.lane.b32.xlu0 %v507_v63, %s4452_s28  ;;  %v2422_v63 = vmul.f32 %v4732_v29, %v4812_v38 }
 0x288   :  { %2387 = vrot.lane.b32.xlu0 %v2383_v28, %s4452_s28  ;;  %v2501_v45 = vpop.xlane.xlu0 %2500  ;;  %v2358_v28 = vmul.f32 %v4720_v22, %v4795_v5  ;;  %v508_v5 = vmul.f32 %v4834_v33, %v4716_v18 }
 0x289   :  { %v2504_v52 = vmul.f32 0.0078125, %v2501_v45  ;;  %v5023_v45 = vpop.permute.xlu1 %428 }
 0x28b   :  { %v5000_v21 = vsub.f32 %v4897_v34, %v2504_v52  ;;  %v2409_v34 = vmul.f32 %v4722_v23, %v4810_v31  ;;  %v2371_v52 = vmul.f32 %v4726_v26, %v4797_v1  ;;  %v2384_v1 = vmul.f32 %v4720_v22, %v4802_v12 }
 0x28c   :  { %2400 = vrot.lane.b32.xlu0 %v2396_v19, %s4452_s28 }
 0x28d   :  { %v2510_v55 = vmul.f32 %v5000_v21, %v5000_v21 }
 0x28f   :  { %2515 = vadd.xlane.f32.xlu1 %v2510_v55  ;;  %v491_v55 = vmul.f32 %v4802_v12, %v4697_v60 }
 0x290   :  { %528 = vrot.lane.b32.xlu0 %v524_v41, %s4453_s29 }
 0x294   :  { %545 = vrot.lane.b32.xlu0 %v541_v47, %s4453_s29 }
 0x298   :  { %2413 = vrot.lane.b32.xlu0 %v2409_v34, %s4453_s29 }
 0x29c   :  { %2426 = vrot.lane.b32.xlu0 %v2422_v63, %s4453_s29 }
 0x2a0   :  { %479 = vrot.lane.b32.xlu1 %v474_v8, %s4451_s27 }
 0x2a4   :  { %2363 = vrot.lane.b32.xlu1 %v2358_v28, %s4451_s27  ;;  %v2397_v28 = vmul.f32 %v4726_v26, %v4834_v33 }
 0x2a8   :  { %2376 = vrot.lane.b32.xlu1 %v2371_v52, %s4451_s27 }
 0x2aa   :  { %v677_v19 = vpop.xlane.xlu1 %676 }
 0x2ab   :  { %v682_v41 = vadd.f32 1e-08, %v677_v19  ;;  %v525_v19 = vmul.f32 %v4810_v31, %v4697_v60 }
 0x2ac   :  { %496 = vrot.lane.b32.xlu1 %v491_v55, %s4452_s28 }
 0x2ad   :  { %4371 = vrsqrt.f32 %v682_v41 }
 0x2ae   :  { %v679_v47 = vpop.xlane.xlu0 %678 }
 0x2af   :  { %v683_v34 = vadd.f32 1e-08, %v679_v47  ;;  %v542_v47 = vmul.f32 %v4812_v38, %v4716_v18 }
 0x2b0   :  { %513 = vrot.lane.b32.xlu1 %v508_v5, %s4452_s28 }
 0x2b1   :  { %4373 = vrsqrt.f32 %v683_v34 }
 0x2b2   :  { %v681_v63 = vpop.xlane.xlu1 %680 }
 0x2b3   :  { %v684_v8 = vadd.f32 1e-08, %v681_v63  ;;  %v2410_v63 = vmul.f32 %v4720_v22, %v4810_v31  ;;  %v5065_v31 = vld [vmem:[%s6906_s4 + $0x10] sm:$0xff] }
 0x2b4   :  { %2389 = vrot.lane.b32.xlu1 %v2384_v1, %s4452_s28  ;;  %v5075_v1 = vld [vmem:[%s6906_s4 + $0x20] sm:$0xff] }
 0x2b5   :  { %4375 = vrsqrt.f32 %v684_v8  ;;  %v5088_v8 = vpop.permute.xlu0 %2335 }
 0x2b6   :  { %6935 = vst [vmem:[#allocation11_spill] sm:$0xff] %v5088_v8 }
 0x2b7   :  { %v4372_v52 = vpop.eup %4371 }
 0x2b8   :  { %2402 = vrot.lane.b32.xlu1 %v2397_v28, %s4452_s28  ;;  %v688_v41 = vmul.f32 %v4372_v52, %v4923_v25  ;;  %v5054_v25 = vld [vmem:[%s6906_s4 + $0x8] sm:$0xff]  ;;  %v5093_v28 = vld [vmem:[%s6906_s4 + $0x30] sm:$0xff]  ;;  %v5102_v52 = vld [vmem:[%s6906_s4 + $0x38] sm:$0xff] }
 0x2b9   :  { %6936 = vst [vmem:[#allocation12_spill] sm:$0xff] %v5102_v52 }
 0x2bb   :  { %v4374_v55 = vpop.eup %4373 }
 0x2bc   :  { %530 = vrot.lane.b32.xlu1 %v525_v19, %s4453_s29  ;;  %v689_v12 = vmul.f32 %v4374_v55, %v4928_v4  ;;  %v2423_v4 = vmul.f32 %v4726_v26, %v4812_v38  ;;  %v5086_v38 = vld [vmem:[%s6906_s4 + $0x28] sm:$0xff]  ;;  %v5104_v19 = vpop.permute.xlu1 %445  ;;  %v5109_v55 = vld [vmem:[%s6906_s4 + $0x40] sm:$0xff] }
 0x2bd   :  { %6937 = vst [vmem:[#allocation13_spill] sm:$0xff] %v5104_v19  ;;  %6938 = vst [vmem:[#allocation14_spill] sm:$0xff] %v5109_v55 }
 0x2be   :  { %v4125_v5 = vpack.c.bf16 %v689_v12, %v688_v41  ;;  %v5111_v41 = vpop.permute.xlu0 %2348  ;;  %v5120_v12 = vld [vmem:[%s6906_s4 + $0x48] sm:$0xff] }
 0x2bf   :  { %v4376_v34 = vpop.eup %4375  ;;  %6939 = vst [vmem:[#allocation15_spill] sm:$0xff] %v5111_v41  ;;  %6940 = vst [vmem:[#allocation16_spill] sm:$0xff] %v5120_v12 }
 0x2c0   :  { %547 = vrot.lane.b32.xlu1 %v542_v47, %s4453_s29  ;;  %4126 = vmatprep.subr.bf16.mxu1 %v4125_v5  ;;  %v690_v33 = vmul.f32 %v4376_v34, %v4933_v40  ;;  %v5070_v40 = vld [vmem:[%s6906_s4 + $0x18] sm:$0xff]  ;;  %v5125_v47 = vld [vmem:[%s6906_s4 + $0x50] sm:$0xff] }
 0x2c1   :  { %4128 = vmatpush3.bf16.msra.mxu1 %v4125_v5  ;;  %6941 = vst [vmem:[#allocation17_spill] sm:$0xff] %v5125_v47  ;;  %v5127_v5 = vpop.permute.xlu1 %2337  ;;  %v5136_v34 = vld [vmem:[%s6906_s4 + $0x58] sm:$0xff] }
 0x2c2   :  { %3901 = vmatprep.subr.mxu1 %v690_v33  ;;  %6942 = vst [vmem:[#allocation18_spill] sm:$0xff] %v5127_v5  ;;  %6943 = vst [vmem:[#allocation19_spill] sm:$0xff] %v5136_v34 }
 0x2c4   :  { %2415 = vrot.lane.b32.xlu1 %v2410_v63, %s4453_s29  ;;  %v5143_v63 = vld [vmem:[%s6906_s4 + $0x60] sm:$0xff] }
 0x2c5   :  { %3902 = vmatpush3.msra.mxu1 %v690_v33  ;;  %v5138_v33 = vpop.permute.xlu0 %460  ;;  %6944 = vst [vmem:[#allocation20_spill] sm:$0xff] %v5143_v63 }
 0x2c6   :  { %3904 = vmatmul.mubr.msk.f32.vlgmr.msra.gmra.mrb[0].mxu1 %vm775_vm15, %v5054_v25 }
 0x2c7   :  { %3906 = vmatprep.mubr.msk.f32.mxu1 %vm775_vm15, %v5065_v31 }
 0x2c8   :  { %2428 = vrot.lane.b32.xlu1 %v2423_v4, %s4453_s29  ;;  %v5152_v4 = vld [vmem:[%s6906_s4 + $0x68] sm:$0xff] }
 0x2c9   :  { %6945 = vst [vmem:[#allocation21_spill] sm:$0xff] %v5152_v4  ;;  %v5156_v41 = vpop.permute.xlu0 %477 }
 0x2ca   :  { %3907 = vmatmul.mubr.msk.f32.gmra.mrb[2].mxu1 %vm775_vm15, %v5070_v40  ;;  %6947 = vst [vmem:[#allocation23_spill] sm:$0xff] %v5156_v41 }
 0x2cb   :  { %3909 = vmatprep.mubr.msk.f32.mxu1 %vm775_vm15, %v5075_v1 }
 0x2ce   :  { %3910 = vmatmul.mubr.msk.f32.gmra.mrb[4].mxu1 %vm775_vm15, %v5086_v38 }
 0x2cf   :  { %3912 = vmatprep.mubr.msk.f32.mxu1 %vm775_vm15, %v5093_v28 }
 0x2d2   :  { %3913 = vmatmul.mubr.msk.f32.gmra.mrb[6].mxu1 %vm775_vm15, %v5102_v52 }
 0x2d3   :  { %3915 = vmatprep.mubr.msk.f32.mxu1 %vm775_vm15, %v5109_v55 }
 0x2d6   :  { %3916 = vmatmul.mubr.msk.f32.gmra.mrb[8].mxu1 %vm775_vm15, %v5120_v12 }
 0x2d7   :  { %3918 = vmatprep.mubr.msk.f32.mxu1 %vm775_vm15, %v5125_v47  ;;  %v5154_v47 = vpop.permute.xlu1 %2350 }
 0x2d8   :  { %6946 = vst [vmem:[#allocation22_spill] sm:$0xff] %v5154_v47 }
 0x2da   :  { %3919 = vmatmul.mubr.msk.f32.gmra.mrb[10].mxu1 %vm775_vm15, %v5136_v34 }
 0x2db   :  { %3921 = vmatprep.mubr.msk.f32.mxu1 %vm775_vm15, %v5143_v63  ;;  %v5160_v12 = vpop.permute.xlu1 %462 }
 0x2de   :  { %3922 = vmatmul.mubr.msk.f32.gmra.mrb[12].mxu1 %vm775_vm15, %v5152_v4 }
 0x2ef   :  { %v2514_v8 = vpop.xlane.xlu0 %2513 }
 0x2f0   :  { %v2518_v5 = vadd.f32 1e-08, %v2514_v8 }
 0x2f2   :  { %4377 = vrsqrt.f32 %v2518_v5 }
 0x2f3   :  { %v2512_v34 = vpop.xlane.xlu1 %2511  ;;  %v5164_v4 = vpop.permute.xlu0 %2361 }
 0x2f4   :  { %v2517_v17 = vadd.f32 1e-08, %v2512_v34 }
 0x2f6   :  { %4379 = vrsqrt.f32 %v2517_v17 }
 0x2f7   :  { %v5166_v41 = vpop.permute.xlu0 %2374 }
 0x2f8   :  { %6948 = vst [vmem:[#allocation24_spill] sm:$0xff] %v5166_v41 }
 0x2fb   :  { %v5168_v5 = vpop.permute.xlu0 %494 }
 0x2fc   :  { %v4378_v63 = vpop.eup %4377 }
 0x2fd   :  { %v2524_v30 = vmul.f32 %v4378_v63, %v4966_v59  ;;  %v261_v59 = vmul.f32 %v4697_v60, %v4836_v57 }
 0x2ff   :  { %v5172_v34 = vpop.permute.xlu0 %511  ;;  %v298_v60 = vadd.f32 %v4849_v44, %v261_v59 }
 0x300   :  { %v4380_v55 = vpop.eup %4379 }
 0x301   :  { %v2523_v52 = vmul.f32 %v4380_v55, %v4969_v14  ;;  %v278_v55 = vmul.f32 %v4718_v20, %v4838_v36 }
 0x303   :  { %v4153_v47 = vpack.c.bf16 %v2524_v30, %v2523_v52  ;;  %v260_v30 = vmul.f32 %v4695_v56, %v4836_v57  ;;  %v294_v52 = vsel %vm40_vm1, %v4841_v39, %v4849_v44  ;;  %v311_v56 = vsel %vm40_vm1, %v4846_v43, %v4857_v46  ;;  %v5197_v20 = vpop.permute.xlu0 %2387 }
 0x304   :  { %v2211_v39 = vmul.f32 %v4722_v23, %v4836_v57  ;;  %v2224_v44 = vmul.f32 %v4726_v26, %v4838_v36  ;;  %v328_v43 = vsel %vm47_vm3, %v4866_v51, %v4874_v7  ;;  %v314_v59 = vadd.f32 %v311_v56, %v278_v55 }
 0x305   :  { %4154 = vmatprep.subr.bf16.mxu0 %v4153_v47  ;;  %4157 = vmatprep.subr.bf16.mxu1 %v4153_v47  ;;  %v297_v41 = vadd.f32 %v294_v52, %v260_v30  ;;  %v345_v26 = vsel %vm47_vm3, %v4870_v54, %v4879_v62 }
 0x306   :  { %4156 = vmatpush3.bf16.msra.mxu0 %v4153_v47  ;;  %4159 = vmatpush3.bf16.msra.mxu1 %v4153_v47  ;;  %v2212_v47 = vmul.f32 %v4720_v22, %v4836_v57  ;;  %v2235_v22 = vsel %vm40_vm1, %v4855_v48, %v4861_v3  ;;  %v332_v48 = vadd.f32 %v4874_v7, %v298_v60 }
 0x307   :  { %v2252_v54 = vadd.f32 %v4868_v53, %v2224_v44  ;;  %v348_v7 = vadd.f32 %v345_v26, %v314_v59  ;;  %v5233_v30 = vpop.permute.xlu0 %2400  ;;  %v6953_v26 = vld [vmem:[#allocation12_spill] sm:$0xff] }
 0x308   :  { %v2239_v57 = vadd.f32 %v4861_v3, %v2212_v47  ;;  %v2261_v3 = vsel %vm47_vm3, %v4877_v61, %v4883_v10  ;;  %v2274_v61 = vsel %vm47_vm3, %v4881_v9, %v4887_v16  ;;  %v5255_v9 = vld [vmem:[%s6906_s4 + $0x78] sm:$0xff] }
 0x30a   :  { %v2265_v52 = vadd.f32 %v4883_v10, %v2239_v57  ;;  %v2287_v10 = vsel %vm54_vm2, %v4894_v15, %v4904_v37 }
 0x30b   :  { %v529_v56 = vpop.permute.xlu0 %528 }
 0x30c   :  { %v2291_v15 = vadd.f32 %v4904_v37, %v2265_v52  ;;  %v413_v37 = vsel %vm61_vm4, %v4910_v42, %v4916_v13  ;;  %v464_v42 = vsel %vm75_vm6, %v5138_v33, %v5160_v12  ;;  %v6959_v52 = vld [vmem:[#allocation11_spill] sm:$0xff] }
 0x31c   :  { %v2516_v8 = vpop.xlane.xlu1 %2515 }
 0x31d   :  { %v2519_v19 = vadd.f32 1e-08, %v2516_v8 }
 0x31f   :  { %4381 = vrsqrt.f32 %v2519_v19  ;;  %v279_v19 = vmul.f32 %v4716_v18, %v4838_v36 }
 0x320   :  { %v5170_v17 = vpop.permute.xlu1 %479 }
 0x321   :  { %v315_v23 = vadd.f32 %v4857_v46, %v279_v19  ;;  %v331_v46 = vadd.f32 %v328_v43, %v297_v41  ;;  %v2278_v19 = vadd.f32 %v4887_v16, %v2252_v54  ;;  %v5284_v16 = vld [vmem:[%s6906_s4 + $0x80] sm:$0xff] }
 0x323   :  { %v349_v41 = vadd.f32 %v4879_v62, %v315_v23  ;;  %v6952_v23 = vld [vmem:[#allocation10_spill] sm:$0xff] }
 0x324   :  { %v5174_v14 = vpop.permute.xlu1 %2363 }
 0x328   :  { %v5189_v63 = vpop.permute.xlu1 %2376 }
 0x329   :  { %6949 = vst [vmem:[#allocation25_spill] sm:$0xff] %v5189_v63  ;;  %v4382_v8 = vpop.eup %4381  ;;  %v2223_v63 = vmul.f32 %v4732_v29, %v4838_v36  ;;  %v2248_v29 = vsel %vm40_vm1, %v4859_v49, %v4868_v53  ;;  %v2238_v36 = vadd.f32 %v2235_v22, %v2211_v39  ;;  %v362_v49 = vsel %vm54_vm2, %v4885_v24, %v4891_v32  ;;  %v5248_v53 = vld [vmem:[%s6906_s4 + $0x70] sm:$0xff] }
 0x32a   :  { %v2525_v18 = vmul.f32 %v4382_v8, %v5000_v21  ;;  %v366_v24 = vadd.f32 %v4891_v32, %v332_v48  ;;  %v365_v55 = vadd.f32 %v362_v49, %v331_v46  ;;  %3924 = vmatprep.mubr.msk.f32.mxu1 %vm775_vm15, %v5248_v53  ;;  %v2304_v22 = vadd.f32 %v4908_v2, %v2278_v19  ;;  %v6956_v49 = vld [vmem:[#allocation9_spill] sm:$0xff] }
 0x32b   :  { %v2251_v51 = vadd.f32 %v2248_v29, %v2223_v63  ;;  %v2264_v62 = vadd.f32 %v2261_v3, %v2238_v36  ;;  %3925 = vmatmul.mubr.msk.f32.gmra.mrb[14].mxu1 %vm775_vm15, %v5255_v9  ;;  %v6954_v36 = vld [vmem:[#allocation23_spill] sm:$0xff]  ;;  %v6955_v3 = vld [vmem:[#allocation14_spill] sm:$0xff] }
 0x32c   :  { %v5212_v21 = vpop.permute.xlu1 %496  ;;  %4003 = vmatprep.subr.mxu0 %v2525_v18  ;;  %4158 = vmatprep.subr.mxu1 %v2525_v18  ;;  %v400_v8 = vadd.f32 %v4912_v11, %v366_v24  ;;  %v481_v46 = vsel %vm75_vm6, %v6954_v36, %v5170_v17  ;;  %v546_v24 = vpop.permute.xlu0 %545  ;;  %v2330_v19 = vadd.f32 %v6956_v49, %v2304_v22  ;;  %v5392_v22 = vld [vmem:[%s6906_s4 + $0xb0] sm:$0xff] }
 0x32d   :  { %4004 = vmatpush3.msra.mxu0 %v2525_v18  ;;  %4160 = vmatpush3.msra.mxu1 %v2525_v18  ;;  %v2277_v32 = vadd.f32 %v2274_v61, %v2251_v51  ;;  %v498_v29 = vsel %vm82_vm7, %v5168_v5, %v5212_v21  ;;  %v6957_v51 = vld [vmem:[#allocation8_spill] sm:$0xff] }
 0x32e   :  { %4006 = vmatmul.mubr.msk.f32.vlgmr.msra.gmra.mrb[12].mxu0 %vm775_vm15, %v5054_v25  ;;  %3927 = vmatprep.mubr.msk.f32.mxu1 %vm775_vm15, %v5284_v16  ;;  %v434_v39 = vadd.f32 %v5023_v45, %v400_v8  ;;  %v2326_v54 = vsel %vm61_vm4, %v6957_v51, %v6956_v49  ;;  %v736_v51 = vld [vmem:[%s6906_s4 + $0xc8] sm:$0xff] }
 0x32f   :  { %4008 = vmatprep.mubr.msk.f32.mxu0 %vm775_vm15, %v5065_v31  ;;  %v379_v31 = vsel %vm54_vm2, %v4889_v27, %v4899_v50  ;;  %v396_v27 = vsel %vm61_vm4, %v4906_v6, %v4912_v11  ;;  %v2300_v6 = vsel %vm54_vm2, %v4902_v35, %v4908_v2  ;;  %v5294_v35 = vld [vmem:[%s6906_s4 + $0x88] sm:$0xff]  ;;  %v6950_v11 = vld [vmem:[#allocation7_spill] sm:$0xff] }
 0x330   :  { %v5235_v25 = vpop.permute.xlu1 %513  ;;  %v382_v47 = vadd.f32 %v379_v31, %v348_v7  ;;  %v399_v60 = vadd.f32 %v396_v27, %v365_v55  ;;  %3928 = vmatmul.mubr.msk.f32.gmra.mrb[16].mxu1 %vm775_vm15, %v5294_v35  ;;  %v2303_v18 = vadd.f32 %v2300_v6, %v2277_v32  ;;  %v468_v33 = vadd.f32 %v5160_v12, %v434_v39  ;;  %v5323_v2 = vld [vmem:[%s6906_s4 + $0x90] sm:$0xff]  ;;  %v5331_v12 = vld [vmem:[%s6906_s4 + $0x98] sm:$0xff]  ;;  %v5358_v32 = vld [vmem:[%s6906_s4 + $0xa0] sm:$0xff] }
 0x331   :  { %3930 = vmatprep.mubr.msk.f32.mxu1 %vm775_vm15, %v5323_v2  ;;  %v515_v55 = vsel %vm82_vm7, %v5172_v34, %v5235_v25  ;;  %v6960_v34 = vld [vmem:[#allocation16_spill] sm:$0xff]  ;;  %v2365_v6 = vsel %vm75_vm6, %v5164_v4, %v5174_v14 }
 0x332   :  { %4009 = vmatmul.mubr.msk.f32.gmra.mrb[14].mxu0 %vm775_vm15, %v5070_v40  ;;  %v383_v40 = vadd.f32 %v4899_v50, %v349_v41  ;;  %v2290_v50 = vadd.f32 %v2287_v10, %v2264_v62  ;;  %v416_v59 = vadd.f32 %v413_v37, %v382_v47  ;;  %v6958_v41 = vld [vmem:[#allocation18_spill] sm:$0xff] }
 0x333   :  { %4011 = vmatprep.mubr.msk.f32.mxu0 %vm775_vm15, %v5075_v1  ;;  %v430_v1 = vsel %vm68_vm5, %v4963_v0, %v5023_v45  ;;  %v2313_v0 = vsel %vm61_vm4, %v6950_v11, %v4920_v58  ;;  %v6951_v45 = vld [vmem:[#allocation13_spill] sm:$0xff]  ;;  %v2339_v61 = vsel %vm68_vm5, %v6959_v52, %v6958_v41 }
 0x334   :  { %v5271_v63 = vpop.permute.xlu1 %2389  ;;  %v433_v44 = vadd.f32 %v430_v1, %v399_v60  ;;  %v447_v57 = vsel %vm68_vm5, %v6952_v23, %v6951_v45  ;;  %3931 = vmatmul.mubr.msk.f32.gmra.mrb[18].mxu1 %vm775_vm15, %v5331_v12  ;;  %v6962_v60 = vld [vmem:[#allocation15_spill] sm:$0xff] }
 0x335   :  { %v450_v7 = vadd.f32 %v447_v57, %v416_v59  ;;  %3933 = vmatprep.mubr.msk.f32.mxu1 %vm775_vm15, %v5358_v32  ;;  %v6965_v57 = vld [vmem:[#allocation25_spill] sm:$0xff] }
 0x336   :  { %4012 = vmatmul.mubr.msk.f32.gmra.mrb[16].mxu0 %vm775_vm15, %v5086_v38  ;;  %v417_v38 = vadd.f32 %v4916_v13, %v383_v40  ;;  %v2316_v13 = vadd.f32 %v2313_v0, %v2290_v50  ;;  %v467_v48 = vadd.f32 %v464_v42, %v433_v44  ;;  %v6961_v50 = vld [vmem:[#allocation22_spill] sm:$0xff]  ;;  %v6963_v0 = vld [vmem:[#allocation17_spill] sm:$0xff]  ;;  %v2414_v44 = vpop.permute.xlu0 %2413 }
 0x337   :  { %4014 = vmatprep.mubr.msk.f32.mxu0 %vm775_vm15, %v5093_v28  ;;  %v2317_v28 = vadd.f32 %v4920_v58, %v2291_v15  ;;  %v502_v58 = vadd.f32 %v5212_v21, %v468_v33  ;;  %v484_v47 = vadd.f32 %v481_v46, %v450_v7  ;;  %v2352_v37 = vsel %vm68_vm5, %v6962_v60, %v6961_v50  ;;  %v6966_v33 = vld [vmem:[#allocation24_spill] sm:$0xff]  ;;  %v756_v60 = vld [vmem:[%s6906_s4 + $0x168] sm:$0xff] }
 0x338   :  { %v5311_v43 = vpop.permute.xlu1 %2402  ;;  %v451_v5 = vadd.f32 %v6951_v45, %v417_v38  ;;  %v501_v31 = vadd.f32 %v498_v29, %v467_v48  ;;  %v2342_v1 = vadd.f32 %v2339_v61, %v2316_v13  ;;  %v2329_v38 = vadd.f32 %v2326_v54, %v2303_v18  ;;  %v737_v54 = vld [vmem:[%s6906_s4 + $0xd0] sm:$0xff] }
 0x339   :  { %v2343_v15 = vadd.f32 %v6958_v41, %v2317_v28  ;;  %v2356_v23 = vadd.f32 %v6961_v50, %v2330_v19  ;;  %v2378_v18 = vsel %vm75_vm6, %v6966_v33, %v6965_v57  ;;  %v2404_v36 = vsel %vm82_vm7, %v5233_v30, %v5311_v43  ;;  %v6968_v30 = vld [vmem:[#allocation21_spill] sm:$0xff]  ;;  %v746_v19 = vld [vmem:[%s6906_s4 + $0x118] sm:$0xff] }
 0x33a   :  { %4015 = vmatmul.mubr.msk.f32.gmra.mrb[18].mxu0 %vm775_vm15, %v6953_v26  ;;  %v485_v21 = vadd.f32 %v5170_v17, %v451_v5  ;;  %v5366_v17 = vld [vmem:[%s6906_s4 + $0xa8] sm:$0xff]  ;;  %v2368_v59 = vadd.f32 %v2365_v6, %v2342_v1  ;;  %v2355_v13 = vadd.f32 %v2352_v37, %v2329_v38  ;;  %v6967_v26 = vld [vmem:[#allocation20_spill] sm:$0xff]  ;;  %v2427_v41 = vpop.permute.xlu0 %2426  ;;  %v757_v37 = vld [vmem:[%s6906_s4 + $0x170] sm:$0xff]  ;;  %vm1620_vm5 = vcmask 130112  }
 0x33b   :  { %4017 = vmatprep.mubr.msk.f32.mxu0 %vm775_vm15, %v6955_v3  ;;  %3934 = vmatmul.mubr.msk.f32.gmra.mrb[20].mxu1 %vm775_vm15, %v5366_v17  ;;  %v2369_v4 = vadd.f32 %v5174_v14, %v2343_v15  ;;  %v5399_v14 = vld [vmem:[%s6906_s4 + $0xb8] sm:$0xff]  ;;  %v2382_v5 = vadd.f32 %v6965_v57, %v2356_v23  ;;  %v751_v15 = vld [vmem:[%s6906_s4 + $0x140] sm:$0xff]  ;;  %v752_v6 = vld [vmem:[%s6906_s4 + $0x148] sm:$0xff]  ;;  %vm1901_vm6 = vcmask 1041409  }
 0x33c   :  { %v531_v62 = vpop.permute.xlu1 %530  ;;  %v519_v8 = vadd.f32 %v5235_v25, %v485_v21  ;;  %v2391_v25 = vsel %vm82_vm7, %v5197_v20, %v5271_v63  ;;  %3936 = vmatprep.mubr.msk.f32.mxu1 %vm775_vm15, %v5392_v22  ;;  %v6964_v20 = vld [vmem:[#allocation19_spill] sm:$0xff]  ;;  %v2381_v3 = vadd.f32 %v2378_v18, %v2355_v13  ;;  %v30_v21 = vld [vmem:[%s6905_s3 + $0x48] sm:$0xff]  ;;  %v755_v50 = vld [vmem:[%s6906_s4 + $0x160] sm:$0xff]  ;;  %vm1903_vm7 = vcmask 1042434  }
 0x33d   :  { %v532_v10 = vsel %vm89_vm8, %v529_v56, %v531_v62  ;;  %v536_v27 = vadd.f32 %v531_v62, %v502_v58  ;;  %v518_v56 = vadd.f32 %v515_v55, %v484_v47  ;;  %v2395_v29 = vadd.f32 %v5271_v63, %v2369_v4  ;;  %v735_v58 = vld [vmem:[%s6906_s4 + $0xc0] sm:$0xff]  ;;  %v740_v55 = vld [vmem:[%s6906_s4 + $0xe8] sm:$0xff]  ;;  %v754_v1 = vld [vmem:[%s6906_s4 + $0x158] sm:$0xff] }
 0x33e   :  { %v535_v40 = vadd.f32 %v532_v10, %v501_v31  ;;  %4018 = vmatmul.mubr.msk.f32.gmra.mrb[20].mxu0 %vm775_vm15, %v6960_v34  ;;  %v2394_v28 = vadd.f32 %v2391_v25, %v2368_v59  ;;  %v2408_v7 = vadd.f32 %v5311_v43, %v2382_v5  ;;  %v2407_v52 = vadd.f32 %v2404_v36, %v2381_v3  ;;  %v742_v10 = vld [vmem:[%s6906_s4 + $0xf8] sm:$0xff]  ;;  %v747_v47 = vld [vmem:[%s6906_s4 + $0x120] sm:$0xff]  ;;  %v761_v4 = vld [vmem:[%s6906_s4 + $0x190] sm:$0xff] }
 0x33f   :  { %558 = vrot.lane.b32.xlu1 %v536_v27, %s4448_s25  ;;  %4020 = vmatprep.mubr.msk.f32.mxu0 %vm775_vm15, %v6963_v0  ;;  %v745_v27 = vld [vmem:[%s6906_s4 + $0x110] sm:$0xff]  ;;  %v750_v34 = vld [vmem:[%s6906_s4 + $0x138] sm:$0xff]  ;;  %v760_v0 = vld [vmem:[%s6906_s4 + $0x188] sm:$0xff] }
 0x340   :  { %v548_v11 = vpop.permute.xlu1 %547  ;;  %556 = vrot.lane.b32.xlu0 %v535_v40, %s4448_s25  ;;  %3937 = vmatmul.mubr.msk.f32.gmra.mrb[22].mxu1 %vm775_vm15, %v5399_v14  ;;  %v748_v40 = vld [vmem:[%s6906_s4 + $0x128] sm:$0xff]  ;;  %v762_v25 = vld [vmem:[%s6906_s4 + $0x198] sm:$0xff]  ;;  %v773_v57 = vld [vmem:[%s6906_s4 + $0x1f0] sm:$0xff] }
 0x341   :  { %v549_v39 = vsel %vm89_vm8, %v546_v24, %v548_v11  ;;  %v553_v42 = vadd.f32 %v548_v11, %v519_v8  ;;  %3939 = vmatprep.mubr.msk.f32.mxu1 %vm775_vm15, %v735_v58  ;;  %v738_v24 = vld [vmem:[%s6906_s4 + $0xd8] sm:$0xff]  ;;  %v753_v8 = vld [vmem:[%s6906_s4 + $0x150] sm:$0xff]  ;;  %v759_v11 = vld [vmem:[%s6906_s4 + $0x180] sm:$0xff] }
 0x342   :  { %v552_v45 = vadd.f32 %v549_v39, %v518_v56  ;;  %4021 = vmatmul.mubr.msk.f32.gmra.mrb[22].mxu0 %vm775_vm15, %v6964_v20  ;;  %v758_v56 = vld [vmem:[%s6906_s4 + $0x178] sm:$0xff]  ;;  %v763_v39 = vld [vmem:[%s6906_s4 + $0x1a0] sm:$0xff]  ;;  %v768_v59 = vld [vmem:[%s6906_s4 + $0x1c8] sm:$0xff] }
 0x343   :  { %566 = vrot.lane.b32.xlu1 %v553_v42, %s4448_s25  ;;  %4023 = vmatprep.mubr.msk.f32.mxu0 %vm775_vm15, %v6967_v26  ;;  %v764_v42 = vld [vmem:[%s6906_s4 + $0x1a8] sm:$0xff]  ;;  %v766_v38 = vld [vmem:[%s6906_s4 + $0x1b8] sm:$0xff]  ;;  %v771_v20 = vld [vmem:[%s6906_s4 + $0x1e0] sm:$0xff] }
 0x344   :  { %v2416_v48 = vpop.permute.xlu1 %2415  ;;  %564 = vrot.lane.b32.xlu0 %v552_v45, %s4448_s25  ;;  %3940 = vmatmul.mubr.msk.f32.gmra.mrb[24].mxu1 %vm775_vm15, %v736_v51  ;;  %v769_v45 = vld [vmem:[%s6906_s4 + $0x1d0] sm:$0xff]  ;;  %v772_v23 = vld [vmem:[%s6906_s4 + $0x1e8] sm:$0xff]  ;;  %v774_v33 = vld [vmem:[%s6906_s4 + $0x1f8] sm:$0xff] }
 0x345   :  { %v2417_v63 = vsel %vm89_vm8, %v2414_v44, %v2416_v48  ;;  %v2421_v46 = vadd.f32 %v2416_v48, %v2395_v29  ;;  %3942 = vmatprep.mubr.msk.f32.mxu1 %vm775_vm15, %v737_v54  ;;  %v767_v44 = vld [vmem:[%s6906_s4 + $0x1c0] sm:$0xff]  ;;  %v24_v29 = vld [vmem:[%s6905_s3 + $0x30] sm:$0xff] }
 0x346   :  { %v2420_v49 = vadd.f32 %v2417_v63, %v2394_v28  ;;  %4024 = vmatmul.mubr.msk.f32.gmra.mrb[24].mxu0 %vm775_vm15, %v6968_v30  ;;  %v25_v5 = vld [vmem:[%s6905_s3 + $0x40] sm:$0xff] }
 0x347   :  { %2439 = vrot.lane.b32.xlu1 %v2421_v46, %s4448_s25  ;;  %4026 = vmatprep.mubr.msk.f32.mxu0 %vm775_vm15, %v5248_v53  ;;  %v29_v53 = vld [vmem:[%s6905_s3 + $0x38] sm:$0xff] }
 0x348   :  { %v2429_v61 = vpop.permute.xlu1 %2428  ;;  %2437 = vrot.lane.b32.xlu0 %v2420_v49, %s4448_s25  ;;  %3943 = vmatmul.mubr.msk.f32.gmra.mrb[26].mxu1 %vm775_vm15, %v738_v24 }
 0x349   :  { %v2430_v31 = vsel %vm89_vm8, %v2427_v41, %v2429_v61  ;;  %v2434_v62 = vadd.f32 %v2429_v61, %v2408_v7  ;;  %vm1905_vm8 = vcmask 1043459  }
 0x34a   :  { %v2433_v43 = vadd.f32 %v2430_v31, %v2407_v52  ;;  %4027 = vmatmul.mubr.msk.f32.gmra.mrb[26].mxu0 %vm775_vm15, %v5255_v9  ;;  %v739_v9 = vld [vmem:[%s6906_s4 + $0xe0] sm:$0xff] }
 0x34b   :  { %2447 = vrot.lane.b32.xlu1 %v2434_v62, %s4448_s25  ;;  %4029 = vmatprep.mubr.msk.f32.mxu0 %vm775_vm15, %v5284_v16  ;;  %v741_v16 = vld [vmem:[%s6906_s4 + $0xf0] sm:$0xff] }
 0x34c   :  { %2445 = vrot.lane.b32.xlu0 %v2433_v43, %s4448_s25  ;;  %3945 = vmatprep.mubr.msk.f32.mxu1 %vm775_vm15, %v739_v9  ;;  %s4470_s25 = smov [#allocation2]  }
 0x34d   :  { %3946 = vmatmul.mubr.msk.f32.gmra.mrb[28].mxu1 %vm775_vm15, %v740_v55  ;;  %s3599_s1 = sshll.u32 %s4470_s25, 4  ;;  %s3600_s1 = int_to_ptr.vmem [resolvable:$true] %s3599_s1 }
 0x34e   :  { %4030 = vmatmul.mubr.msk.f32.gmra.mrb[28].mxu0 %vm775_vm15, %v5294_v35  ;;  %3948 = vmatprep.mubr.msk.f32.mxu1 %vm775_vm15, %v741_v16  ;;  %v6969_v35 = vmov 1   ;;  %s4419_s21 = scalar_lea.vmem %s3600_s1, 32  ;;  %p4424_p1 = scmp.lt.s32.totalorder %s3600_s1, %s3600_s1 }
 0x34f   :  { %627 = vperm.xlu1 %4354, %v30_v21   ;;  %4032 = vmatprep.mubr.msk.f32.mxu0 %vm775_vm15, %v5323_v2  ;;  %v743_v2 = vld [vmem:[%s6906_s4 + $0x100] sm:$0xff]  ;;  %p4420_p0 = scmp.ne.s32.totalorder %s3600_s1, %s4419_s21  ;;  %p4425_p2 = scmp.lt.s32.totalorder %s4419_s21, %s4419_s21 }
 0x350   :  { %622 = vperm.xlu0 %4353, %v29_v53  }
 0x351   :  { %3949 = vmatmul.mubr.msk.f32.gmra.mrb[30].mxu1 %vm775_vm15, %v742_v10  ;;  %p4426_p3 = por %p4425_p2, %p4424_p1 }
 0x352   :  { %4033 = vmatmul.mubr.msk.f32.gmra.mrb[30].mxu0 %vm775_vm15, %v5331_v12  ;;  %3951 = vmatprep.mubr.msk.f32.mxu1 %vm775_vm15, %v743_v2  ;;  %v744_v12 = vld [vmem:[%s6906_s4 + $0x108] sm:$0xff] }
 0x353   :  { %4356 = vset.pattern.permute.xlu1 %v6969_v35  ;;  %4035 = vmatprep.mubr.msk.f32.mxu0 %vm775_vm15, %v5358_v32  ;;  %v6970_v32 = vmov 2   ;;  %p4427_p4 = pnand %p4426_p3, %p4420_p0 }
 0x354   :  { %652 = vperm.xlu1 %4356, %v30_v21   ;;  %4355 = vset.pattern.permute.xlu0 %v6969_v35 }
 0x355   :  { %648 = vperm.xlu0 %4355, %v29_v53   ;;  %3952 = vmatmul.mubr.msk.f32.gmra.mrb[32].mxu1 %vm775_vm15, %v744_v12 }
 0x356   :  { %4036 = vmatmul.mubr.msk.f32.gmra.mrb[32].mxu0 %vm775_vm15, %v5366_v17  ;;  %3954 = vmatprep.mubr.msk.f32.mxu1 %vm775_vm15, %v745_v27  ;;  %v749_v17 = vld [vmem:[%s6906_s4 + $0x130] sm:$0xff] }
 0x357   :  { %4038 = vmatprep.mubr.msk.f32.mxu0 %vm775_vm15, %v5392_v22  ;;  %v765_v22 = vld [vmem:[%s6906_s4 + $0x1b0] sm:$0xff] }
 0x358   :  { %4357 = vset.pattern.permute.xlu1 %v6970_v32 }
 0x359   :  { %4358 = vset.pattern.permute.xlu0 %v6970_v32  ;;  %3955 = vmatmul.mubr.msk.f32.gmra.mrb[34].mxu1 %vm775_vm15, %v746_v19 }
 0x35a   :  { %4039 = vmatmul.mubr.msk.f32.gmra.mrb[34].mxu0 %vm775_vm15, %v5399_v14  ;;  %3957 = vmatprep.mubr.msk.f32.mxu1 %vm775_vm15, %v747_v47  ;;  %v770_v14 = vld [vmem:[%s6906_s4 + $0x1d8] sm:$0xff] }
 0x35b   :  { %4041 = vmatprep.mubr.msk.f32.mxu0 %vm775_vm15, %v735_v58 }
 0x35d   :  { %3958 = vmatmul.mubr.msk.f32.gmra.mrb[36].mxu1 %vm775_vm15, %v748_v40 }
 0x35e   :  { %4042 = vmatmul.mubr.msk.f32.gmra.mrb[36].mxu0 %vm775_vm15, %v736_v51  ;;  %3960 = vmatprep.mubr.msk.f32.mxu1 %vm775_vm15, %v749_v17 }
 0x35f   :  { %4044 = vmatprep.mubr.msk.f32.mxu0 %vm775_vm15, %v737_v54 }
 0x361   :  { %3961 = vmatmul.mubr.msk.f32.gmra.mrb[38].mxu1 %vm775_vm15, %v750_v34 }
 0x362   :  { %4045 = vmatmul.mubr.msk.f32.gmra.mrb[38].mxu0 %vm775_vm15, %v738_v24  ;;  %3963 = vmatprep.mubr.msk.f32.mxu1 %vm775_vm15, %v751_v15 }
 0x363   :  { %4047 = vmatprep.mubr.msk.f32.mxu0 %vm775_vm15, %v739_v9 }
 0x365   :  { %3964 = vmatmul.mubr.msk.f32.gmra.mrb[40].mxu1 %vm775_vm15, %v752_v6 }
 0x366   :  { %4048 = vmatmul.mubr.msk.f32.gmra.mrb[40].mxu0 %vm775_vm15, %v740_v55  ;;  %3966 = vmatprep.mubr.msk.f32.mxu1 %vm775_vm15, %v753_v8 }
 0x367   :  { %4050 = vmatprep.mubr.msk.f32.mxu0 %vm775_vm15, %v741_v16 }
 0x369   :  { %3967 = vmatmul.mubr.msk.f32.gmra.mrb[42].mxu1 %vm775_vm15, %v754_v1 }
 0x36a   :  { %4051 = vmatmul.mubr.msk.f32.gmra.mrb[42].mxu0 %vm775_vm15, %v742_v10  ;;  %3969 = vmatprep.mubr.msk.f32.mxu1 %vm775_vm15, %v755_v50 }
 0x36b   :  { %4053 = vmatprep.mubr.msk.f32.mxu0 %vm775_vm15, %v743_v2 }
 0x36d   :  { %3970 = vmatmul.mubr.msk.f32.gmra.mrb[44].mxu1 %vm775_vm15, %v756_v60 }
 0x36e   :  { %4054 = vmatmul.mubr.msk.f32.gmra.mrb[44].mxu0 %vm775_vm15, %v744_v12  ;;  %3972 = vmatprep.mubr.msk.f32.mxu1 %vm775_vm15, %v757_v37 }
 0x36f   :  { %4056 = vmatprep.mubr.msk.f32.mxu0 %vm775_vm15, %v745_v27 }
 0x371   :  { %3973 = vmatmul.mubr.msk.f32.gmra.mrb[46].mxu1 %vm775_vm15, %v758_v56 }
 0x372   :  { %4057 = vmatmul.mubr.msk.f32.gmra.mrb[46].mxu0 %vm775_vm15, %v746_v19  ;;  %3975 = vmatprep.mubr.msk.f32.mxu1 %vm775_vm15, %v759_v11 }
 0x373   :  { %4059 = vmatprep.mubr.msk.f32.mxu0 %vm775_vm15, %v747_v47 }
 0x375   :  { %3976 = vmatmul.mubr.msk.f32.gmra.mrb[48].mxu1 %vm775_vm15, %v760_v0 }
 0x376   :  { %4060 = vmatmul.mubr.msk.f32.gmra.mrb[48].mxu0 %vm775_vm15, %v748_v40  ;;  %3978 = vmatprep.mubr.msk.f32.mxu1 %vm775_vm15, %v761_v4 }
 0x377   :  { %4062 = vmatprep.mubr.msk.f32.mxu0 %vm775_vm15, %v749_v17 }
 0x379   :  { %3979 = vmatmul.mubr.msk.f32.gmra.mrb[50].mxu1 %vm775_vm15, %v762_v25 }
 0x37a   :  { %4063 = vmatmul.mubr.msk.f32.gmra.mrb[50].mxu0 %vm775_vm15, %v750_v34  ;;  %3981 = vmatprep.mubr.msk.f32.mxu1 %vm775_vm15, %v763_v39 }
 0x37b   :  { %4065 = vmatprep.mubr.msk.f32.mxu0 %vm775_vm15, %v751_v15 }
 0x37d   :  { %3982 = vmatmul.mubr.msk.f32.gmra.mrb[52].mxu1 %vm775_vm15, %v764_v42 }
 0x37e   :  { %4066 = vmatmul.mubr.msk.f32.gmra.mrb[52].mxu0 %vm775_vm15, %v752_v6  ;;  %3984 = vmatprep.mubr.msk.f32.mxu1 %vm775_vm15, %v765_v22 }
 0x37f   :  { %4068 = vmatprep.mubr.msk.f32.mxu0 %vm775_vm15, %v753_v8 }
 0x381   :  { %3985 = vmatmul.mubr.msk.f32.gmra.mrb[54].mxu1 %vm775_vm15, %v766_v38 }
 0x382   :  { %4069 = vmatmul.mubr.msk.f32.gmra.mrb[54].mxu0 %vm775_vm15, %v754_v1  ;;  %3987 = vmatprep.mubr.msk.f32.mxu1 %vm775_vm15, %v767_v44 }
 0x383   :  { %4071 = vmatprep.mubr.msk.f32.mxu0 %vm775_vm15, %v755_v50 }
 0x385   :  { %3988 = vmatmul.mubr.msk.f32.gmra.mrb[56].mxu1 %vm775_vm15, %v768_v59 }
 0x386   :  { %4072 = vmatmul.mubr.msk.f32.gmra.mrb[56].mxu0 %vm775_vm15, %v756_v60  ;;  %3990 = vmatprep.mubr.msk.f32.mxu1 %vm775_vm15, %v769_v45 }
 0x389   :  { %3991 = vmatmul.mubr.msk.f32.gmra.mrb[58].mxu1 %vm775_vm15, %v770_v14 }
 0x38a   :  { %3993 = vmatprep.mubr.msk.f32.mxu1 %vm775_vm15, %v771_v20 }
 0x38d   :  { %3994 = vmatmul.mubr.msk.f32.gmra.mrb[60].mxu1 %vm775_vm15, %v772_v23 }
 0x38e   :  { %3996 = vmatprep.mubr.msk.f32.mxu1 %vm775_vm15, %v773_v57 }
 0x391   :  { %3997 = vmatmul.mubr.msk.f32.gmra.mrb[62].mxu1 %vm775_vm15, %v774_v33 }
 0x392   :  { %4074 = vmatprep.mubr.msk.f32.mxu1 %vm775_vm15, %v757_v37 }
 0x395   :  { %4075 = vmatmul.mubr.msk.f32.vlgmr.msra.gmra.mrb[64].mxu1 %vm775_vm15, %v758_v56 }
 0x396   :  { %4077 = vmatprep.mubr.msk.f32.mxu1 %vm775_vm15, %v759_v11 }
 0x399   :  { %4078 = vmatmul.mubr.msk.f32.gmra.mrb[66].mxu1 %vm775_vm15, %v760_v0 }
 0x39a   :  { %4080 = vmatprep.mubr.msk.f32.mxu1 %vm775_vm15, %v761_v4  ;;  %v5679_v4 = vpop.f32.mrb[0].mxu1 }
 0x39d   :  { %4081 = vmatmul.mubr.msk.f32.gmra.mrb[68].mxu1 %vm775_vm15, %v762_v25  ;;  %v5681_v25 = vpop.f32.mrb[1].mxu1 }
 0x39e   :  { %4083 = vmatprep.mubr.msk.f32.mxu1 %vm775_vm15, %v763_v39  ;;  %v5683_v39 = vpop.f32.mrb[2].mxu1 }
 0x3a1   :  { %4084 = vmatmul.mubr.msk.f32.gmra.mrb[70].mxu1 %vm775_vm15, %v764_v42  ;;  %v5685_v42 = vpop.f32.mrb[3].mxu1 }
 0x3a2   :  { %4086 = vmatprep.mubr.msk.f32.mxu1 %vm775_vm15, %v765_v22  ;;  %v5687_v22 = vpop.f32.mrb[4].mxu1 }
 0x3a5   :  { %4087 = vmatmul.mubr.msk.f32.gmra.mrb[72].mxu1 %vm775_vm15, %v766_v38  ;;  %v5689_v38 = vpop.f32.mrb[5].mxu1 }
 0x3a6   :  { %4089 = vmatprep.mubr.msk.f32.mxu1 %vm775_vm15, %v767_v44  ;;  %v5691_v44 = vpop.f32.mrb[6].mxu1 }
 0x3a9   :  { %4090 = vmatmul.mubr.msk.f32.gmra.mrb[74].mxu1 %vm775_vm15, %v768_v59  ;;  %v5693_v59 = vpop.f32.mrb[7].mxu1 }
 0x3aa   :  { %4092 = vmatprep.mubr.msk.f32.mxu1 %vm775_vm15, %v769_v45  ;;  %6971 = vst [vmem:[#allocation7_spill] sm:$0xff] %v5693_v59  ;;  %v5695_v45 = vpop.f32.mrb[8].mxu1 }
 0x3ab   :  { %6972 = vst [vmem:[#allocation13_spill] sm:$0xff] %v5695_v45 }
 0x3ad   :  { %4093 = vmatmul.mubr.msk.f32.gmra.mrb[76].mxu1 %vm775_vm15, %v770_v14  ;;  %v5697_v14 = vpop.f32.mrb[9].mxu1 }
 0x3ae   :  { %4095 = vmatprep.mubr.msk.f32.mxu1 %vm775_vm15, %v771_v20  ;;  %6973 = vst [vmem:[#allocation10_spill] sm:$0xff] %v5697_v14  ;;  %v5699_v20 = vpop.f32.mrb[10].mxu1 }
 0x3af   :  { %6974 = vst [vmem:[#allocation12_spill] sm:$0xff] %v5699_v20 }
 0x3b1   :  { %v559_v18 = vpop.permute.xlu1 %558  ;;  %4096 = vmatmul.mubr.msk.f32.gmra.mrb[78].mxu1 %vm775_vm15, %v772_v23  ;;  %v5701_v23 = vpop.f32.mrb[11].mxu1 }
 0x3b2   :  { %v557_v13 = vpop.permute.xlu0 %556  ;;  %4098 = vmatprep.mubr.msk.f32.mxu1 %vm775_vm15, %v773_v57  ;;  %6975 = vst [vmem:[#allocation23_spill] sm:$0xff] %v5701_v23  ;;  %v5703_v57 = vpop.f32.mrb[12].mxu1 }
 0x3b3   :  { %v560_v28 = vsel %vm61_vm4, %v557_v13, %v559_v18  ;;  %6976 = vst [vmem:[#allocation14_spill] sm:$0xff] %v5703_v57 }
 0x3b4   :  { %v573_v48 = vadd.f32 %v560_v28, %v24_v29 }
 0x3b5   :  { %v567_v26 = vpop.permute.xlu1 %566  ;;  %4099 = vmatmul.mubr.msk.f32.gmra.mrb[80].mxu1 %vm775_vm15, %v774_v33  ;;  %v5705_v33 = vpop.f32.mrb[13].mxu1 }
 0x3b6   :  { %v565_v36 = vpop.permute.xlu0 %564  ;;  %v583_v58 = vmin.f32 %v573_v48, 0.0  ;;  %vm578_vm2 = vcmp.gt.f32.partialorder %v573_v48, 0.0  ;;  %6977 = vst [vmem:[#allocation9_spill] sm:$0xff] %v5705_v33 }
 0x3b7   :  { %v568_v63 = vsel %vm61_vm4, %v565_v36, %v567_v26 }
 0x3b8   :  { %v574_v46 = vadd.f32 %v568_v63, %v25_v5  ;;  %v591_v41 = vmul.f32 1.442695, %v583_v58 }
 0x3b9   :  { %v2440_v3 = vpop.permute.xlu1 %2439 }
 0x3ba   :  { %v584_v49 = vmin.f32 %v574_v46, 0.0  ;;  %v2438_v51 = vpop.permute.xlu0 %2437  ;;  %vm579_vm1 = vcmp.gt.f32.partialorder %v574_v46, 0.0 }
 0x3bb   :  { %v2441_v54 = vsel %vm61_vm4, %v2438_v51, %v2440_v3 }
 0x3bc   :  { %v593_v30 = vmul.f32 1.442695, %v584_v49  ;;  %v2454_v7 = vadd.f32 %v2441_v54, %v24_v29 }
 0x3bd   :  { %v2448_v52 = vpop.permute.xlu1 %2447 }
 0x3be   :  { %v2464_v61 = vmin.f32 %v2454_v7, 0.0  ;;  %v2446_v24 = vpop.permute.xlu0 %2445  ;;  %4383 = vpow2.f32 %v593_v30  ;;  %vm2459_vm3 = vcmp.gt.f32.partialorder %v2454_v7, 0.0 }
 0x3bf   :  { %v2449_v31 = vsel %vm61_vm4, %v2446_v24, %v2448_v52  ;;  %4385 = vpow2.f32 %v591_v41 }
 0x3c0   :  { %v2472_v62 = vmul.f32 1.442695, %v2464_v61  ;;  %v2455_v43 = vadd.f32 %v2449_v31, %v25_v5 }
 0x3c2   :  { %4387 = vpow2.f32 %v2472_v62  ;;  %v2465_v21 = vmin.f32 %v2455_v43, 0.0  ;;  %vm2460_vm4 = vcmp.gt.f32.partialorder %v2455_v43, 0.0 }
 0x3c4   :  { %v2474_v53 = vmul.f32 1.442695, %v2465_v21 }
 0x3c6   :  { %4389 = vpow2.f32 %v2474_v53 }
 0x3c8   :  { %v4384_v9 = vpop.eup %4383 }
 0x3c9   :  { %v4386_v55 = vpop.eup %4385  ;;  %v3614_v10 = vadd.f32 -1.0, %v4384_v9 }
 0x3ca   :  { %v3613_v2 = vadd.f32 -1.0, %v4386_v55 }
 0x3cb   :  { %v604_v19 = vsel %vm579_vm1, %v574_v46, %v3614_v10 }
 0x3cc   :  { %v4388_v16 = vpop.eup %4387  ;;  %v603_v17 = vsel %vm578_vm2, %v573_v48, %v3613_v2 }
 0x3cd   :  { %v3693_v12 = vadd.f32 -1.0, %v4388_v16 }
 0x3ce   :  { %v628_v35 = vpop.permute.xlu1 %627 }
 0x3cf   :  { %v623_v27 = vpop.permute.xlu0 %622  ;;  %v634_v40 = vmul.f32 %v628_v35, %v604_v19  ;;  %v2484_v34 = vsel %vm2459_vm3, %v2454_v7, %v3693_v12 }
 0x3d0   :  { %v4390_v32 = vpop.eup %4389  ;;  %v633_v15 = vmul.f32 %v623_v27, %v603_v17  ;;  %v2489_v37 = vmul.f32 %v2484_v34, %v623_v27 }
 0x3d1   :  { %v3694_v47 = vadd.f32 -1.0, %v4390_v32 }
 0x3d3   :  { %v653_v6 = vpop.permute.xlu1 %652  ;;  %v2485_v50 = vsel %vm2460_vm4, %v2455_v43, %v3694_v47 }
 0x3d4   :  { %v5667_v8 = vadd.f32 %v653_v6, %v634_v40  ;;  %v649_v1 = vpop.permute.xlu0 %648  ;;  %v2490_v56 = vmul.f32 %v2485_v50, %v628_v35 }
 0x3d5   :  { %v5669_v60 = vadd.f32 %v649_v1, %v633_v15  ;;  %v5673_v11 = vadd.f32 %v2489_v37, %v649_v1 }
 0x3d6   :  { %693 = vadd.xlane.f32.xlu0 %v5667_v8  ;;  %v5676_v0 = vadd.f32 %v2490_v56, %v653_v6 }
 0x3d7   :  { %691 = vadd.xlane.f32.xlu1 %v5669_v60 }
 0x3da   :  { %2526 = vadd.xlane.f32.xlu0 %v5673_v11 }
 0x3de   :  { %2528 = vadd.xlane.f32.xlu0 %v5676_v0 }
 0x3fe   :  { %v5713_v28 = vpop.f32.mrb[14].mxu1 }
 0x3ff   :  { %6981 = vst [vmem:[#allocation16_spill] sm:$0xff] %v5713_v28  ;;  %v5717_v26 = vpop.f32.mrb[15].mxu1 }
 0x400   :  { %6983 = vst [vmem:[#allocation15_spill] sm:$0xff] %v5717_v26 }
 0x401   :  { %v5707_v18 = vpop.f32.mrb[12].mxu0 }
 0x402   :  { %6978 = vst [vmem:[#allocation8_spill] sm:$0xff] %v5707_v18  ;;  %v5709_v29 = vpop.f32.mrb[13].mxu0 }
 0x403   :  { %6979 = vst [vmem:[#allocation18_spill] sm:$0xff] %v5709_v29  ;;  %v5721_v36 = vpop.f32.mrb[16].mxu1 }
 0x404   :  { %6985 = vst [vmem:[#allocation19_spill] sm:$0xff] %v5721_v36  ;;  %v5725_v46 = vpop.f32.mrb[17].mxu1 }
 0x405   :  { %v5711_v13 = vpop.f32.mrb[14].mxu0  ;;  %6987 = vst [vmem:[#allocation24_spill] sm:$0xff] %v5725_v46 }
 0x406   :  { %6980 = vst [vmem:[#allocation11_spill] sm:$0xff] %v5711_v13  ;;  %v5715_v48 = vpop.f32.mrb[15].mxu0 }
 0x407   :  { %6982 = vst [vmem:[#allocation22_spill] sm:$0xff] %v5715_v48  ;;  %v5729_v3 = vpop.f32.mrb[18].mxu1 }
 0x408   :  { %6989 = vst [vmem:[#allocation21_spill] sm:$0xff] %v5729_v3  ;;  %v5733_v51 = vpop.f32.mrb[19].mxu1 }
 0x409   :  { %v5719_v5 = vpop.f32.mrb[16].mxu0  ;;  %6991 = vst [vmem:[#allocation27_spill] sm:$0xff] %v5733_v51 }
 0x40a   :  { %6984 = vst [vmem:[#allocation17_spill] sm:$0xff] %v5719_v5  ;;  %v5723_v63 = vpop.f32.mrb[17].mxu0 }
 0x40b   :  { %6986 = vst [vmem:[#allocation25_spill] sm:$0xff] %v5723_v63 }
 0x40d   :  { %v5727_v58 = vpop.f32.mrb[18].mxu0 }
 0x40e   :  { %6988 = vst [vmem:[#allocation20_spill] sm:$0xff] %v5727_v58  ;;  %v5731_v49 = vpop.f32.mrb[19].mxu0  ;;  %v5737_v30 = vpop.f32.mrb[20].mxu1 }
 0x40f   :  { %6990 = vst [vmem:[#allocation26_spill] sm:$0xff] %v5731_v49  ;;  %6993 = vst [vmem:[#allocation29_spill] sm:$0xff] %v5737_v30  ;;  %v5741_v41 = vpop.f32.mrb[21].mxu1 }
 0x410   :  { %6995 = vst [vmem:[#allocation31_spill] sm:$0xff] %v5741_v41 }
 0x411   :  { %v5735_v54 = vpop.f32.mrb[20].mxu0 }
 0x412   :  { %6992 = vst [vmem:[#allocation28_spill] sm:$0xff] %v5735_v54  ;;  %v5739_v7 = vpop.f32.mrb[21].mxu0 }
 0x413   :  { %6994 = vst [vmem:[#allocation30_spill] sm:$0xff] %v5739_v7  ;;  %v5745_v61 = vpop.f32.mrb[22].mxu1 }
 0x414   :  { %6997 = vst [vmem:[#allocation33_spill] sm:$0xff] %v5745_v61  ;;  %v5749_v31 = vpop.f32.mrb[23].mxu1 }
 0x415   :  { %v5743_v52 = vpop.f32.mrb[22].mxu0  ;;  %6999 = vst [vmem:[#allocation35_spill] sm:$0xff] %v5749_v31 }
 0x416   :  { %6996 = vst [vmem:[#allocation32_spill] sm:$0xff] %v5743_v52  ;;  %v5747_v24 = vpop.f32.mrb[23].mxu0 }
 0x417   :  { %6998 = vst [vmem:[#allocation34_spill] sm:$0xff] %v5747_v24  ;;  %v5753_v43 = vpop.f32.mrb[24].mxu1 }
 0x418   :  { %v5757_v53 = vpop.f32.mrb[25].mxu1 }
 0x419   :  { %v5751_v62 = vpop.f32.mrb[24].mxu0 }
 0x41a   :  { %7000 = vst [vmem:[#allocation36_spill] sm:$0xff] %v5751_v62  ;;  %v5755_v21 = vpop.f32.mrb[25].mxu0 }
 0x41b   :  { %7001 = vst [vmem:[#allocation37_spill] sm:$0xff] %v5755_v21  ;;  %v5761_v55 = vpop.f32.mrb[26].mxu1 }
 0x41c   :  { %v5765_v10 = vpop.f32.mrb[27].mxu1 }
 0x41d   :  { %v5759_v9 = vpop.f32.mrb[26].mxu0 }
 0x41e   :  { %7002 = vst [vmem:[#allocation38_spill] sm:$0xff] %v5759_v9  ;;  %v5763_v16 = vpop.f32.mrb[27].mxu0 }
 0x41f   :  { %7003 = vst [vmem:[#allocation39_spill] sm:$0xff] %v5763_v16 }
 0x420   :  { %v5769_v2 = vpop.f32.mrb[28].mxu1 }
 0x421   :  { %v5767_v35 = vpop.f32.mrb[28].mxu0  ;;  %v5773_v27 = vpop.f32.mrb[29].mxu1 }
 0x422   :  { %7004 = vst [vmem:[#allocation40_spill] sm:$0xff] %v5767_v35  ;;  %v5771_v12 = vpop.f32.mrb[29].mxu0 }
 0x423   :  { %7005 = vst [vmem:[#allocation41_spill] sm:$0xff] %v5771_v12 }
 0x424   :  { %v5777_v19 = vpop.f32.mrb[30].mxu1 }
 0x425   :  { %v5775_v32 = vpop.f32.mrb[30].mxu0  ;;  %v5781_v40 = vpop.f32.mrb[31].mxu1 }
 0x426   :  { %7006 = vst [vmem:[#allocation42_spill] sm:$0xff] %v5775_v32  ;;  %v5779_v47 = vpop.f32.mrb[31].mxu0 }
 0x427   :  { %7007 = vst [vmem:[#allocation43_spill] sm:$0xff] %v5779_v47 }
 0x428   :  { %v5785_v34 = vpop.f32.mrb[32].mxu1 }
 0x429   :  { %v5783_v17 = vpop.f32.mrb[32].mxu0  ;;  %v5789_v6 = vpop.f32.mrb[33].mxu1 }
 0x42a   :  { %7008 = vst [vmem:[#allocation44_spill] sm:$0xff] %v5783_v17  ;;  %v5787_v15 = vpop.f32.mrb[33].mxu0 }
 0x42b   :  { %7009 = vst [vmem:[#allocation45_spill] sm:$0xff] %v5787_v15 }
 0x42c   :  { %v5793_v50 = vpop.f32.mrb[34].mxu1 }
 0x42d   :  { %v5791_v1 = vpop.f32.mrb[34].mxu0  ;;  %v5797_v56 = vpop.f32.mrb[35].mxu1 }
 0x42e   :  { %7010 = vst [vmem:[#allocation46_spill] sm:$0xff] %v5791_v1  ;;  %v5795_v37 = vpop.f32.mrb[35].mxu0 }
 0x42f   :  { %7011 = vst [vmem:[#allocation47_spill] sm:$0xff] %v5795_v37 }
 0x430   :  { %v5801_v9 = vpop.f32.mrb[36].mxu1 }
 0x431   :  { %v5799_v16 = vpop.f32.mrb[36].mxu0  ;;  %v5805_v62 = vpop.f32.mrb[37].mxu1 }
 0x432   :  { %7012 = vst [vmem:[#allocation48_spill] sm:$0xff] %v5799_v16  ;;  %v5803_v21 = vpop.f32.mrb[37].mxu0 }
 0x433   :  { %7013 = vst [vmem:[#allocation49_spill] sm:$0xff] %v5803_v21 }
 0x434   :  { %v5807_v24 = vpop.f32.mrb[38].mxu1 }
 0x435   :  { %v5809_v52 = vpop.f32.mrb[39].mxu1 }
 0x438   :  { %v5811_v7 = vpop.f32.mrb[40].mxu1 }
 0x439   :  { %v5813_v54 = vpop.f32.mrb[41].mxu1 }
 0x43c   :  { %v5815_v49 = vpop.f32.mrb[42].mxu1 }
 0x43d   :  { %v5817_v31 = vpop.f32.mrb[43].mxu1 }
 0x440   :  { %v5819_v58 = vpop.f32.mrb[44].mxu1 }
 0x441   :  { %v5821_v63 = vpop.f32.mrb[45].mxu1 }
 0x444   :  { %v5823_v61 = vpop.f32.mrb[46].mxu1 }
 0x445   :  { %v5825_v41 = vpop.f32.mrb[47].mxu1 }
 0x448   :  { %v5827_v5 = vpop.f32.mrb[48].mxu1 }
 0x449   :  { %v5829_v48 = vpop.f32.mrb[49].mxu1 }
 0x44c   :  { %v5831_v30 = vpop.f32.mrb[50].mxu1 }
 0x44d   :  { %v5833_v51 = vpop.f32.mrb[51].mxu1 }
 0x450   :  { %v5835_v13 = vpop.f32.mrb[52].mxu1 }
 0x451   :  { %v5837_v29 = vpop.f32.mrb[53].mxu1 }
 0x454   :  { %v5839_v3 = vpop.f32.mrb[54].mxu1 }
 0x455   :  { %v5841_v46 = vpop.f32.mrb[55].mxu1 }
 0x458   :  { %v5843_v18 = vpop.f32.mrb[56].mxu1 }
 0x459   :  { %v5845_v26 = vpop.f32.mrb[57].mxu1 }
 0x45c   :  { %v5847_v16 = vpop.f32.mrb[58].mxu1 }
 0x45d   :  { %v5849_v1 = vpop.f32.mrb[59].mxu1 }
 0x460   :  { %v5851_v17 = vpop.f32.mrb[60].mxu1 }
 0x461   :  { %v5853_v35 = vpop.f32.mrb[61].mxu1 }
 0x463   :  { %v694_v32 = vpop.xlane.xlu0 %693 }
 0x464   :  { %v696_v33 = vmul.f32 0.0078125, %v694_v32  ;;  %v692_v23 = vpop.xlane.xlu1 %691 }
 0x465   :  { %v695_v14 = vmul.f32 0.0078125, %v692_v23 }
 0x466   :  { %v5856_v36 = vsub.f32 %v5667_v8, %v696_v33  ;;  %v5877_v33 = vpop.f32.mrb[38].mxu0 }
 0x467   :  { %v5859_v28 = vsub.f32 %v5669_v60, %v695_v14  ;;  %v2527_v57 = vpop.xlane.xlu0 %2526  ;;  %7015 = vst [vmem:[#allocation51_spill] sm:$0xff] %v5877_v33 }
 0x468   :  { %v2530_v21 = vmul.f32 0.0078125, %v2527_v57  ;;  %v700_v37 = vmul.f32 %v5856_v36, %v5856_v36  ;;  %v5875_v57 = vpop.f32.mrb[62].mxu1 }
 0x469   :  { %v699_v15 = vmul.f32 %v5859_v28, %v5859_v28 }
 0x46a   :  { %v5866_v47 = vsub.f32 %v5673_v11, %v2530_v21  ;;  %703 = vadd.xlane.f32.xlu0 %v700_v37  ;;  %v5879_v11 = vpop.f32.mrb[63].mxu1  ;;  %v5881_v21 = vpop.f32.mrb[39].mxu0 }
 0x46b   :  { %701 = vadd.xlane.f32.xlu1 %v699_v15  ;;  %v2529_v23 = vpop.xlane.xlu0 %2528  ;;  %7016 = vst [vmem:[#allocation52_spill] sm:$0xff] %v5881_v21  ;;  %v5883_v15 = vpop.f32.mrb[40].mxu0 }
 0x46c   :  { %v2531_v32 = vmul.f32 0.0078125, %v2529_v23  ;;  %v2534_v8 = vmul.f32 %v5866_v47, %v5866_v47  ;;  %7017 = vst [vmem:[#allocation53_spill] sm:$0xff] %v5883_v15  ;;  %v5885_v37 = vpop.f32.mrb[64].mxu1  ;;  %v5887_v23 = vpop.f32.mrb[41].mxu0 }
 0x46d   :  { %7018 = vst [vmem:[#allocation54_spill] sm:$0xff] %v5885_v37  ;;  %7019 = vst [vmem:[#allocation55_spill] sm:$0xff] %v5887_v23 }
 0x46e   :  { %v5871_v60 = vsub.f32 %v5676_v0, %v2531_v32  ;;  %v5889_v0 = vpop.f32.mrb[65].mxu1  ;;  %v5891_v32 = vpop.f32.mrb[42].mxu0 }
 0x46f   :  { %2536 = vadd.xlane.f32.xlu1 %v2534_v8  ;;  %7020 = vst [vmem:[#allocation56_spill] sm:$0xff] %v5889_v0  ;;  %7021 = vst [vmem:[#allocation57_spill] sm:$0xff] %v5891_v32  ;;  %v5893_v8 = vpop.f32.mrb[66].mxu1 }
 0x470   :  { %7014 = vst [vmem:[#allocation50_spill] sm:$0xff] %v5871_v60  ;;  %v2535_v14 = vmul.f32 %v5871_v60, %v5871_v60  ;;  %7022 = vst [vmem:[#allocation58_spill] sm:$0xff] %v5893_v8  ;;  %v5897_v12 = vpop.f32.mrb[67].mxu1 }
 0x471   :  { %7024 = vst [vmem:[#allocation60_spill] sm:$0xff] %v5897_v12  ;;  %v5901_v60 = vpop.f32.mrb[68].mxu1 }
 0x472   :  { %2538 = vadd.xlane.f32.xlu0 %v2535_v14  ;;  %v5895_v14 = vpop.f32.mrb[43].mxu0  ;;  %7026 = vst [vmem:[#allocation62_spill] sm:$0xff] %v5901_v60  ;;  %v5905_v15 = vpop.f32.mrb[69].mxu1 }
 0x473   :  { %7023 = vst [vmem:[#allocation59_spill] sm:$0xff] %v5895_v14  ;;  %v5899_v33 = vpop.f32.mrb[44].mxu0  ;;  %7028 = vst [vmem:[#allocation64_spill] sm:$0xff] %v5905_v15 }
 0x474   :  { %7025 = vst [vmem:[#allocation61_spill] sm:$0xff] %v5899_v33  ;;  %v5903_v21 = vpop.f32.mrb[45].mxu0  ;;  %v5909_v23 = vpop.f32.mrb[70].mxu1 }
 0x475   :  { %7027 = vst [vmem:[#allocation63_spill] sm:$0xff] %v5903_v21  ;;  %v5907_v37 = vpop.f32.mrb[46].mxu0  ;;  %7030 = vst [vmem:[#allocation66_spill] sm:$0xff] %v5909_v23  ;;  %v5913_v32 = vpop.f32.mrb[71].mxu1 }
 0x476   :  { %7029 = vst [vmem:[#allocation65_spill] sm:$0xff] %v5907_v37  ;;  %v5911_v0 = vpop.f32.mrb[47].mxu0  ;;  %7032 = vst [vmem:[#allocation68_spill] sm:$0xff] %v5913_v32 }
 0x477   :  { %7031 = vst [vmem:[#allocation67_spill] sm:$0xff] %v5911_v0  ;;  %v5915_v8 = vpop.f32.mrb[48].mxu0 }
 0x478   :  { %7033 = vst [vmem:[#allocation69_spill] sm:$0xff] %v5915_v8  ;;  %v5917_v14 = vpop.f32.mrb[72].mxu1  ;;  %v5919_v12 = vpop.f32.mrb[49].mxu0 }
 0x479   :  { %7034 = vst [vmem:[#allocation70_spill] sm:$0xff] %v5917_v14  ;;  %7035 = vst [vmem:[#allocation71_spill] sm:$0xff] %v5919_v12  ;;  %v5921_v33 = vpop.f32.mrb[73].mxu1  ;;  %v5923_v60 = vpop.f32.mrb[50].mxu0 }
 0x47a   :  { %7036 = vst [vmem:[#allocation72_spill] sm:$0xff] %v5921_v33  ;;  %7037 = vst [vmem:[#allocation73_spill] sm:$0xff] %v5923_v60  ;;  %v5927_v15 = vpop.f32.mrb[51].mxu0 }
 0x47b   :  { %7039 = vst [vmem:[#allocation75_spill] sm:$0xff] %v5927_v15  ;;  %v5931_v23 = vpop.f32.mrb[52].mxu0 }
 0x47c   :  { %v5925_v21 = vpop.f32.mrb[74].mxu1  ;;  %7041 = vst [vmem:[#allocation77_spill] sm:$0xff] %v5931_v23  ;;  %v5935_v32 = vpop.f32.mrb[53].mxu0 }
 0x47d   :  { %7038 = vst [vmem:[#allocation74_spill] sm:$0xff] %v5925_v21  ;;  %v5929_v37 = vpop.f32.mrb[75].mxu1  ;;  %7043 = vst [vmem:[#allocation79_spill] sm:$0xff] %v5935_v32  ;;  %v5939_v14 = vpop.f32.mrb[54].mxu0 }
 0x47e   :  { %7040 = vst [vmem:[#allocation76_spill] sm:$0xff] %v5929_v37  ;;  %7045 = vst [vmem:[#allocation81_spill] sm:$0xff] %v5939_v14  ;;  %v5943_v33 = vpop.f32.mrb[55].mxu0 }
 0x47f   :  { %7047 = vst [vmem:[#allocation83_spill] sm:$0xff] %v5943_v33  ;;  %v5947_v21 = vpop.f32.mrb[56].mxu0 }
 0x480   :  { %v5933_v0 = vpop.f32.mrb[76].mxu1  ;;  %7049 = vst [vmem:[#allocation85_spill] sm:$0xff] %v5947_v21  ;;  %v5951_v37 = vpop.f32.mrb[57].mxu0 }
 0x481   :  { %7042 = vst [vmem:[#allocation78_spill] sm:$0xff] %v5933_v0  ;;  %v5937_v8 = vpop.f32.mrb[77].mxu1  ;;  %7050 = vst [vmem:[#allocation86_spill] sm:$0xff] %v5951_v37 }
 0x482   :  { %7044 = vst [vmem:[#allocation80_spill] sm:$0xff] %v5937_v8 }
 0x484   :  { %v5941_v12 = vpop.f32.mrb[78].mxu1 }
 0x485   :  { %7046 = vst [vmem:[#allocation82_spill] sm:$0xff] %v5941_v12  ;;  %v5945_v60 = vpop.f32.mrb[79].mxu1 }
 0x486   :  { %7048 = vst [vmem:[#allocation84_spill] sm:$0xff] %v5945_v60 }
 0x488   :  { %v5949_v15 = vpop.f32.mrb[80].mxu1 }
 0x489   :  { %v5953_v23 = vpop.f32.mrb[81].mxu1 }
 0x4f7   :  { %v704_v0 = vpop.xlane.xlu0 %703 }
 0x4f8   :  { %v706_v32 = vadd.f32 1e-08, %v704_v0  ;;  %v702_v59 = vpop.xlane.xlu1 %701 }
 0x4f9   :  { %v705_v8 = vadd.f32 1e-08, %v702_v59 }
 0x4fa   :  { %4391 = vrsqrt.f32 %v706_v32 }
 0x4fb   :  { %4393 = vrsqrt.f32 %v705_v8  ;;  %v7068_v8 = vld [vmem:[#allocation50_spill] sm:$0xff] }
 0x4fc   :  { %v2537_v14 = vpop.xlane.xlu1 %2536 }
 0x4fd   :  { %v2540_v33 = vadd.f32 1e-08, %v2537_v14  ;;  %v7069_v14 = vld [vmem:[#allocation41_spill] sm:$0xff] }
 0x4ff   :  { %v2539_v12 = vpop.xlane.xlu0 %2538  ;;  %4395 = vrsqrt.f32 %v2540_v33 }
 0x500   :  { %v2541_v21 = vadd.f32 1e-08, %v2539_v12 }
 0x502   :  { %4397 = vrsqrt.f32 %v2541_v21 }
 0x504   :  { %v4392_v20 = vpop.eup %4391 }
 0x505   :  { %v5956_v60 = vmul.f32 %v4392_v20, %v5856_v36  ;;  %v4394_v45 = vpop.eup %4393 }
 0x506   :  { %v5963_v59 = vmul.f32 %v4394_v45, %v5859_v28 }
 0x507   :  { %v1354_v37 = vmul.f32 %v5679_v4, %v5956_v60  ;;  %v1356_v0 = vmul.f32 %v5683_v39, %v5956_v60  ;;  %v5967_v32 = vmul.f32 %v5753_v43, %v5956_v60  ;;  %v5971_v20 = vmul.f32 %v5761_v55, %v5956_v60 }
 0x508   :  { %v5975_v4 = vmul.f32 %v5769_v2, %v5956_v60  ;;  %v5979_v39 = vmul.f32 %v5777_v19, %v5956_v60  ;;  %v5983_v45 = vmul.f32 %v5785_v34, %v5956_v60  ;;  %v5987_v28 = vmul.f32 %v5793_v50, %v5956_v60 }
 0x509   :  { %1419 = vadd.xlane.f32.xlu0 %v1354_v37  ;;  %v5991_v36 = vmul.f32 %v5801_v9, %v5956_v60  ;;  %v5995_v43 = vmul.f32 %v5807_v24, %v5956_v60  ;;  %v5999_v55 = vmul.f32 %v5811_v7, %v5956_v60  ;;  %v6003_v2 = vmul.f32 %v5815_v49, %v5956_v60  ;;  %v4396_v34 = vpop.eup %4395 }
 0x50a   :  { %v6007_v12 = vmul.f32 %v5819_v58, %v5956_v60  ;;  %v6011_v9 = vmul.f32 %v5823_v61, %v5956_v60  ;;  %v6015_v24 = vmul.f32 %v5827_v5, %v5956_v60  ;;  %v6019_v7 = vmul.f32 %v5831_v30, %v5956_v60 }
 0x50b   :  { %v6023_v49 = vmul.f32 %v5835_v13, %v5956_v60  ;;  %v6027_v58 = vmul.f32 %v5839_v3, %v5956_v60  ;;  %v6031_v61 = vmul.f32 %v5843_v18, %v5956_v60  ;;  %v6035_v5 = vmul.f32 %v5847_v16, %v5956_v60 }
 0x50c   :  { %7051 = vst [vmem:[#allocation87_spill] sm:$0xff] %v6019_v7  ;;  %v6039_v30 = vmul.f32 %v5851_v17, %v5956_v60  ;;  %v6043_v13 = vmul.f32 %v5875_v57, %v5956_v60  ;;  %v1353_v3 = vmul.f32 %v5681_v25, %v5963_v59  ;;  %v1358_v19 = vmul.f32 %v5687_v22, %v5956_v60 }
 0x50d   :  { %7052 = vst [vmem:[#allocation88_spill] sm:$0xff] %v6023_v49  ;;  %7053 = vst [vmem:[#allocation89_spill] sm:$0xff] %v6027_v58  ;;  %1423 = vadd.xlane.f32.xlu0 %v1356_v0  ;;  %v1360_v18 = vmul.f32 %v5691_v44, %v5956_v60  ;;  %v1355_v16 = vmul.f32 %v5685_v42, %v5963_v59  ;;  %v6055_v17 = vmul.f32 %v5757_v53, %v5963_v59  ;;  %v4398_v42 = vpop.eup %4397  ;;  %v7098_v58 = vld [vmem:[#allocation57_spill] sm:$0xff] }
 0x50e   :  { %7054 = vst [vmem:[#allocation90_spill] sm:$0xff] %v6031_v61  ;;  %7055 = vst [vmem:[#allocation91_spill] sm:$0xff] %v6035_v5  ;;  %1417 = vadd.xlane.f32.xlu1 %v1353_v3  ;;  %v6059_v50 = vmul.f32 %v5765_v10, %v5963_v59  ;;  %v6063_v25 = vmul.f32 %v5773_v27, %v5963_v59  ;;  %v6067_v22 = vmul.f32 %v5781_v40, %v5963_v59  ;;  %v7071_v3 = vld [vmem:[#allocation45_spill] sm:$0xff] }
 0x50f   :  { %7056 = vst [vmem:[#allocation92_spill] sm:$0xff] %v6039_v30  ;;  %7057 = vst [vmem:[#allocation93_spill] sm:$0xff] %v6043_v13  ;;  %v6071_v44 = vmul.f32 %v5789_v6, %v5963_v59  ;;  %v6075_v53 = vmul.f32 %v5797_v56, %v5963_v59  ;;  %v6079_v10 = vmul.f32 %v5805_v62, %v5963_v59  ;;  %v7086_v13 = vld [vmem:[#allocation16_spill] sm:$0xff] }
 0x510   :  { %v6083_v27 = vmul.f32 %v5809_v52, %v5963_v59  ;;  %v6087_v40 = vmul.f32 %v5813_v54, %v5963_v59  ;;  %v6091_v6 = vmul.f32 %v5817_v31, %v5963_v59  ;;  %v6095_v56 = vmul.f32 %v5821_v63, %v5963_v59 }
 0x511   :  { %1427 = vadd.xlane.f32.xlu0 %v1358_v19  ;;  %v6099_v62 = vmul.f32 %v5825_v41, %v5963_v59  ;;  %v6103_v52 = vmul.f32 %v5829_v48, %v5963_v59  ;;  %v6107_v54 = vmul.f32 %v5833_v51, %v5963_v59  ;;  %v6111_v31 = vmul.f32 %v5837_v29, %v5963_v59 }
 0x512   :  { %v6115_v63 = vmul.f32 %v5841_v46, %v5963_v59  ;;  %1421 = vadd.xlane.f32.xlu1 %v1355_v16  ;;  %v6119_v41 = vmul.f32 %v5845_v26, %v5963_v59  ;;  %v6123_v48 = vmul.f32 %v5849_v1, %v5963_v59  ;;  %v6127_v51 = vmul.f32 %v5853_v35, %v5963_v59  ;;  %v7065_v26 = vld [vmem:[#allocation13_spill] sm:$0xff]  ;;  %v7066_v1 = vld [vmem:[#allocation12_spill] sm:$0xff]  ;;  %v7067_v35 = vld [vmem:[#allocation7_spill] sm:$0xff] }
 0x513   :  { %7058 = vst [vmem:[#allocation94_spill] sm:$0xff] %v6107_v54  ;;  %7059 = vst [vmem:[#allocation95_spill] sm:$0xff] %v6111_v31  ;;  %v6131_v29 = vmul.f32 %v5879_v11, %v5963_v59  ;;  %v1357_v46 = vmul.f32 %v5689_v38, %v5963_v59  ;;  %v6136_v57 = vmul.f32 %v4396_v34, %v5866_v47  ;;  %v7070_v47 = vld [vmem:[#allocation43_spill] sm:$0xff]  ;;  %v7073_v34 = vld [vmem:[#allocation49_spill] sm:$0xff] }
 0x514   :  { %7060 = vst [vmem:[#allocation96_spill] sm:$0xff] %v6115_v63  ;;  %7061 = vst [vmem:[#allocation97_spill] sm:$0xff] %v6119_v41  ;;  %v1362_v33 = vmul.f32 %v7065_v26, %v5956_v60  ;;  %v1364_v21 = vmul.f32 %v7066_v1, %v5956_v60  ;;  %v1359_v37 = vmul.f32 %v7067_v35, %v5963_v59  ;;  %v7076_v35 = vld [vmem:[#allocation56_spill] sm:$0xff]  ;;  %v7097_v63 = vld [vmem:[#allocation53_spill] sm:$0xff] }
 0x515   :  { %7062 = vst [vmem:[#allocation98_spill] sm:$0xff] %v6123_v48  ;;  %7063 = vst [vmem:[#allocation99_spill] sm:$0xff] %v6127_v51  ;;  %1431 = vadd.xlane.f32.xlu0 %v1360_v18  ;;  %v6145_v11 = vmul.f32 %v4398_v42, %v7068_v8  ;;  %v6149_v38 = vmul.f32 %v7069_v14, %v6136_v57  ;;  %v6153_v0 = vmul.f32 %v7070_v47, %v6136_v57  ;;  %v7072_v18 = vld [vmem:[#allocation47_spill] sm:$0xff] }
 0x516   :  { %7064 = vst [vmem:[#allocation100_spill] sm:$0xff] %v6131_v29  ;;  %1425 = vadd.xlane.f32.xlu1 %v1357_v46  ;;  %v6157_v19 = vmul.f32 %v7071_v3, %v6136_v57  ;;  %v6161_v16 = vmul.f32 %v7072_v18, %v6136_v57  ;;  %v6165_v42 = vmul.f32 %v7073_v34, %v6136_v57  ;;  %v7074_v46 = vld [vmem:[#allocation52_spill] sm:$0xff]  ;;  %v7078_v14 = vld [vmem:[#allocation59_spill] sm:$0xff] }
 0x517   :  { %v6169_v26 = vmul.f32 %v7074_v46, %v6136_v57  ;;  %v6177_v8 = vmul.f32 %v7076_v35, %v6136_v57  ;;  %v6181_v47 = vmul.f32 %v7078_v14, %v6136_v57  ;;  %v7079_v3 = vld [vmem:[#allocation60_spill] sm:$0xff]  ;;  %v7081_v34 = vld [vmem:[#allocation63_spill] sm:$0xff]  ;;  %v7085_v35 = vld [vmem:[#allocation14_spill] sm:$0xff]  ;;  %v1368_v14 = vmul.f32 %v7086_v13, %v5956_v60 }
 0x518   :  { %v6185_v18 = vmul.f32 %v7079_v3, %v6136_v57  ;;  %v6189_v46 = vmul.f32 %v7081_v34, %v6136_v57  ;;  %v7083_v29 = vld [vmem:[#allocation64_spill] sm:$0xff]  ;;  %v7087_v51 = vld [vmem:[#allocation19_spill] sm:$0xff] }
 0x519   :  { %1435 = vadd.xlane.f32.xlu0 %v1362_v33  ;;  %v7075_v33 = vld [vmem:[#allocation55_spill] sm:$0xff]  ;;  %7077 = vst [vmem:[#allocation13_spill] sm:$0xff] %v6177_v8  ;;  %v1366_v8 = vmul.f32 %v7085_v35, %v5956_v60  ;;  %v1370_v3 = vmul.f32 %v7087_v51, %v5956_v60  ;;  %v7092_v35 = vld [vmem:[#allocation42_spill] sm:$0xff] }
 0x51a   :  { %v6173_v1 = vmul.f32 %v7075_v33, %v6136_v57  ;;  %7080 = vst [vmem:[#allocation12_spill] sm:$0xff] %v6185_v18  ;;  %7082 = vst [vmem:[#allocation7_spill] sm:$0xff] %v6189_v46  ;;  %v6193_v33 = vmul.f32 %v7083_v29, %v6136_v57  ;;  %1429 = vadd.xlane.f32.xlu1 %v1359_v37  ;;  %v7088_v18 = vld [vmem:[#allocation10_spill] sm:$0xff]  ;;  %v7089_v34 = vld [vmem:[#allocation23_spill] sm:$0xff]  ;;  %v6213_v13 = vmul.f32 %v7092_v35, %v6145_v11 }
 0x51b   :  { %v1361_v30 = vmul.f32 %v7088_v18, %v5963_v59  ;;  %v1363_v48 = vmul.f32 %v7089_v34, %v5963_v59  ;;  %v7090_v29 = vld [vmem:[#allocation9_spill] sm:$0xff]  ;;  %v7091_v37 = vld [vmem:[#allocation40_spill] sm:$0xff]  ;;  %v7094_v18 = vld [vmem:[#allocation46_spill] sm:$0xff]  ;;  %v6233_v35 = vmul.f32 %v7097_v63, %v6145_v11 }
 0x51c   :  { %7084 = vst [vmem:[#allocation50_spill] sm:$0xff] %v6193_v33  ;;  %v1365_v33 = vmul.f32 %v7090_v29, %v5963_v59  ;;  %v6209_v5 = vmul.f32 %v7091_v37, %v6145_v11  ;;  %v6221_v41 = vmul.f32 %v7094_v18, %v6145_v11  ;;  %v7095_v34 = vld [vmem:[#allocation48_spill] sm:$0xff]  ;;  %v7096_v29 = vld [vmem:[#allocation51_spill] sm:$0xff]  ;;  %v7099_v18 = vld [vmem:[#allocation61_spill] sm:$0xff] }
 0x51d   :  { %1439 = vadd.xlane.f32.xlu0 %v1364_v21  ;;  %v7093_v21 = vld [vmem:[#allocation44_spill] sm:$0xff]  ;;  %v6225_v61 = vmul.f32 %v7095_v34, %v6145_v11  ;;  %v6229_v37 = vmul.f32 %v7096_v29, %v6145_v11  ;;  %v6241_v31 = vmul.f32 %v7099_v18, %v6145_v11  ;;  %v7100_v34 = vld [vmem:[#allocation54_spill] sm:$0xff] }
 0x51e   :  { %v6217_v51 = vmul.f32 %v7093_v21, %v6145_v11  ;;  %v6237_v21 = vmul.f32 %v7098_v58, %v6145_v11  ;;  %1433 = vadd.xlane.f32.xlu1 %v1361_v30  ;;  %v6245_v49 = vmul.f32 %v7100_v34, %v6145_v11  ;;  %v7102_v29 = vld [vmem:[#allocation58_spill] sm:$0xff]  ;;  %v7106_v58 = vld [vmem:[#allocation65_spill] sm:$0xff]  ;;  %v7110_v34 = vld [vmem:[#allocation67_spill] sm:$0xff] }
 0x51f   :  { %v6249_v54 = vmul.f32 %v7102_v29, %v6145_v11  ;;  %v7104_v63 = vld [vmem:[#allocation62_spill] sm:$0xff]  ;;  %v6257_v30 = vmul.f32 %v7106_v58, %v6145_v11  ;;  %v7112_v29 = vld [vmem:[#allocation68_spill] sm:$0xff] }
 0x520   :  { %7101 = vst [vmem:[#allocation41_spill] sm:$0xff] %v6245_v49  ;;  %v6253_v46 = vmul.f32 %v7104_v63, %v6145_v11  ;;  %v7108_v18 = vld [vmem:[#allocation66_spill] sm:$0xff]  ;;  %v6265_v49 = vmul.f32 %v7110_v34, %v6136_v57  ;;  %v7114_v63 = vld [vmem:[#allocation69_spill] sm:$0xff] }
 0x521   :  { %7103 = vst [vmem:[#allocation43_spill] sm:$0xff] %v6249_v54  ;;  %1443 = vadd.xlane.f32.xlu0 %v1366_v8  ;;  %7107 = vst [vmem:[#allocation47_spill] sm:$0xff] %v6257_v30  ;;  %v6261_v7 = vmul.f32 %v7108_v18, %v6145_v11  ;;  %v6269_v54 = vmul.f32 %v7112_v29, %v6136_v57  ;;  %v7116_v8 = vld [vmem:[#allocation70_spill] sm:$0xff]  ;;  %v7118_v30 = vld [vmem:[#allocation71_spill] sm:$0xff] }
 0x522   :  { %7105 = vst [vmem:[#allocation45_spill] sm:$0xff] %v6253_v46  ;;  %7111 = vst [vmem:[#allocation52_spill] sm:$0xff] %v6265_v49  ;;  %v6273_v46 = vmul.f32 %v7114_v63, %v6145_v11  ;;  %v6277_v58 = vmul.f32 %v7116_v8, %v6145_v11  ;;  %v6281_v18 = vmul.f32 %v7118_v30, %v6136_v57  ;;  %v7121_v49 = vld [vmem:[#allocation73_spill] sm:$0xff]  ;;  %1437 = vadd.xlane.f32.xlu1 %v1363_v48 }
 0x523   :  { %7109 = vst [vmem:[#allocation49_spill] sm:$0xff] %v6261_v7  ;;  %7113 = vst [vmem:[#allocation55_spill] sm:$0xff] %v6269_v54  ;;  %v7119_v7 = vld [vmem:[#allocation72_spill] sm:$0xff]  ;;  %v6289_v29 = vmul.f32 %v7121_v49, %v6145_v11  ;;  %v7123_v54 = vld [vmem:[#allocation74_spill] sm:$0xff] }
 0x524   :  { %7115 = vst [vmem:[#allocation56_spill] sm:$0xff] %v6273_v46  ;;  %7117 = vst [vmem:[#allocation59_spill] sm:$0xff] %v6277_v58  ;;  %v6285_v34 = vmul.f32 %v7119_v7, %v6136_v57  ;;  %v6293_v63 = vmul.f32 %v7123_v54, %v6145_v11  ;;  %v7125_v46 = vld [vmem:[#allocation75_spill] sm:$0xff]  ;;  %v7127_v58 = vld [vmem:[#allocation76_spill] sm:$0xff] }
 0x525   :  { %7122 = vst [vmem:[#allocation63_spill] sm:$0xff] %v6289_v29  ;;  %v6297_v8 = vmul.f32 %v7125_v46, %v6136_v57  ;;  %v6301_v30 = vmul.f32 %v7127_v58, %v6136_v57  ;;  %v7129_v7 = vld [vmem:[#allocation77_spill] sm:$0xff]  ;;  %v7130_v49 = vld [vmem:[#allocation78_spill] sm:$0xff]  ;;  %v7132_v54 = vld [vmem:[#allocation79_spill] sm:$0xff]  ;;  %1447 = vadd.xlane.f32.xlu0 %v1368_v14  ;;  %v6341_v14 = vmul.f32 %v5949_v15, %v6145_v11 }
 0x526   :  { %7120 = vst [vmem:[#allocation60_spill] sm:$0xff] %v6285_v34  ;;  %7124 = vst [vmem:[#allocation64_spill] sm:$0xff] %v6293_v63  ;;  %v6305_v34 = vmul.f32 %v7129_v7, %v6145_v11  ;;  %v6309_v29 = vmul.f32 %v7130_v49, %v6145_v11  ;;  %v6313_v63 = vmul.f32 %v7132_v54, %v6136_v57  ;;  %v7134_v46 = vld [vmem:[#allocation80_spill] sm:$0xff]  ;;  %v7136_v58 = vld [vmem:[#allocation81_spill] sm:$0xff]  ;;  %1441 = vadd.xlane.f32.xlu1 %v1365_v33 }
 0x527   :  { %7126 = vst [vmem:[#allocation14_spill] sm:$0xff] %v6297_v8  ;;  %7128 = vst [vmem:[#allocation16_spill] sm:$0xff] %v6301_v30  ;;  %v6317_v8 = vmul.f32 %v7134_v46, %v6136_v57  ;;  %v6321_v48 = vmul.f32 %v7136_v58, %v6145_v11  ;;  %v7137_v7 = vld [vmem:[#allocation82_spill] sm:$0xff]  ;;  %v7139_v49 = vld [vmem:[#allocation83_spill] sm:$0xff] }
 0x528   :  { %7131 = vst [vmem:[#allocation19_spill] sm:$0xff] %v6309_v29  ;;  %7133 = vst [vmem:[#allocation10_spill] sm:$0xff] %v6313_v63  ;;  %v6325_v30 = vmul.f32 %v7137_v7, %v6145_v11  ;;  %v6329_v29 = vmul.f32 %v7139_v49, %v6136_v57  ;;  %v7140_v54 = vld [vmem:[#allocation84_spill] sm:$0xff]  ;;  %v7142_v46 = vld [vmem:[#allocation85_spill] sm:$0xff]  ;;  %v6349_v49 = vmul.f32 %v5953_v23, %v6136_v57 }
 0x529   :  { %7135 = vst [vmem:[#allocation23_spill] sm:$0xff] %v6317_v8  ;;  %v6333_v63 = vmul.f32 %v7140_v54, %v6136_v57  ;;  %v6337_v8 = vmul.f32 %v7142_v46, %v6145_v11  ;;  %7143 = vst [vmem:[#allocation42_spill] sm:$0xff] %v6341_v14  ;;  %v7144_v58 = vld [vmem:[#allocation86_spill] sm:$0xff]  ;;  %1451 = vadd.xlane.f32.xlu0 %v1370_v3  ;;  %v7147_v54 = vld [vmem:[#allocation15_spill] sm:$0xff] }
 0x52a   :  { %7138 = vst [vmem:[#allocation9_spill] sm:$0xff] %v6325_v30  ;;  %v6345_v7 = vmul.f32 %v7144_v58, %v6136_v57  ;;  %7146 = vst [vmem:[#allocation46_spill] sm:$0xff] %v6349_v49  ;;  %v7148_v46 = vld [vmem:[#allocation8_spill] sm:$0xff]  ;;  %v7150_v58 = vld [vmem:[#allocation21_spill] sm:$0xff] }
 0x52b   :  { %7141 = vst [vmem:[#allocation40_spill] sm:$0xff] %v6333_v63  ;;  %v1367_v63 = vmul.f32 %v7147_v54, %v5963_v59  ;;  %v2932_v30 = vmul.f32 %v7148_v46, %v6145_v11  ;;  %v7149_v15 = vld [vmem:[#allocation24_spill] sm:$0xff]  ;;  %v7151_v23 = vld [vmem:[#allocation18_spill] sm:$0xff]  ;;  %v7152_v3 = vld [vmem:[#allocation11_spill] sm:$0xff] }
 0x52c   :  { %7145 = vst [vmem:[#allocation44_spill] sm:$0xff] %v6345_v7  ;;  %v1369_v14 = vmul.f32 %v7149_v15, %v5963_v59  ;;  %v1372_v7 = vmul.f32 %v7150_v58, %v5956_v60  ;;  %v2931_v33 = vmul.f32 %v7151_v23, %v6136_v57  ;;  %v2934_v49 = vmul.f32 %v7152_v3, %v6145_v11  ;;  %v7153_v54 = vld [vmem:[#allocation27_spill] sm:$0xff]  ;;  %v7155_v15 = vld [vmem:[#allocation22_spill] sm:$0xff] }
 0x52d   :  { %1445 = vadd.xlane.f32.xlu1 %v1367_v63  ;;  %2997 = vadd.xlane.f32.xlu0 %v2932_v30  ;;  %v1371_v63 = vmul.f32 %v7153_v54, %v5963_v59  ;;  %v7154_v30 = vld [vmem:[#allocation29_spill] sm:$0xff]  ;;  %v7157_v23 = vld [vmem:[#allocation31_spill] sm:$0xff] }
 0x52e   :  { %v1374_v46 = vmul.f32 %v7154_v30, %v5956_v60  ;;  %v7159_v54 = vld [vmem:[#allocation25_spill] sm:$0xff]  ;;  %v7160_v30 = vld [vmem:[#allocation20_spill] sm:$0xff] }
 0x531   :  { %1449 = vadd.xlane.f32.xlu1 %v1369_v14  ;;  %1455 = vadd.xlane.f32.xlu0 %v1372_v7  ;;  %v2933_v14 = vmul.f32 %v7155_v15, %v6136_v57  ;;  %v7156_v7 = vld [vmem:[#allocation17_spill] sm:$0xff]  ;;  %v7161_v15 = vld [vmem:[#allocation35_spill] sm:$0xff] }
 0x532   :  { %v2936_v58 = vmul.f32 %v7156_v7, %v6145_v11  ;;  %v7162_v7 = vld [vmem:[#allocation26_spill] sm:$0xff] }
 0x535   :  { %2995 = vadd.xlane.f32.xlu1 %v2931_v33  ;;  %3001 = vadd.xlane.f32.xlu0 %v2934_v49  ;;  %v1373_v33 = vmul.f32 %v7157_v23, %v5963_v59  ;;  %v7158_v49 = vld [vmem:[#allocation33_spill] sm:$0xff] }
 0x536   :  { %v1376_v3 = vmul.f32 %v7158_v49, %v5956_v60  ;;  %v7163_v60 = vld [vmem:[#allocation28_spill] sm:$0xff] }
 0x537   :  { %v2940_v23 = vmul.f32 %v7163_v60, %v6145_v11  ;;  %v7175_v60 = vld [vmem:[#allocation47_spill] sm:$0xff] }
 0x539   :  { %1453 = vadd.xlane.f32.xlu1 %v1371_v63  ;;  %1459 = vadd.xlane.f32.xlu0 %v1374_v46  ;;  %v2935_v63 = vmul.f32 %v7159_v54, %v6136_v57  ;;  %v2938_v46 = vmul.f32 %v7160_v30, %v6145_v11 }
 0x53d   :  { %2999 = vadd.xlane.f32.xlu1 %v2933_v14  ;;  %3005 = vadd.xlane.f32.xlu0 %v2936_v58  ;;  %v1375_v14 = vmul.f32 %v7161_v15, %v5963_v59  ;;  %v2937_v58 = vmul.f32 %v7162_v7, %v6136_v57  ;;  %v7165_v59 = vld [vmem:[#allocation32_spill] sm:$0xff] }
 0x541   :  { %1457 = vadd.xlane.f32.xlu1 %v1373_v33  ;;  %1463 = vadd.xlane.f32.xlu0 %v1376_v3  ;;  %v7164_v33 = vld [vmem:[#allocation30_spill] sm:$0xff]  ;;  %v2942_v3 = vmul.f32 %v7165_v59, %v6145_v11 }
 0x542   :  { %v2939_v49 = vmul.f32 %v7164_v33, %v6136_v57  ;;  %v7176_v59 = vld [vmem:[#allocation94_spill] sm:$0xff] }
 0x545   :  { %3003 = vadd.xlane.f32.xlu1 %v2935_v63  ;;  %3009 = vadd.xlane.f32.xlu0 %v2938_v46  ;;  %v7167_v63 = vld [vmem:[#allocation36_spill] sm:$0xff]  ;;  %v7169_v46 = vld [vmem:[#allocation38_spill] sm:$0xff] }
 0x549   :  { %1461 = vadd.xlane.f32.xlu1 %v1375_v14  ;;  %1467 = vadd.xlane.f32.xlu0 %v5967_v32  ;;  %v7166_v32 = vld [vmem:[#allocation34_spill] sm:$0xff]  ;;  %v7174_v14 = vld [vmem:[#allocation7_spill] sm:$0xff] }
 0x54a   :  { %v2941_v54 = vmul.f32 %v7166_v32, %v6136_v57 }
 0x54d   :  { %3007 = vadd.xlane.f32.xlu1 %v2937_v58  ;;  %3013 = vadd.xlane.f32.xlu0 %v2940_v23 }
 0x551   :  { %1465 = vadd.xlane.f32.xlu1 %v6055_v17  ;;  %1471 = vadd.xlane.f32.xlu0 %v5971_v20  ;;  %v2944_v17 = vmul.f32 %v7167_v63, %v6145_v11  ;;  %v7168_v20 = vld [vmem:[#allocation37_spill] sm:$0xff] }
 0x552   :  { %v2943_v30 = vmul.f32 %v7168_v20, %v6136_v57 }
 0x555   :  { %3011 = vadd.xlane.f32.xlu1 %v2939_v49  ;;  %3017 = vadd.xlane.f32.xlu0 %v2942_v3 }
 0x559   :  { %1469 = vadd.xlane.f32.xlu1 %v6059_v50  ;;  %1475 = vadd.xlane.f32.xlu0 %v5975_v4  ;;  %v2946_v50 = vmul.f32 %v7169_v46, %v6145_v11  ;;  %v7170_v4 = vld [vmem:[#allocation39_spill] sm:$0xff] }
 0x55a   :  { %v2945_v15 = vmul.f32 %v7170_v4, %v6136_v57 }
 0x55d   :  { %3015 = vadd.xlane.f32.xlu1 %v2941_v54  ;;  %3021 = vadd.xlane.f32.xlu0 %v2944_v17  ;;  %v7177_v54 = vld [vmem:[#allocation88_spill] sm:$0xff] }
 0x561   :  { %1473 = vadd.xlane.f32.xlu1 %v6063_v25  ;;  %1479 = vadd.xlane.f32.xlu0 %v5979_v39 }
 0x565   :  { %3019 = vadd.xlane.f32.xlu1 %v2943_v30  ;;  %3025 = vadd.xlane.f32.xlu0 %v2946_v50  ;;  %v7178_v30 = vld [vmem:[#allocation52_spill] sm:$0xff] }
 0x569   :  { %1477 = vadd.xlane.f32.xlu1 %v6067_v22  ;;  %1483 = vadd.xlane.f32.xlu0 %v5983_v45 }
 0x56d   :  { %3023 = vadd.xlane.f32.xlu1 %v2945_v15  ;;  %3029 = vadd.xlane.f32.xlu0 %v6209_v5  ;;  %v7179_v15 = vld [vmem:[#allocation56_spill] sm:$0xff] }
 0x571   :  { %1481 = vadd.xlane.f32.xlu1 %v6071_v44  ;;  %1487 = vadd.xlane.f32.xlu0 %v5987_v28  ;;  %v7171_v28 = vld [vmem:[#allocation6_spill] sm:$0xff] }
 0x575   :  { %3027 = vadd.xlane.f32.xlu1 %v6149_v38  ;;  %3033 = vadd.xlane.f32.xlu0 %v6213_v13 }
 0x579   :  { %1485 = vadd.xlane.f32.xlu1 %v6075_v53  ;;  %1491 = vadd.xlane.f32.xlu0 %v5991_v36 }
 0x57d   :  { %3031 = vadd.xlane.f32.xlu1 %v6153_v0  ;;  %3037 = vadd.xlane.f32.xlu0 %v6217_v51 }
 0x581   :  { %1489 = vadd.xlane.f32.xlu1 %v6079_v10  ;;  %1495 = vadd.xlane.f32.xlu0 %v5995_v43 }
 0x585   :  { %3035 = vadd.xlane.f32.xlu1 %v6157_v19  ;;  %3041 = vadd.xlane.f32.xlu0 %v6221_v41 }
 0x589   :  { %1493 = vadd.xlane.f32.xlu1 %v6083_v27  ;;  %1499 = vadd.xlane.f32.xlu0 %v5999_v55  ;;  %v7172_v55 = vld [vmem:[#allocation5_spill] sm:$0xff] }
 0x58d   :  { %3039 = vadd.xlane.f32.xlu1 %v6161_v16  ;;  %3045 = vadd.xlane.f32.xlu0 %v6225_v61 }
 0x591   :  { %1497 = vadd.xlane.f32.xlu1 %v6087_v40  ;;  %1503 = vadd.xlane.f32.xlu0 %v6003_v2 }
 0x595   :  { %3043 = vadd.xlane.f32.xlu1 %v6165_v42  ;;  %3049 = vadd.xlane.f32.xlu0 %v6229_v37  ;;  %v7173_v37 = vld [vmem:[#allocation87_spill] sm:$0xff] }
 0x596   :  { %v1420_v39 = vpop.xlane.xlu0 %1419 }
 0x597   :  { %v1619_v36 = vrot.slane %v1420_v39, %v7171_v28 }
 0x599   :  { %1501 = vadd.xlane.f32.xlu1 %v6091_v6  ;;  %1507 = vadd.xlane.f32.xlu0 %v6007_v12 }
 0x59a   :  { %v1424_v45 = vpop.xlane.xlu0 %1423 }
 0x59b   :  { %v1418_v43 = vpop.xlane.xlu1 %1417  ;;  %v1629_v25 = vrot.slane %v1424_v45, %v7171_v28 }
 0x59c   :  { %v1614_v2 = vrot.slane %v1418_v43, %v7172_v55 }
 0x59d   :  { %3047 = vadd.xlane.f32.xlu1 %v6169_v26  ;;  %3053 = vadd.xlane.f32.xlu0 %v6233_v35 }
 0x59e   :  { %v1428_v61 = vpop.xlane.xlu0 %1427  ;;  %v1621_v5 = vsel %vm1620_vm5, %v1619_v36, %v1614_v2  ;;  %v7180_v2 = vld [vmem:[#allocation95_spill] sm:$0xff] }
 0x59f   :  { %v1422_v22 = vpop.xlane.xlu1 %1421  ;;  %v1638_v10 = vrot.slane %v1428_v61, %v7171_v28 }
 0x5a0   :  { %v1625_v12 = vrot.slane %v1422_v22, %v7172_v55 }
 0x5a1   :  { %1505 = vadd.xlane.f32.xlu1 %v6095_v56  ;;  %1511 = vadd.xlane.f32.xlu0 %v6011_v9 }
 0x5a2   :  { %v1432_v44 = vpop.xlane.xlu0 %1431  ;;  %v1630_v53 = vsel %vm1620_vm5, %v1629_v25, %v1625_v12  ;;  %v7181_v25 = vld [vmem:[#allocation89_spill] sm:$0xff] }
 0x5a3   :  { %v1902_v27 = vsel %vm1901_vm6, %v1630_v53, %v1621_v5  ;;  %v1426_v40 = vpop.xlane.xlu1 %1425  ;;  %v1647_v41 = vrot.slane %v1432_v44, %v7171_v28 }
 0x5a4   :  { %v1634_v6 = vrot.slane %v1426_v40, %v7172_v55  ;;  %v7183_v40 = vld [vmem:[#allocation96_spill] sm:$0xff] }
 0x5a5   :  { %3051 = vadd.xlane.f32.xlu1 %v6173_v1  ;;  %3057 = vadd.xlane.f32.xlu0 %v6237_v21 }
 0x5a6   :  { %v1436_v56 = vpop.xlane.xlu0 %1435  ;;  %v1639_v9 = vsel %vm1620_vm5, %v1638_v10, %v1634_v6  ;;  %v7182_v10 = vld [vmem:[#allocation63_spill] sm:$0xff] }
 0x5a7   :  { %v1904_v57 = vsel %vm1903_vm7, %v1639_v9, %v1902_v27  ;;  %v1430_v11 = vpop.xlane.xlu1 %1429  ;;  %v1656_v16 = vrot.slane %v1436_v56, %v7171_v28  ;;  %v7184_v56 = vld [vmem:[#allocation90_spill] sm:$0xff] }
 0x5a8   :  { %v1643_v38 = vrot.slane %v1430_v11, %v7172_v55  ;;  %v7186_v11 = vld [vmem:[#allocation97_spill] sm:$0xff] }
 0x5a9   :  { %1509 = vadd.xlane.f32.xlu1 %v6099_v62  ;;  %1515 = vadd.xlane.f32.xlu0 %v6015_v24 }
 0x5aa   :  { %v1440_v0 = vpop.xlane.xlu0 %1439  ;;  %v1648_v19 = vsel %vm1620_vm5, %v1647_v41, %v1643_v38  ;;  %v7185_v41 = vld [vmem:[#allocation14_spill] sm:$0xff] }
 0x5ab   :  { %v1906_v42 = vsel %vm1905_vm8, %v1648_v19, %v1904_v57  ;;  %v1434_v62 = vpop.xlane.xlu1 %1433  ;;  %v1665_v13 = vrot.slane %v1440_v0, %v7171_v28  ;;  %v7187_v0 = vld [vmem:[#allocation91_spill] sm:$0xff] }
 0x5ac   :  { %v1652_v26 = vrot.slane %v1434_v62, %v7172_v55 }
 0x5ad   :  { %3055 = vadd.xlane.f32.xlu1 %v6181_v47  ;;  %3061 = vadd.xlane.f32.xlu0 %v6241_v31 }
 0x5ae   :  { %v1444_v1 = vpop.xlane.xlu0 %1443  ;;  %v1657_v24 = vsel %vm1620_vm5, %v1656_v16, %v1652_v26  ;;  %v7188_v16 = vld [vmem:[#allocation10_spill] sm:$0xff] }
 0x5af   :  { %v1908_v51 = vsel %vm1907_vm9, %v1657_v24, %v1906_v42  ;;  %v1438_v47 = vpop.xlane.xlu1 %1437  ;;  %v1674_v7 = vrot.slane %v1444_v1, %v7171_v28  ;;  %v7189_v26 = vld [vmem:[#allocation98_spill] sm:$0xff] }
 0x5b0   :  { %v1661_v35 = vrot.slane %v1438_v47, %v7172_v55  ;;  %v7191_v47 = vld [vmem:[#allocation99_spill] sm:$0xff] }
 0x5b1   :  { %1513 = vadd.xlane.f32.xlu1 %v6103_v52  ;;  %1519 = vadd.xlane.f32.xlu0 %v7173_v37 }
 0x5b2   :  { %v1448_v21 = vpop.xlane.xlu0 %1447  ;;  %v1666_v31 = vsel %vm1620_vm5, %v1665_v13, %v1661_v35 }
 0x5b3   :  { %v1442_v58 = vpop.xlane.xlu1 %1441  ;;  %v1910_v52 = vsel %vm1909_vm0, %v1666_v31, %v1908_v51  ;;  %v1683_v3 = vrot.slane %v1448_v21, %v7171_v28  ;;  %v7193_v21 = vld [vmem:[#allocation44_spill] sm:$0xff] }
 0x5b4   :  { %v1670_v23 = vrot.slane %v1442_v58, %v7172_v55  ;;  %v7195_v58 = vld [vmem:[#allocation100_spill] sm:$0xff] }
 0x5b5   :  { %3059 = vadd.xlane.f32.xlu1 %v7174_v14  ;;  %3065 = vadd.xlane.f32.xlu0 %v7175_v60  ;;  %v7194_v14 = vld [vmem:[#allocation41_spill] sm:$0xff] }
 0x5b6   :  { %v1452_v33 = vpop.xlane.xlu0 %1451  ;;  %v1675_v49 = vsel %vm1620_vm5, %v1674_v7, %v1670_v23 }
 0x5b7   :  { %v1912_v63 = vsel %vm1911_vm10, %v1675_v49, %v1910_v52  ;;  %v1692_v46 = vrot.slane %v1452_v33, %v7171_v28  ;;  %v7197_v52 = vld [vmem:[#allocation13_spill] sm:$0xff] }
 0x5b8   :  { %v7198_v33 = vld [vmem:[#allocation45_spill] sm:$0xff] }
 0x5b9   :  { %1517 = vadd.xlane.f32.xlu1 %v7176_v59  ;;  %1523 = vadd.xlane.f32.xlu0 %v7177_v54  ;;  %v7199_v59 = vld [vmem:[#allocation12_spill] sm:$0xff] }
 0x5ba   :  { %v1446_v32 = vpop.xlane.xlu1 %1445  ;;  %v2998_v20 = vpop.xlane.xlu0 %2997 }
 0x5bb   :  { %v1679_v17 = vrot.slane %v1446_v32, %v7172_v55  ;;  %v3194_v61 = vrot.slane %v2998_v20, %v7171_v28  ;;  %v7200_v32 = vld [vmem:[#allocation49_spill] sm:$0xff]  ;;  %v7202_v20 = vld [vmem:[#allocation59_spill] sm:$0xff] }
 0x5bd   :  { %3063 = vadd.xlane.f32.xlu1 %v7178_v30  ;;  %v1684_v50 = vsel %vm1620_vm5, %v1683_v3, %v1679_v17  ;;  %3069 = vadd.xlane.f32.xlu0 %v7179_v15 }
 0x5be   :  { %v1450_v4 = vpop.xlane.xlu1 %1449  ;;  %v6481_v39 = vsel %vm1913_vm11, %v1684_v50, %v1912_v63  ;;  %v6484_v36 = vpop.xlane.xlu0 %1455  ;;  %v7201_v63 = vld [vmem:[#allocation50_spill] sm:$0xff] }
 0x5bf   :  { %v1688_v45 = vrot.slane %v1450_v4, %v7172_v55  ;;  %v7203_v4 = vld [vmem:[#allocation55_spill] sm:$0xff] }
 0x5c1   :  { %v6487_v43 = vsel %vm1620_vm5, %v1692_v46, %v1688_v45  ;;  %1521 = vadd.xlane.f32.xlu1 %v7180_v2  ;;  %1527 = vadd.xlane.f32.xlu0 %v7181_v25  ;;  %v1701_v46 = vrot.slane %v6484_v36, %v7171_v28 }
 0x5c2   :  { %v2996_v5 = vpop.xlane.xlu1 %2995  ;;  %v6493_v12 = vpop.xlane.xlu0 %3001 }
 0x5c3   :  { %v3190_v22 = vrot.slane %v2996_v5, %v7172_v55 }
 0x5c5   :  { %v6496_v44 = vsel %vm1620_vm5, %v3194_v61, %v3190_v22  ;;  %3067 = vadd.xlane.f32.xlu1 %v6281_v18  ;;  %3073 = vadd.xlane.f32.xlu0 %v7182_v10  ;;  %v7204_v61 = vld [vmem:[#allocation64_spill] sm:$0xff] }
 0x5c6   :  { %v6499_v53 = vpop.xlane.xlu1 %1453  ;;  %v6502_v27 = vpop.xlane.xlu0 %1459 }
 0x5c7   :  { %v1697_v50 = vrot.slane %v6499_v53, %v7172_v55  ;;  %v1710_v15 = vrot.slane %v6502_v27, %v7171_v28 }
 0x5c9   :  { %1525 = vadd.xlane.f32.xlu1 %v7183_v40  ;;  %1531 = vadd.xlane.f32.xlu0 %v7184_v56  ;;  %v1702_v10 = vsel %vm1620_vm5, %v1701_v46, %v1697_v50  ;;  %v7205_v56 = vld [vmem:[#allocation60_spill] sm:$0xff] }
 0x5ca   :  { %v6505_v6 = vpop.xlane.xlu1 %2999  ;;  %v6508_v9 = vpop.xlane.xlu0 %3005 }
 0x5cd   :  { %3071 = vadd.xlane.f32.xlu1 %v7185_v41  ;;  %3077 = vadd.xlane.f32.xlu0 %v6305_v34  ;;  %v7190_v34 = vld [vmem:[#allocation92_spill] sm:$0xff] }
 0x5ce   :  { %v1458_v57 = vpop.xlane.xlu1 %1457  ;;  %v6512_v18 = vpop.xlane.xlu0 %1463 }
 0x5cf   :  { %v1706_v45 = vrot.slane %v1458_v57, %v7172_v55  ;;  %v1719_v5 = vrot.slane %v6512_v18, %v7171_v28 }
 0x5d1   :  { %1529 = vadd.xlane.f32.xlu1 %v7186_v11  ;;  %1535 = vadd.xlane.f32.xlu0 %v7187_v0  ;;  %v1711_v41 = vsel %vm1620_vm5, %v1710_v15, %v1706_v45  ;;  %v7206_v0 = vld [vmem:[#allocation19_spill] sm:$0xff] }
 0x5d2   :  { %v6515_v38 = vpop.xlane.xlu1 %3003  ;;  %v6518_v19 = vpop.xlane.xlu0 %3009 }
 0x5d5   :  { %3075 = vadd.xlane.f32.xlu1 %v7188_v16  ;;  %3081 = vadd.xlane.f32.xlu0 %v6321_v48  ;;  %v7192_v48 = vld [vmem:[#allocation93_spill] sm:$0xff] }
 0x5d6   :  { %v1462_v42 = vpop.xlane.xlu1 %1461  ;;  %v1468_v62 = vpop.xlane.xlu0 %1467 }
 0x5d7   :  { %v1715_v25 = vrot.slane %v1462_v42, %v7172_v55  ;;  %v1728_v22 = vrot.slane %v1468_v62, %v7171_v28 }
 0x5d9   :  { %1533 = vadd.xlane.f32.xlu1 %v7189_v26  ;;  %1539 = vadd.xlane.f32.xlu0 %v7190_v34  ;;  %v1720_v16 = vsel %vm1620_vm5, %v1719_v5, %v1715_v25  ;;  %v1915_v34 = vsel %vm1901_vm6, %v1702_v10, %v6487_v43 }
 0x5da   :  { %v6523_v1 = vpop.xlane.xlu1 %3007  ;;  %v6526_v24 = vpop.xlane.xlu0 %3013 }
 0x5dd   :  { %3079 = vadd.xlane.f32.xlu1 %v6329_v29  ;;  %3085 = vadd.xlane.f32.xlu0 %v6337_v8  ;;  %v7196_v8 = vld [vmem:[#allocation43_spill] sm:$0xff] }
 0x5de   :  { %v1466_v13 = vpop.xlane.xlu1 %1465  ;;  %v1472_v51 = vpop.xlane.xlu0 %1471 }
 0x5df   :  { %v1724_v53 = vrot.slane %v1466_v13, %v7172_v55  ;;  %v1737_v27 = vrot.slane %v1472_v51, %v7171_v28  ;;  %v1916_v51 = vsel %vm1903_vm7, %v1711_v41, %v1915_v34 }
 0x5e1   :  { %1537 = vadd.xlane.f32.xlu1 %v7191_v47  ;;  %1543 = vadd.xlane.f32.xlu0 %v7192_v48  ;;  %v1729_v13 = vsel %vm1620_vm5, %v1728_v22, %v1724_v53  ;;  %v7207_v48 = vld [vmem:[#allocation16_spill] sm:$0xff] }
 0x5e2   :  { %v6531_v37 = vpop.xlane.xlu1 %3011  ;;  %v6534_v35 = vpop.xlane.xlu0 %3017 }
 0x5e5   :  { %3083 = vadd.xlane.f32.xlu1 %v7193_v21  ;;  %3089 = vadd.xlane.f32.xlu0 %v7194_v14  ;;  %v1917_v21 = vsel %vm1905_vm8, %v1720_v16, %v1916_v51 }
 0x5e6   :  { %v1470_v31 = vpop.xlane.xlu1 %1469  ;;  %v1476_v7 = vpop.xlane.xlu0 %1475 }
 0x5e7   :  { %v1733_v40 = vrot.slane %v1470_v31, %v7172_v55  ;;  %v1746_v57 = vrot.slane %v1476_v7, %v7171_v28  ;;  %v7208_v7 = vld [vmem:[#allocation9_spill] sm:$0xff] }
 0x5e9   :  { %1541 = vadd.xlane.f32.xlu1 %v7195_v58  ;;  %3093 = vadd.xlane.f32.xlu0 %v7196_v8  ;;  %v1738_v47 = vsel %vm1620_vm5, %v1737_v27, %v1733_v40  ;;  %v1918_v58 = vsel %vm1907_vm9, %v1729_v13, %v1917_v21  ;;  %v7212_v40 = vld [vmem:[#allocation46_spill] sm:$0xff] }
 0x5ea   :  { %v6539_v29 = vpop.xlane.xlu1 %3015  ;;  %v6542_v60 = vpop.xlane.xlu0 %3021 }
 0x5eb   :  { %v3248_v45 = vrot.slane %v6542_v60, %v7171_v28 }
 0x5ed   :  { %3087 = vadd.xlane.f32.xlu1 %v7197_v52  ;;  %3097 = vadd.xlane.f32.xlu0 %v7198_v33  ;;  %v3203_v52 = vrot.slane %v6493_v12, %v7171_v28  ;;  %v1919_v33 = vsel %vm1909_vm0, %v1738_v47, %v1918_v58  ;;  %v3217_v12 = vrot.slane %v6523_v1, %v7172_v55 }
 0x5ee   :  { %v1474_v23 = vpop.xlane.xlu1 %1473  ;;  %v1480_v49 = vpop.xlane.xlu0 %1479  ;;  %v3235_v1 = vrot.slane %v6539_v29, %v7172_v55 }
 0x5ef   :  { %v1742_v18 = vrot.slane %v1474_v23, %v7172_v55  ;;  %v1755_v42 = vrot.slane %v1480_v49, %v7171_v28  ;;  %v3199_v23 = vrot.slane %v6505_v6, %v7172_v55  ;;  %v3212_v49 = vrot.slane %v6508_v9, %v7171_v28  ;;  %v7210_v6 = vld [vmem:[#allocation42_spill] sm:$0xff] }
 0x5f0   :  { %v3230_v9 = vrot.slane %v6526_v24, %v7171_v28 }
 0x5f1   :  { %3091 = vadd.xlane.f32.xlu1 %v7199_v59  ;;  %3101 = vadd.xlane.f32.xlu0 %v7200_v32  ;;  %v1747_v31 = vsel %vm1620_vm5, %v1746_v57, %v1742_v18  ;;  %v3208_v59 = vrot.slane %v6515_v38, %v7172_v55  ;;  %v7209_v32 = vld [vmem:[#allocation23_spill] sm:$0xff]  ;;  %v3226_v38 = vrot.slane %v6531_v37, %v7172_v55  ;;  %v7211_v37 = vld [vmem:[#allocation40_spill] sm:$0xff]  ;;  %v1941_v18 = vsel %vm1940_vm12, %v6481_v39, 0.0 }
 0x5f2   :  { %v6547_v3 = vpop.xlane.xlu1 %3019  ;;  %v6550_v54 = vpop.xlane.xlu0 %3025 }
 0x5f3   :  { %v3213_v15 = vsel %vm1620_vm5, %v3212_v49, %v3208_v59  ;;  %v3244_v24 = vrot.slane %v6547_v3, %v7172_v55  ;;  %v3231_v22 = vsel %vm1620_vm5, %v3230_v9, %v3226_v38 }
 0x5f5   :  { %3095 = vadd.xlane.f32.xlu1 %v7201_v63  ;;  %3105 = vadd.xlane.f32.xlu0 %v7202_v20  ;;  %v1920_v63 = vsel %vm1911_vm10, %v1747_v31, %v1919_v33 }
 0x5f6   :  { %v1478_v17 = vpop.xlane.xlu1 %1477  ;;  %v6554_v30 = vpop.xlane.xlu0 %1483 }
 0x5f7   :  { %v1751_v62 = vrot.slane %v1478_v17, %v7172_v55  ;;  %v3221_v17 = vrot.slane %v6518_v19, %v7171_v28  ;;  %v3239_v19 = vrot.slane %v6534_v35, %v7171_v28  ;;  %v3257_v35 = vrot.slane %v6550_v54, %v7171_v28 }
 0x5f8   :  { %v3249_v54 = vsel %vm1620_vm5, %v3248_v45, %v3244_v24 }
 0x5f9   :  { %3099 = vadd.xlane.f32.xlu1 %v7203_v4  ;;  %3109 = vadd.xlane.f32.xlu0 %v7204_v61  ;;  %v1756_v43 = vsel %vm1620_vm5, %v1755_v42, %v1751_v62  ;;  %v3204_v4 = vsel %vm1620_vm5, %v3203_v52, %v3199_v23  ;;  %v3222_v5 = vsel %vm1620_vm5, %v3221_v17, %v3217_v12 }
 0x5fa   :  { %v6564_v2 = vpop.xlane.xlu1 %3023  ;;  %v6570_v36 = vpop.xlane.xlu0 %3029  ;;  %v1921_v46 = vsel %vm1913_vm11, %v1756_v43, %v1920_v63  ;;  %v3475_v60 = vsel %vm1901_vm6, %v3204_v4, %v6496_v44  ;;  %v3240_v10 = vsel %vm1620_vm5, %v3239_v19, %v3235_v1  ;;  %v1764_v63 = vrot.slane %v6554_v30, %v7171_v28 }
 0x5fb   :  { %v1944_v61 = vsel %vm1940_vm12, %v1921_v46, 0.0  ;;  %v3253_v29 = vrot.slane %v6564_v2, %v7172_v55  ;;  %v3476_v53 = vsel %vm1903_vm7, %v3213_v15, %v3475_v60  ;;  %v3266_v12 = vrot.slane %v6570_v36, %v7171_v28 }
 0x5fc   :  { %v3477_v27 = vsel %vm1905_vm8, %v3222_v5, %v3476_v53 }
 0x5fd   :  { %3103 = vadd.xlane.f32.xlu1 %v7205_v56  ;;  %3113 = vadd.xlane.f32.xlu0 %v7206_v0  ;;  %v3478_v2 = vsel %vm1907_vm9, %v3231_v22, %v3477_v27  ;;  %v3258_v41 = vsel %vm1620_vm5, %v3257_v35, %v3253_v29 }
 0x5fe   :  { %v6581_v11 = vpop.xlane.xlu1 %1481  ;;  %v6587_v26 = vpop.xlane.xlu0 %1487  ;;  %v3479_v44 = vsel %vm1909_vm0, %v3240_v10, %v3478_v2 }
 0x5ff   :  { %v3480_v0 = vsel %vm1911_vm10, %v3249_v54, %v3479_v44  ;;  %v1773_v23 = vrot.slane %v6587_v26, %v7171_v28  ;;  %v1760_v17 = vrot.slane %v6581_v11, %v7172_v55 }
 0x600   :  { %v3481_v16 = vsel %vm1913_vm11, %v3258_v41, %v3480_v0 }
 0x601   :  { %3107 = vadd.xlane.f32.xlu1 %v7207_v48  ;;  %3117 = vadd.xlane.f32.xlu0 %v7208_v7  ;;  %v3507_v34 = vsel %vm1940_vm12, %v3481_v16, 0.0  ;;  %v1765_v19 = vsel %vm1620_vm5, %v1764_v63, %v1760_v17 }
 0x602   :  { %v6597_v14 = vpop.xlane.xlu1 %3027  ;;  %v6601_v8 = vpop.xlane.xlu0 %3033 }
 0x603   :  { %v3262_v26 = vrot.slane %v6597_v14, %v7172_v55 }
 0x605   :  { %3111 = vadd.xlane.f32.xlu1 %v7209_v32  ;;  %3121 = vadd.xlane.f32.xlu0 %v7210_v6  ;;  %v3267_v1 = vsel %vm1620_vm5, %v3266_v12, %v3262_v26 }
 0x606   :  { %v6619_v20 = vpop.xlane.xlu1 %1485  ;;  %v6627_v50 = vpop.xlane.xlu0 %1491 }
 0x607   :  { %v1769_v33 = vrot.slane %v6619_v20, %v7172_v55  ;;  %v1782_v59 = vrot.slane %v6627_v50, %v7171_v28  ;;  %v3275_v20 = vrot.slane %v6601_v8, %v7171_v28 }
 0x609   :  { %3115 = vadd.xlane.f32.xlu1 %v7211_v37  ;;  %1945 = vadd.xlane.f32.xlu0 %v1944_v61  ;;  %v1774_v9 = vsel %vm1620_vm5, %v1773_v23, %v1769_v33 }
 0x60a   :  { %v3032_v25 = vpop.xlane.xlu1 %3031  ;;  %v6649_v3 = vpop.xlane.xlu0 %3037  ;;  %v1922_v24 = vsel %vm1901_vm6, %v1774_v9, %v1765_v19 }
 0x60b   :  { %v3271_v6 = vrot.slane %v3032_v25, %v7172_v55  ;;  %v3284_v30 = vrot.slane %v6649_v3, %v7171_v28 }
 0x60d   :  { %3119 = vadd.xlane.f32.xlu1 %v7212_v40  ;;  %v3276_v37 = vsel %vm1620_vm5, %v3275_v20, %v3271_v6 }
 0x60e   :  { %v1490_v56 = vpop.xlane.xlu1 %1489  ;;  %v1496_v57 = vpop.xlane.xlu0 %1495 }
 0x60f   :  { %v1778_v32 = vrot.slane %v1490_v56, %v7172_v55  ;;  %v1791_v38 = vrot.slane %v1496_v57, %v7171_v28 }
 0x611   :  { %1942 = vadd.xlane.f32.xlu1 %v1941_v18  ;;  %v1783_v36 = vsel %vm1620_vm5, %v1782_v59, %v1778_v32 }
 0x612   :  { %v3036_v42 = vpop.xlane.xlu1 %3035  ;;  %v6663_v62 = vpop.xlane.xlu0 %3041  ;;  %v1923_v29 = vsel %vm1903_vm7, %v1783_v36, %v1922_v24 }
 0x613   :  { %v3280_v14 = vrot.slane %v3036_v42, %v7172_v55  ;;  %v3293_v60 = vrot.slane %v6663_v62, %v7171_v28  ;;  %v3482_v42 = vsel %vm1901_vm6, %v3276_v37, %v3267_v1 }
 0x615   :  { %3508 = vadd.xlane.f32.xlu1 %v3507_v34  ;;  %v3285_v53 = vsel %vm1620_vm5, %v3284_v30, %v3280_v14 }
 0x616   :  { %v1494_v13 = vpop.xlane.xlu1 %1493  ;;  %v1500_v51 = vpop.xlane.xlu0 %1499 }
 0x617   :  { %v1787_v11 = vrot.slane %v1494_v13, %v7172_v55  ;;  %v1800_v4 = vrot.slane %v1500_v51, %v7171_v28 }
 0x619   :  { %v1792_v25 = vsel %vm1620_vm5, %v1791_v38, %v1787_v11 }
 0x61a   :  { %v3040_v47 = vpop.xlane.xlu1 %3039  ;;  %v6666_v48 = vpop.xlane.xlu0 %3045  ;;  %v1924_v44 = vsel %vm1905_vm8, %v1792_v25, %v1923_v29 }
 0x61b   :  { %v3289_v22 = vrot.slane %v3040_v47, %v7172_v55  ;;  %v3302_v27 = vrot.slane %v6666_v48, %v7171_v28  ;;  %v3483_v47 = vsel %vm1903_vm7, %v3285_v53, %v3482_v42 }
 0x61d   :  { %v3294_v62 = vsel %vm1620_vm5, %v3293_v60, %v3289_v22 }
 0x61e   :  { %v1498_v21 = vpop.xlane.xlu1 %1497  ;;  %v1504_v31 = vpop.xlane.xlu0 %1503 }
 0x61f   :  { %v1796_v8 = vrot.slane %v1498_v21, %v7172_v55  ;;  %v1809_v15 = vrot.slane %v1504_v31, %v7171_v28 }
 0x621   :  { %v1801_v10 = vsel %vm1620_vm5, %v1800_v4, %v1796_v8 }
 0x622   :  { %v3044_v7 = vpop.xlane.xlu1 %3043  ;;  %v3050_v39 = vpop.xlane.xlu0 %3049  ;;  %v1925_v34 = vsel %vm1907_vm9, %v1801_v10, %v1924_v44 }
 0x623   :  { %v3298_v54 = vrot.slane %v3044_v7, %v7172_v55  ;;  %v3311_v2 = vrot.slane %v3050_v39, %v7171_v28 }
 0x625   :  { %v3303_v48 = vsel %vm1620_vm5, %v3302_v27, %v3298_v54 }
 0x626   :  { %v1502_v58 = vpop.xlane.xlu1 %1501  ;;  %v1508_v43 = vpop.xlane.xlu0 %1507 }
 0x627   :  { %v1805_v45 = vrot.slane %v1502_v58, %v7172_v55  ;;  %v1818_v61 = vrot.slane %v1508_v43, %v7171_v28  ;;  %v3484_v43 = vsel %vm1905_vm8, %v3294_v62, %v3483_v47 }
 0x629   :  { %v1810_v40 = vsel %vm1620_vm5, %v1809_v15, %v1805_v45 }
 0x62a   :  { %v3048_v52 = vpop.xlane.xlu1 %3047  ;;  %v3054_v49 = vpop.xlane.xlu0 %3053  ;;  %v1926_v21 = vsel %vm1909_vm0, %v1810_v40, %v1925_v34 }
 0x62b   :  { %v3307_v56 = vrot.slane %v3048_v52, %v7172_v55  ;;  %v3320_v18 = vrot.slane %v3054_v49, %v7171_v28  ;;  %v3485_v49 = vsel %vm1907_vm9, %v3303_v48, %v3484_v43 }
 0x62d   :  { %v3312_v31 = vsel %vm1620_vm5, %v3311_v2, %v3307_v56 }
 0x62e   :  { %v1506_v46 = vpop.xlane.xlu1 %1505  ;;  %v1512_v50 = vpop.xlane.xlu0 %1511  ;;  %v3486_v17 = vsel %vm1909_vm0, %v3312_v31, %v3485_v49 }
 0x62f   :  { %v1814_v5 = vrot.slane %v1506_v46, %v7172_v55  ;;  %v1827_v41 = vrot.slane %v1512_v50, %v7171_v28 }
 0x631   :  { %v1819_v57 = vsel %vm1620_vm5, %v1818_v61, %v1814_v5 }
 0x632   :  { %v3052_v35 = vpop.xlane.xlu1 %3051  ;;  %v3058_v3 = vpop.xlane.xlu0 %3057  ;;  %v1927_v58 = vsel %vm1911_vm10, %v1819_v57, %v1926_v21 }
 0x633   :  { %v3316_v0 = vrot.slane %v3052_v35, %v7172_v55  ;;  %v3329_v7 = vrot.slane %v3058_v3, %v7171_v28 }
 0x635   :  { %v3321_v52 = vsel %vm1620_vm5, %v3320_v18, %v3316_v0 }
 0x636   :  { %v1510_v16 = vpop.xlane.xlu1 %1509  ;;  %v6725_v51 = vpop.xlane.xlu0 %1515  ;;  %v3487_v26 = vsel %vm1911_vm10, %v3321_v52, %v3486_v17 }
 0x637   :  { %v1823_v13 = vrot.slane %v1510_v16, %v7172_v55  ;;  %v1836_v40 = vrot.slane %v6725_v51, %v7171_v28 }
 0x639   :  { %v1828_v39 = vsel %vm1620_vm5, %v1827_v41, %v1823_v13 }
 0x63a   :  { %v3056_v23 = vpop.xlane.xlu1 %3055  ;;  %v1928_v33 = vsel %vm1913_vm11, %v1828_v39, %v1927_v58  ;;  %v3062_v63 = vpop.xlane.xlu0 %3061 }
 0x63b   :  { %v3325_v59 = vrot.slane %v3056_v23, %v7172_v55  ;;  %v1947_v32 = vsel %vm1940_vm12, %v1928_v33, 0.0  ;;  %v3338_v56 = vrot.slane %v3062_v63, %v7171_v28 }
 0x63c   :  { %1948 = vadd.xlane.f32.xlu1 %v1947_v32 }
 0x63d   :  { %v3330_v12 = vsel %vm1620_vm5, %v3329_v7, %v3325_v59 }
 0x63e   :  { %v1514_v20 = vpop.xlane.xlu1 %1513  ;;  %v3488_v6 = vsel %vm1913_vm11, %v3330_v12, %v3487_v26  ;;  %v1520_v9 = vpop.xlane.xlu0 %1519 }
 0x63f   :  { %v3510_v46 = vsel %vm1940_vm12, %v3488_v6, 0.0  ;;  %v1845_v3 = vrot.slane %v1520_v9, %v7171_v28  ;;  %v1832_v2 = vrot.slane %v1514_v20, %v7172_v55 }
 0x640   :  { %3511 = vadd.xlane.f32.xlu0 %v3510_v46 }
 0x641   :  { %v1837_v21 = vsel %vm1620_vm5, %v1836_v40, %v1832_v2 }
 0x642   :  { %v3060_v30 = vpop.xlane.xlu1 %3059  ;;  %v3066_v38 = vpop.xlane.xlu0 %3065 }
 0x643   :  { %v3334_v41 = vrot.slane %v3060_v30, %v7172_v55  ;;  %v3347_v44 = vrot.slane %v3066_v38, %v7171_v28 }
 0x645   :  { %v3339_v31 = vsel %vm1620_vm5, %v3338_v56, %v3334_v41 }
 0x646   :  { %v1518_v11 = vpop.xlane.xlu1 %1517  ;;  %v1524_v50 = vpop.xlane.xlu0 %1523 }
 0x647   :  { %v1841_v53 = vrot.slane %v1518_v11, %v7172_v55  ;;  %v1854_v27 = vrot.slane %v1524_v50, %v7171_v28 }
 0x649   :  { %v1846_v0 = vsel %vm1620_vm5, %v1845_v3, %v1841_v53 }
 0x64a   :  { %v3064_v36 = vpop.xlane.xlu1 %3063  ;;  %v3070_v14 = vpop.xlane.xlu0 %3069  ;;  %v1929_v58 = vsel %vm1901_vm6, %v1846_v0, %v1837_v21 }
 0x64b   :  { %v3343_v57 = vrot.slane %v3064_v36, %v7172_v55  ;;  %v3356_v16 = vrot.slane %v3070_v14, %v7171_v28 }
 0x64d   :  { %v3348_v43 = vsel %vm1620_vm5, %v3347_v44, %v3343_v57 }
 0x64e   :  { %v1522_v4 = vpop.xlane.xlu1 %1521  ;;  %v1528_v8 = vpop.xlane.xlu0 %1527 }
 0x64f   :  { %v1850_v54 = vrot.slane %v1522_v4, %v7172_v55  ;;  %v1863_v42 = vrot.slane %v1528_v8, %v7171_v28  ;;  %v3489_v8 = vsel %vm1901_vm6, %v3348_v43, %v3339_v31 }
 0x651   :  { %v1855_v13 = vsel %vm1620_vm5, %v1854_v27, %v1850_v54 }
 0x652   :  { %v3068_v19 = vpop.xlane.xlu1 %3067  ;;  %v6745_v1 = vpop.xlane.xlu0 %3073  ;;  %v1930_v49 = vsel %vm1903_vm7, %v1855_v13, %v1929_v58 }
 0x653   :  { %v3352_v51 = vrot.slane %v3068_v19, %v7172_v55  ;;  %v3365_v32 = vrot.slane %v6745_v1, %v7171_v28 }
 0x655   :  { %v3357_v12 = vsel %vm1620_vm5, %v3356_v16, %v3352_v51 }
 0x656   :  { %v1526_v15 = vpop.xlane.xlu1 %1525  ;;  %v1532_v45 = vpop.xlane.xlu0 %1531 }
 0x657   :  { %v1859_v62 = vrot.slane %v1526_v15, %v7172_v55  ;;  %v1872_v47 = vrot.slane %v1532_v45, %v7171_v28 }
 0x659   :  { %v1864_v59 = vsel %vm1620_vm5, %v1863_v42, %v1859_v62 }
 0x65a   :  { %v3072_v24 = vpop.xlane.xlu1 %3071  ;;  %v6747_v37 = vpop.xlane.xlu0 %3077  ;;  %v1931_v11 = vsel %vm1905_vm8, %v1864_v59, %v1930_v49 }
 0x65b   :  { %v3361_v63 = vrot.slane %v3072_v24, %v7172_v55  ;;  %v3374_v20 = vrot.slane %v6747_v37, %v7171_v28  ;;  %v3490_v24 = vsel %vm1903_vm7, %v3357_v12, %v3489_v8 }
 0x65d   :  { %v3366_v19 = vsel %vm1620_vm5, %v3365_v32, %v3361_v63 }
 0x65e   :  { %v1530_v61 = vpop.xlane.xlu1 %1529  ;;  %v1536_v5 = vpop.xlane.xlu0 %1535 }
 0x65f   :  { %v1868_v48 = vrot.slane %v1530_v61, %v7172_v55  ;;  %v1881_v7 = vrot.slane %v1536_v5, %v7171_v28 }
 0x661   :  { %v1873_v26 = vsel %vm1620_vm5, %v1872_v47, %v1868_v48 }
 0x662   :  { %v3076_v35 = vpop.xlane.xlu1 %3075  ;;  %v3082_v29 = vpop.xlane.xlu0 %3081  ;;  %v1932_v1 = vsel %vm1907_vm9, %v1873_v26, %v1931_v11 }
 0x663   :  { %v3370_v6 = vrot.slane %v3076_v35, %v7172_v55  ;;  %v3383_v9 = vrot.slane %v3082_v29, %v7171_v28 }
 0x665   :  { %v3375_v37 = vsel %vm1620_vm5, %v3374_v20, %v3370_v6 }
 0x666   :  { %v1534_v25 = vpop.xlane.xlu1 %1533  ;;  %v1540_v60 = vpop.xlane.xlu0 %1539 }
 0x667   :  { %v1877_v39 = vrot.slane %v1534_v25, %v7172_v55  ;;  %v1890_v52 = vrot.slane %v1540_v60, %v7171_v28  ;;  %v3491_v60 = vsel %vm1905_vm8, %v3366_v19, %v3490_v24 }
 0x669   :  { %v1882_v46 = vsel %vm1620_vm5, %v1881_v7, %v1877_v39 }
 0x66a   :  { %v3080_v22 = vpop.xlane.xlu1 %3079  ;;  %v3086_v10 = vpop.xlane.xlu0 %3085  ;;  %v1933_v61 = vsel %vm1909_vm0, %v1882_v46, %v1932_v1 }
 0x66b   :  { %v3379_v30 = vrot.slane %v3080_v22, %v7172_v55  ;;  %v3392_v36 = vrot.slane %v3086_v10, %v7171_v28  ;;  %v3492_v10 = vsel %vm1907_vm9, %v3375_v37, %v3491_v60 }
 0x66d   :  { %v3384_v5 = vsel %vm1620_vm5, %v3383_v9, %v3379_v30 }
 0x66e   :  { %v1538_v18 = vpop.xlane.xlu1 %1537  ;;  %v1544_v34 = vpop.xlane.xlu0 %1543  ;;  %v3493_v2 = vsel %vm1909_vm0, %v3384_v5, %v3492_v10 }
 0x66f   :  { %v1886_v23 = vrot.slane %v1538_v18, %v7172_v55  ;;  %v1899_v38 = vrot.slane %v1544_v34, %v7171_v28 }
 0x671   :  { %v1891_v50 = vsel %vm1620_vm5, %v1890_v52, %v1886_v23 }
 0x672   :  { %v3084_v33 = vpop.xlane.xlu1 %3083  ;;  %v3090_v17 = vpop.xlane.xlu0 %3089  ;;  %v1934_v25 = vsel %vm1911_vm10, %v1891_v50, %v1933_v61 }
 0x673   :  { %v3388_v14 = vrot.slane %v3084_v33, %v7172_v55  ;;  %v3401_v35 = vrot.slane %v3090_v17, %v7171_v28 }
 0x675   :  { %v3393_v22 = vsel %vm1620_vm5, %v3392_v36, %v3388_v14  ;;  %v6839_v36 = vld [vmem:[%s6905_s3 + $0x18] sm:$0xff] }
 0x676   :  { %v1542_v4 = vpop.xlane.xlu1 %1541  ;;  %v3094_v45 = vpop.xlane.xlu0 %3093  ;;  %v3494_v41 = vsel %vm1911_vm10, %v3393_v22, %v3493_v2 }
 0x677   :  { %v1895_v15 = vrot.slane %v1542_v4, %v7172_v55  ;;  %v3410_v43 = vrot.slane %v3094_v45, %v7171_v28 }
 0x679   :  { %v1900_v29 = vsel %vm1620_vm5, %v1899_v38, %v1895_v15 }
 0x67a   :  { %v3088_v3 = vpop.xlane.xlu1 %3087  ;;  %v1935_v53 = vsel %vm1913_vm11, %v1900_v29, %v1934_v25  ;;  %v3098_v40 = vpop.xlane.xlu0 %3097 }
 0x67b   :  { %v3397_v27 = vrot.slane %v3088_v3, %v7172_v55  ;;  %v1950_v54 = vsel %vm1940_vm12, %v1935_v53, 0.0  ;;  %v3419_v21 = vrot.slane %v3098_v40, %v7171_v28 }
 0x67c   :  { %1951 = vadd.xlane.f32.xlu1 %v1950_v54 }
 0x67d   :  { %v3402_v56 = vsel %vm1620_vm5, %v3401_v35, %v3397_v27 }
 0x67e   :  { %v3092_v44 = vpop.xlane.xlu1 %3091  ;;  %v3495_v57 = vsel %vm1913_vm11, %v3402_v56, %v3494_v41  ;;  %v3102_v0 = vpop.xlane.xlu0 %3101 }
 0x67f   :  { %v3513_v18 = vsel %vm1940_vm12, %v3495_v57, 0.0  ;;  %v3428_v7 = vrot.slane %v3102_v0, %v7171_v28  ;;  %v3406_v52 = vrot.slane %v3092_v44, %v7172_v55 }
 0x680   :  { %3514 = vadd.xlane.f32.xlu0 %v3513_v18 }
 0x681   :  { %v3411_v46 = vsel %vm1620_vm5, %v3410_v43, %v3406_v52 }
 0x682   :  { %v3096_v16 = vpop.xlane.xlu1 %3095  ;;  %v3106_v42 = vpop.xlane.xlu0 %3105 }
 0x683   :  { %v3415_v31 = vrot.slane %v3096_v16, %v7172_v55  ;;  %v3437_v23 = vrot.slane %v3106_v42, %v7171_v28 }
 0x685   :  { %v3420_v63 = vsel %vm1620_vm5, %v3419_v21, %v3415_v31 }
 0x686   :  { %v3100_v62 = vpop.xlane.xlu1 %3099  ;;  %v3110_v34 = vpop.xlane.xlu0 %3109  ;;  %v3496_v11 = vsel %vm1901_vm6, %v3420_v63, %v3411_v46  ;;  %vm2005_vm6 = vcmask 39960  }
 0x687   :  { %v3424_v39 = vrot.slane %v3100_v62, %v7172_v55  ;;  %v3446_v59 = vrot.slane %v3110_v34, %v7171_v28 }
 0x689   :  { %v3429_v26 = vsel %vm1620_vm5, %v3428_v7, %v3424_v39 }
 0x68a   :  { %v3104_v13 = vpop.xlane.xlu1 %3103  ;;  %v3114_v51 = vpop.xlane.xlu0 %3113  ;;  %v3497_v4 = vsel %vm1903_vm7, %v3429_v26, %v3496_v11  ;;  %vm3585_vm7 = vcmask 1040384  }
 0x68b   :  { %v3433_v33 = vrot.slane %v3104_v13, %v7172_v55  ;;  %v3455_v17 = vrot.slane %v3114_v51, %v7171_v28  ;;  %v6864_v13 = vld [vmem:[%s6905_s3 + $0x28] sm:$0xff] }
 0x68d   :  { %v3438_v9 = vsel %vm1620_vm5, %v3437_v23, %v3433_v33 }
 0x68e   :  { %v3108_v47 = vpop.xlane.xlu1 %3107  ;;  %v3118_v48 = vpop.xlane.xlu0 %3117  ;;  %v3498_v1 = vsel %vm1905_vm8, %v3438_v9, %v3497_v4  ;;  %vm3591_vm8 = vcmask 9216  }
 0x68f   :  { %v3442_v32 = vrot.slane %v3108_v47, %v7172_v55  ;;  %v3464_v20 = vrot.slane %v3118_v48, %v7171_v28 }
 0x691   :  { %v3447_v50 = vsel %vm1620_vm5, %v3446_v59, %v3442_v32  ;;  %v4418_v32 = vld [vmem:[%s6905_s3 + $0x38] sm:$0xff] }
 0x692   :  { %v3112_v58 = vpop.xlane.xlu1 %3111  ;;  %v3122_v49 = vpop.xlane.xlu0 %3121  ;;  %v3499_v24 = vsel %vm1907_vm9, %v3447_v50, %v3498_v1 }
 0x693   :  { %v3451_v12 = vrot.slane %v3112_v58, %v7172_v55  ;;  %v3473_v19 = vrot.slane %v3122_v49, %v7171_v28  ;;  %v6856_v28 = vld [vmem:[%s6905_s3 + $0x8] sm:$0xff] }
 0x695   :  { %v3456_v8 = vsel %vm1620_vm5, %v3455_v17, %v3451_v12 }
 0x696   :  { %v3116_v6 = vpop.xlane.xlu1 %3115  ;;  %v1946_v38 = vpop.xlane.xlu0 %1945  ;;  %v3500_v5 = vsel %vm1909_vm0, %v3456_v8, %v3499_v24 }
 0x697   :  { %v3460_v30 = vrot.slane %v3116_v6, %v7172_v55  ;;  %v1954_v14 = vadd.f32 %v6839_v36, %v1946_v38 }
 0x699   :  { %v3465_v15 = vsel %vm1620_vm5, %v3464_v20, %v3460_v30  ;;  %v1962_v61 = vmin.f32 %v1954_v14, 0.0  ;;  %vm1958_vm14 = vcmp.gt.f32.partialorder %v1954_v14, 0.0 }
 0x69a   :  { %v3120_v45 = vpop.xlane.xlu1 %3119  ;;  %v3501_v29 = vsel %vm1911_vm10, %v3465_v15, %v3500_v5 }
 0x69b   :  { %v3469_v37 = vrot.slane %v3120_v45, %v7172_v55  ;;  %v1967_v55 = vmul.f32 1.442695, %v1962_v61 }
 0x69d   :  { %v3474_v35 = vsel %vm1620_vm5, %v3473_v19, %v3469_v37  ;;  %4399 = vpow2.f32 %v1967_v55 }
 0x69e   :  { %v1943_v25 = vpop.xlane.xlu1 %1942  ;;  %v3502_v60 = vsel %vm1913_vm11, %v3474_v35, %v3501_v29 }
 0x69f   :  { %v1953_v22 = vadd.f32 %v6856_v28, %v1943_v25  ;;  %v3516_v3 = vsel %vm1940_vm12, %v3502_v60, 0.0 }
 0x6a0   :  { %3517 = vadd.xlane.f32.xlu0 %v3516_v3 }
 0x6a1   :  { %v1961_v53 = vmin.f32 %v1953_v22, 0.0  ;;  %vm1957_vm13 = vcmp.gt.f32.partialorder %v1953_v22, 0.0 }
 0x6a2   :  { %v3509_v10 = vpop.xlane.xlu1 %3508 }
 0x6a3   :  { %v1965_v27 = vmul.f32 1.442695, %v1961_v53  ;;  %v3519_v54 = vadd.f32 %v6856_v28, %v3509_v10 }
 0x6a5   :  { %4401 = vpow2.f32 %v1965_v27  ;;  %v3527_v40 = vmin.f32 %v3519_v54, 0.0  ;;  %vm3523_vm15 = vcmp.gt.f32.partialorder %v3519_v54, 0.0 }
 0x6a7   :  { %v3531_v2 = vmul.f32 1.442695, %v3527_v40  ;;  %v4400_v56 = vpop.eup %4399 }
 0x6a8   :  { %v3680_v57 = vadd.f32 -1.0, %v4400_v56 }
 0x6a9   :  { %4403 = vpow2.f32 %v3531_v2 }
 0x6aa   :  { %v1978_v42 = vsel %vm1958_vm14, %v1954_v14, %v3680_v57 }
 0x6af   :  { %v4402_v41 = vpop.eup %4401 }
 0x6b0   :  { %v3679_v44 = vadd.f32 -1.0, %v4402_v41 }
 0x6b2   :  { %v1977_v18 = vsel %vm1957_vm13, %v1953_v22, %v3679_v44 }
 0x6b3   :  { %v4404_v0 = vpop.eup %4403  ;;  %1983 = vperm.xlu1 %4357, %v1977_v18  }
 0x6b4   :  { %v3759_v16 = vadd.f32 -1.0, %v4404_v0 }
 0x6b6   :  { %1988 = vperm.xlu0 %4358, %v1978_v42   ;;  %v3543_v62 = vsel %vm3523_vm15, %v3519_v54, %v3759_v16 }
 0x6b7   :  { %3549 = vperm.xlu1 %4357, %v3543_v62  }
 0x6c9   :  { %v1949_v34 = vpop.xlane.xlu1 %1948 }
 0x6ca   :  { %v1955_v51 = vadd.f32 %v6864_v13, %v1949_v34 }
 0x6cc   :  { %v1963_v47 = vmin.f32 %v1955_v51, 0.0  ;;  %vm1959_vm1 = vcmp.gt.f32.partialorder %v1955_v51, 0.0 }
 0x6cd   :  { %v3512_v48 = vpop.xlane.xlu0 %3511 }
 0x6ce   :  { %v1969_v21 = vmul.f32 1.442695, %v1963_v47  ;;  %v3520_v31 = vadd.f32 %v6839_v36, %v3512_v48 }
 0x6d0   :  { %4405 = vpow2.f32 %v1969_v21  ;;  %v3528_v7 = vmin.f32 %v3520_v31, 0.0  ;;  %vm3524_vm2 = vcmp.gt.f32.partialorder %v3520_v31, 0.0 }
 0x6d2   :  { %v3533_v39 = vmul.f32 1.442695, %v3528_v7 }
 0x6d4   :  { %4407 = vpow2.f32 %v3533_v39 }
 0x6da   :  { %v4406_v58 = vpop.eup %4405 }
 0x6db   :  { %v3681_v43 = vadd.f32 -1.0, %v4406_v58 }
 0x6dd   :  { %v1979_v52 = vsel %vm1959_vm1, %v1955_v51, %v3681_v43 }
 0x6de   :  { %v4408_v23 = vpop.eup %4407  ;;  %1993 = vperm.xlu1 %4357, %v1979_v52  }
 0x6df   :  { %v3760_v33 = vadd.f32 -1.0, %v4408_v23 }
 0x6e1   :  { %v3544_v49 = vsel %vm3524_vm2, %v3520_v31, %v3760_v33 }
 0x6e2   :  { %3554 = vperm.xlu1 %4357, %v3544_v49   ;;  %v31_v49 = vld [vmem:[%s6905_s3 + $0x48] ss:$0 sm:$0xff] }
 0x709   :  { %v1952_v59 = vpop.xlane.xlu1 %1951 }
 0x70a   :  { %v1956_v63 = vadd.f32 %v4418_v32, %v1952_v59 }
 0x70c   :  { %v1964_v17 = vmin.f32 %v1956_v63, 0.0  ;;  %vm1960_vm3 = vcmp.gt.f32.partialorder %v1956_v63, 0.0 }
 0x70d   :  { %v3515_v12 = vpop.xlane.xlu0 %3514 }
 0x70e   :  { %v1971_v26 = vmul.f32 1.442695, %v1964_v17  ;;  %v3521_v20 = vadd.f32 %v6864_v13, %v3515_v12 }
 0x710   :  { %4409 = vpow2.f32 %v1971_v26  ;;  %v3529_v6 = vmin.f32 %v3521_v20, 0.0  ;;  %vm3525_vm4 = vcmp.gt.f32.partialorder %v3521_v20, 0.0 }
 0x712   :  { %v3535_v46 = vmul.f32 1.442695, %v3529_v6 }
 0x714   :  { %4411 = vpow2.f32 %v3535_v46 }
 0x71a   :  { %v4410_v9 = vpop.eup %4409 }
 0x71b   :  { %v3682_v30 = vadd.f32 -1.0, %v4410_v9 }
 0x71d   :  { %v1980_v38 = vsel %vm1960_vm3, %v1956_v63, %v3682_v30 }
 0x71e   :  { %v4412_v11 = vpop.eup %4411  ;;  %1998 = vperm.xlu1 %4357, %v1980_v38  }
 0x71f   :  { %v3761_v50 = vadd.f32 -1.0, %v4412_v11 }
 0x721   :  { %v3545_v14 = vsel %vm3525_vm4, %v3521_v20, %v3761_v50 }
 0x722   :  { %3559 = vperm.xlu1 %4357, %v3545_v14  }
 0x72d   :  { %v3518_v4 = vpop.xlane.xlu0 %3517 }
 0x72e   :  { %v3522_v8 = vadd.f32 %v4418_v32, %v3518_v4 }
 0x730   :  { %v3530_v19 = vmin.f32 %v3522_v8, 0.0  ;;  %vm3526_vm5 = vcmp.gt.f32.partialorder %v3522_v8, 0.0 }
 0x732   :  { %v3537_v1 = vmul.f32 1.442695, %v3530_v19  ;;  %v1984_v37 = vpop.permute.xlu1 %1983 }
 0x733   :  { %v2001_v22 = vmul.f32 %v6856_v28, %v1984_v37 }
 0x734   :  { %4413 = vpow2.f32 %v3537_v1 }
 0x735   :  { %v1989_v35 = vpop.permute.xlu0 %1988  ;;  %v2006_v10 = vsel %vm2005_vm6, %v2001_v22, 0.0 }
 0x736   :  { %v3550_v61 = vpop.permute.xlu1 %3549  ;;  %v2002_v25 = vmul.f32 %v6839_v36, %v1989_v35 }
 0x737   :  { %v3567_v18 = vmul.f32 %v6856_v28, %v3550_v61 }
 0x738   :  { %v2007_v55 = vsel %vm2005_vm6, %v2002_v25, 0.0 }
 0x739   :  { %v2008_v54 = vadd.f32 %v2007_v55, %v2006_v10  ;;  %v3571_v62 = vsel %vm2005_vm6, %v3567_v18, 0.0 }
 0x73e   :  { %v4414_v15 = vpop.eup %4413 }
 0x73f   :  { %v3762_v45 = vadd.f32 -1.0, %v4414_v15 }
 0x741   :  { %v3546_v24 = vsel %vm3526_vm5, %v3522_v8, %v3762_v45 }
 0x742   :  { %3564 = vperm.xlu1 %4357, %v3546_v24  }
 0x75d   :  { %v1994_v5 = vpop.permute.xlu1 %1993 }
 0x75e   :  { %v2003_v3 = vmul.f32 %v6864_v13, %v1994_v5 }
 0x760   :  { %v2009_v27 = vsel %vm2005_vm6, %v2003_v3, 0.0 }
 0x761   :  { %v3555_v29 = vpop.permute.xlu1 %3554  ;;  %v2010_v2 = vadd.f32 %v2009_v27, %v2008_v54 }
 0x762   :  { %v3568_v44 = vmul.f32 %v6839_v36, %v3555_v29 }
 0x764   :  { %v3572_v16 = vsel %vm2005_vm6, %v3568_v44, 0.0 }
 0x765   :  { %v3573_v51 = vadd.f32 %v3572_v16, %v3571_v62 }
 0x79d   :  { %v1999_v60 = vpop.permute.xlu1 %1998 }
 0x79e   :  { %v2004_v53 = vmul.f32 %v4418_v32, %v1999_v60 }
 0x7a0   :  { %v2011_v40 = vsel %vm2005_vm6, %v2004_v53, 0.0 }
 0x7a1   :  { %v2012_v56 = vadd.f32 %v2011_v40, %v2010_v2  ;;  %v3560_v41 = vpop.permute.xlu1 %3559 }
 0x7a2   :  { %v3569_v0 = vmul.f32 %v6864_v13, %v3560_v41 }
 0x7a3   :  { %v2013_v57 = vrot.slane %v2012_v56, 4 }
 0x7a4   :  { %v3574_v34 = vsel %vm2005_vm6, %v3569_v0, 0.0 }
 0x7a5   :  { %v2014_v42 = vadd.f32 %v2013_v57, %v2012_v56  ;;  %v3575_v31 = vadd.f32 %v3574_v34, %v3573_v51 }
 0x7a7   :  { %v2015_v21 = vrot.slane %v2014_v42, 2 }
 0x7a9   :  { %v2016_v39 = vadd.f32 %v2015_v21, %v2014_v42 }
 0x7ab   :  { %v2017_v43 = vrot.slane %v2016_v39, 1 }
 0x7ad   :  { %v2018_v23 = vadd.f32 %v2017_v43, %v2016_v39 }
 0x7c1   :  { %v3565_v47 = vpop.permute.xlu1 %3564 }
 0x7c2   :  { %v3570_v48 = vmul.f32 %v4418_v32, %v3565_v47  ;;  %v2019_v32 = vadd.f32 %v2018_v23, %v31_v49 }
 0x7c4   :  { %v3576_v7 = vsel %vm2005_vm6, %v3570_v48, 0.0 }
 0x7c5   :  { %v3577_v36 = vadd.f32 %v3576_v7, %v3575_v31 }
 0x7c7   :  { %v3578_v58 = vrot.slane %v3577_v36, 4 }
 0x7c9   :  { %v3579_v28 = vadd.f32 %v3578_v58, %v3577_v36 }
 0x7cb   :  { %v3580_v13 = vrot.slane %v3579_v28, 2 }
 0x7cd   :  { %v3581_v52 = vadd.f32 %v3580_v13, %v3579_v28 }
 0x7cf   :  { %v3582_v33 = vrot.slane %v3581_v52, 1 }
 0x7d1   :  { %v3583_v59 = vadd.f32 %v3582_v33, %v3581_v52 }
 0x7d3   :  { %v3584_v63 = vadd.f32 %v3583_v59, %v31_v49 }
 0x7d5   :  { %v3586_v17 = vsel %vm3585_vm7, %v2019_v32, %v3584_v63 }
 0x7d6   :  { %3588 = vrot.lane.b32.xlu1 %v3586_v17, %s4445_s23 }
 0x848   :  { %v3589_v12 = vpop.permute.xlu1 %3588 }
 0x849   :  { %3592 = vst.msk [vmem:[#allocation2] sm:$0x3] %vm3591_vm8, %v3589_v12 }
 0x84a   :  { %4430 = shalt.err (!%p4427_p4)
}
 0x84b   :  { %s4431_s7 = scalar_lea.hbm %s6907_s5, 32 }
 0x84c   :  { %p4432_p5 = scmp.ne.s32.totalorder %s6907_s5, %s4431_s7  ;;  %p4435_p6 = scmp.lt.u32.totalorder %s4431_s7, %s6907_s5 }
 0x84e   :  { %p4437_p7 = pnand %p4435_p6, %p4432_p5 }
 0x850   :  { %4440 = shalt.err (!%p4437_p7)
}
 0x851   :  { %3602 = dma.vmem_to_hbm [thread:$0]  %s3600_s1, 32, %s6907_s5, [#allocation3]  }
 0x852   :  { %4441 = dma.done.wait [#allocation3], 32  }
 0x853   :  { %4442 = vsyncadd [#allocation3], 4294967264 }
 0x854   :  { %3606 = vsyncpa [#allocation3], 1 }

</bundles_post_ra>
